<compile_context>
chip_gen: v7x
topology: tpu7x:2x2x1
jax: 0.10.0
libtpu: 0.0.40
codegen_flags: <defaults>
</compile_context>

<pallas_src>
import functools

import jax
import jax.numpy as jnp
import numpy as np
from jax.experimental import pallas as pl
from jax.experimental.pallas import tpu as pltpu

LANE = 128  # TPU lane width; output-channel dim padded up to a multiple of this


def _round_up(x, m):
    return (x + m - 1) // m * m


# --------------------------------------------------------------------------- kernel

def _resblock_kernel(x_ref, w1_ref, b1_ref, w2_ref, b2_ref, wb_ref, bb_ref,
                     o_ref, *scratch, H, W, pool):
    """Fused ResBlockDiscriminator forward for one image of the batch grid."""
    HW = H * W
    f32 = jnp.float32

    x = x_ref[0]                                   # (HW, Cin) bf16, true Cin

    # ---- border masks for the shifted taps (computed once; the conv's zero halo is
    #      implicit: wrapped-around rows/cols of the roll are simply zeroed).
    pos = jax.lax.broadcasted_iota(jnp.int32, (HW, 1), 0)
    if (W & (W - 1)) == 0:
        col = jnp.bitwise_and(pos, W - 1)
    else:
        col = jax.lax.rem(pos, jnp.int32(W))
    not_first_row = pos >= W
    not_last_row = pos < (H - 1) * W
    not_first_col = col > 0
    not_last_col = col < (W - 1)

    def tap_mask(dy, dx):
        m = None
        if dy == -1:
            m = not_first_row
        elif dy == 1:
            m = not_last_row
        if dx == -1:
            m = not_first_col if m is None else jnp.logical_and(m, not_first_col)
        elif dx == 1:
            m = not_last_col if m is None else jnp.logical_and(m, not_last_col)
        return m

    def conv3x3(act_f32, w_ref, acc):
        # act_f32: (HW, C) f32 activation (zero halo implied by the masks)
        # w_ref:   (9, C, Cp) bf16, tap index = (dy+1)*3 + (dx+1)
        # acc:     f32 seed (bias row and/or bypass), broadcastable against (HW, Cp)
        for dy in (-1, 0, 1):
            for dx in (-1, 0, 1):
                off = dy * W + dx
                if off == 0:
                    shifted = act_f32
                else:
                    # out[p] = act[p + off]  (wrap-around positions masked to zero)
                    shifted = pltpu.roll(act_f32, shift=(-off) % HW, axis=0)
                m = tap_mask(dy, dx)
                if m is not None:
                    shifted = jnp.where(m, shifted, 0.0)
                lhs = shifted.astype(jnp.bfloat16)
                acc = acc + jnp.dot(lhs, w_ref[(dy + 1) * 3 + (dx + 1)],
                                    preferred_element_type=f32)
        return acc

    # ---- main branch: relu -> conv1(+b1) -> relu
    a1 = jnp.maximum(x.astype(f32), 0.0)                           # (HW, Cin) f32
    h1 = jnp.maximum(conv3x3(a1, w1_ref, b1_ref[...]), 0.0)        # (HW, Cp)  f32

    # ---- conv2 accumulator seeded with the 1x1 bypass (original x, no relu) + biases
    seed = jnp.dot(x, wb_ref[...], preferred_element_type=f32) + (
        b2_ref[...] + bb_ref[...])
    s = conv3x3(h1, w2_ref, seed)                                  # (HW, Cp) f32 = main + bypass

    Cp = s.shape[-1]
    if pool:
        pool_scr = scratch[0]                                      # (H//2, W, Cp) f32
        Ho, Wo = H // 2, W // 2
        # H-pooling: adjacent row pairs become contiguous, sublane-aligned halves.
        s2 = s.reshape(Ho, 2 * W, Cp)
        pool_scr[...] = s2[:, :W, :] + s2[:, W:, :]                # (Ho, W, Cp)
        # W-pooling: stride-2 reads of the scratch (no size-2 second-minor reshape).
        out = (pool_scr[:, pl.ds(0, Wo, 2), :] +
               pool_scr[:, pl.ds(1, Wo, 2), :]) * 0.25             # (Ho, Wo, Cp)
        o_ref[0] = out.astype(o_ref.dtype)
    else:
        o_ref[0] = s.reshape(H, W, Cp).astype(o_ref.dtype)


# --------------------------------------------------------------------------- param prep (plain JAX glue)

def _prep_conv3x3(w, cin_pad, cout_pad):
    # PyTorch (Cout, Cin, 3, 3) -> (tap=ky*3+kx, Cin_pad, Cout_pad) bf16
    co, ci, kh, kw = w.shape
    wt = jnp.transpose(w, (2, 3, 1, 0)).reshape(kh * kw, ci, co)
    wt = jnp.pad(wt, ((0, 0), (0, cin_pad - ci), (0, cout_pad - co)))
    return wt.astype(jnp.bfloat16)


def _prep_conv1x1(w, cout_pad):
    co, ci = w.shape[0], w.shape[1]
    wm = jnp.transpose(w.reshape(co, ci), (1, 0))                  # (Cin, Cout)
    return jnp.pad(wm, ((0, 0), (0, cout_pad - co))).astype(jnp.bfloat16)


def _prep_bias(b, cout_pad):
    return jnp.pad(b, (0, cout_pad - b.shape[0])).reshape(1, cout_pad).astype(jnp.float32)


# --------------------------------------------------------------------------- forward wrapper

@functools.partial(jax.jit, static_argnames=("stride",))
def resblock_discriminator(x_nchw, params, *, stride=1):
    assert stride in (1, 2)
    pool = stride != 1

    N, Cin, H, W = x_nchw.shape
    Cout = params["w1"].shape[0]
    Cp = _round_up(Cout, LANE)
    assert W % 8 == 0, "W must be a multiple of 8 (sublane-aligned in-kernel reshapes)"
    if pool:
        assert H % 2 == 0 and W % 2 == 0

    # Flattened NHWC bf16 with the TRUE channel count (no HBM channel pad); the
    # lane padding for the MXU lives only in the weights / f32 accumulators.
    x = jnp.transpose(x_nchw, (0, 2, 3, 1)).astype(jnp.bfloat16).reshape(N, H * W, Cin)

    w1 = _prep_conv3x3(params["w1"], Cin, Cp)      # (9, Cin, Cp)
    w2 = _prep_conv3x3(params["w2"], Cp, Cp)       # (9, Cp,  Cp)
    wb = _prep_conv1x1(params["wb"], Cp)           # (Cin, Cp)
    b1 = _prep_bias(params["b1"], Cp)
    b2 = _prep_bias(params["b2"], Cp)
    bb = _prep_bias(params["bb"], Cp)

    Ho, Wo = (H // 2, W // 2) if pool else (H, W)

    kern = functools.partial(_resblock_kernel, H=H, W=W, pool=pool)
    scratch = [pltpu.VMEM((H // 2, W, Cp), jnp.float32)] if pool else []

    out = pl.pallas_call(
        kern,
        out_shape=jax.ShapeDtypeStruct((N, Ho, Wo, Cp), jnp.bfloat16),
        grid=(N,),
        in_specs=[
            pl.BlockSpec((1, H * W, Cin), lambda n: (n, 0, 0)),
            pl.BlockSpec((9, Cin, Cp), lambda n: (0, 0, 0)),
            pl.BlockSpec((1, Cp), lambda n: (0, 0)),
            pl.BlockSpec((9, Cp, Cp), lambda n: (0, 0, 0)),
            pl.BlockSpec((1, Cp), lambda n: (0, 0)),
            pl.BlockSpec((Cin, Cp), lambda n: (0, 0)),
            pl.BlockSpec((1, Cp), lambda n: (0, 0)),
        ],
        out_specs=pl.BlockSpec((1, Ho, Wo, Cp), lambda n: (n, 0, 0, 0)),
        scratch_shapes=scratch,
        compiler_params=pltpu.CompilerParams(
            dimension_semantics=("parallel",),
            # TODO(synk): tune per generation at real shapes (raise on v5e/v6e,
            #             cap below 64 MiB on v7x); demo working set is < 2 MiB.
            vmem_limit_bytes=32 * 1024 * 1024,
        ),
    )(x, w1, b1, w2, b2, wb, bb)

    # When chaining discriminator blocks, keep the lane-padded NHWC bf16 layout and
    # skip this epilogue; the slice/transpose below is only for the NCHW interface.
    out = out[..., :Cout]
    return jnp.transpose(out, (0, 3, 1, 2))                        # (N, Cout, Ho, Wo) bf16


# --------------------------------------------------------------------------- pure-JAX reference

def resblock_reference(x, params, stride):
    def conv(inp, w, b, pad):
        y = jax.lax.conv_general_dilated(
            inp, w, window_strides=(1, 1),
            padding=[(pad, pad), (pad, pad)],
            dimension_numbers=("NCHW", "OIHW", "NCHW"))
        return y + b[None, :, None, None]

    h = conv(jax.nn.relu(x), params["w1"], params["b1"], 1)
    h = conv(jax.nn.relu(h), params["w2"], params["b2"], 1)
    byp = conv(x, params["wb"], params["bb"], 0)
    out = h + byp
    if stride != 1:
        n, c, hh, ww = out.shape
        out = out.reshape(n, c, hh // 2, 2, ww // 2, 2).mean(axis=(3, 5))
    return out


# --------------------------------------------------------------------------- init (mirrors the PyTorch module)

def xavier_uniform(key, shape, gain):
    cout, cin, kh, kw = shape
    fan_in = cin * kh * kw
    fan_out = cout * kh * kw
    a = gain * jnp.sqrt(6.0 / (fan_in + fan_out))
    return jax.random.uniform(key, shape, jnp.float32, -a, a)


def conv_bias_init(key, cin, kh, kw, cout):
    bound = 1.0 / jnp.sqrt(float(cin * kh * kw))
    return jax.random.uniform(key, (cout,), jnp.float32, -bound, bound)


def spectral_normalize(w, key, n_iter=1, eps=1e-12):
    # One power iteration from a deterministic random u (PyTorch spectral_norm analogue).
    # TODO(synk): PyTorch keeps a persistent running `u` buffer across steps; here it is
    #             re-drawn deterministically (exact only for the initial forward).
    cout = w.shape[0]
    w_mat = w.reshape(cout, -1)
    u = jax.random.normal(key, (cout,), jnp.float32)
    u = u / (jnp.linalg.norm(u) + eps)
    v = None
    for _ in range(n_iter):
        v = w_mat.T @ u
        v = v / (jnp.linalg.norm(v) + eps)
        u = w_mat @ v
        u = u / (jnp.linalg.norm(u) + eps)
    sigma = u @ (w_mat @ v)
    return w / sigma


def make_params(key, in_channels, out_channels):
    ks = jax.random.split(key, 8)
    w1 = xavier_uniform(ks[0], (out_channels, in_channels, 3, 3), gain=jnp.sqrt(2.0))
    b1 = conv_bias_init(ks[1], in_channels, 3, 3, out_channels)
    w2 = xavier_uniform(ks[2], (out_channels, out_channels, 3, 3), gain=jnp.sqrt(2.0))
    b2 = conv_bias_init(ks[3], out_channels, 3, 3, out_channels)
    wb = xavier_uniform(ks[4], (out_channels, in_channels, 1, 1), gain=1.0)
    bb = conv_bias_init(ks[5], in_channels, 1, 1, out_channels)
    w1 = spectral_normalize(w1, ks[6])
    w2 = spectral_normalize(w2, ks[7])
    wb = spectral_normalize(wb, jax.random.fold_in(key, 123))
    return dict(w1=w1, b1=b1, w2=w2, b2=b2, wb=wb, bb=bb)


# --------------------------------------------------------------------------- main

if __name__ == "__main__":
    key = jax.random.PRNGKey(0)
    k_x, k_p = jax.random.split(key)

    N, Cin, Hs, Ws = 2, 4, 16, 16
    Cout = 8
    x = jax.random.normal(k_x, (N, Cin, Hs, Ws), jnp.float32)
    params = make_params(k_p, Cin, Cout)

    for stride in (1, 2):
        y = jax.block_until_ready(resblock_discriminator(x, params, stride=stride))
        y_ref = jax.block_until_ready(resblock_reference(x, params, stride))
        assert y.shape == y_ref.shape, (y.shape, y_ref.shape)
        # bf16 activations/weights vs f32 reference: loose tolerance.
        np.testing.assert_allclose(np.asarray(y.astype(jnp.float32)),
                                   np.asarray(y_ref), rtol=0.1, atol=0.15)

    print("KERNEL_OK")
</pallas_src>

<mosaic_0001>
module attributes {stable_mosaic.version = 11 : i64} {
  func.func @_resblock_kernel(%arg0: i32, %arg1: memref<1x256x4xbf16, #tpu.memory_space<vmem>>, %arg2: memref<9x4x128xbf16, #tpu.memory_space<vmem>>, %arg3: memref<1x128xf32, #tpu.memory_space<vmem>>, %arg4: memref<9x128x128xbf16, #tpu.memory_space<vmem>>, %arg5: memref<1x128xf32, #tpu.memory_space<vmem>>, %arg6: memref<4x128xbf16, #tpu.memory_space<vmem>>, %arg7: memref<1x128xf32, #tpu.memory_space<vmem>>, %arg8: memref<1x16x16x128xbf16, #tpu.memory_space<vmem>>) attributes {dimension_semantics = [#tpu.dimension_semantics<parallel>], iteration_bounds = array<i64: 2>, scalar_prefetch = 0 : i64, scratch_operands = 0 : i64, tpu.core_type = #tpu.core_type<tc>, window_params = [{transform_indices = @transform_0, window_bounds = array<i64: 1, 256, 4>}, {pipeline_mode = #tpu.pipeline_mode<synchronous>, transform_indices = @transform_1, window_bounds = array<i64: 9, 4, 128>}, {pipeline_mode = #tpu.pipeline_mode<synchronous>, transform_indices = @transform_2, window_bounds = array<i64: 1, 128>}, {pipeline_mode = #tpu.pipeline_mode<synchronous>, transform_indices = @transform_3, window_bounds = array<i64: 9, 128, 128>}, {pipeline_mode = #tpu.pipeline_mode<synchronous>, transform_indices = @transform_4, window_bounds = array<i64: 1, 128>}, {pipeline_mode = #tpu.pipeline_mode<synchronous>, transform_indices = @transform_5, window_bounds = array<i64: 4, 128>}, {pipeline_mode = #tpu.pipeline_mode<synchronous>, transform_indices = @transform_6, window_bounds = array<i64: 1, 128>}, {transform_indices = @transform_7, window_bounds = array<i64: 1, 16, 16, 128>}]} {
    %c0 = arith.constant 0 : index
    %c0_0 = arith.constant 0 : index
    %c0_1 = arith.constant 0 : index
    %0 = vector.load %arg1[%c0, %c0_0, %c0_1] : memref<1x256x4xbf16, #tpu.memory_space<vmem>>, vector<1x256x4xbf16>
    %1 = vector.shape_cast %0 : vector<1x256x4xbf16> to vector<256x4xbf16>
    %2 = tpu.iota {dimensions = array<i32: 0>} : vector<256x1xi32>
    %c15_i32 = arith.constant 15 : i32
    %3 = vector.broadcast %c15_i32 : i32 to vector<256x1xi32>
    %4 = arith.andi %2, %3 : vector<256x1xi32>
    %c16_i32 = arith.constant 16 : i32
    %5 = vector.broadcast %c16_i32 : i32 to vector<256x1xi32>
    %6 = arith.cmpi sge, %2, %5 : vector<256x1xi32>
    %c240_i32 = arith.constant 240 : i32
    %7 = vector.broadcast %c240_i32 : i32 to vector<256x1xi32>
    %8 = arith.cmpi slt, %2, %7 : vector<256x1xi32>
    %c0_i32 = arith.constant 0 : i32
    %9 = vector.broadcast %c0_i32 : i32 to vector<256x1xi32>
    %10 = arith.cmpi sgt, %4, %9 : vector<256x1xi32>
    %c15_i32_2 = arith.constant 15 : i32
    %11 = vector.broadcast %c15_i32_2 : i32 to vector<256x1xi32>
    %12 = arith.cmpi slt, %4, %11 : vector<256x1xi32>
    %13 = arith.extf %1 : vector<256x4xbf16> to vector<256x4xf32>
    %cst = arith.constant 0.000000e+00 : f32
    %14 = vector.broadcast %cst : f32 to vector<256x4xf32>
    %15 = arith.maximumf %13, %14 : vector<256x4xf32>
    %c0_3 = arith.constant 0 : index
    %c0_4 = arith.constant 0 : index
    %16 = vector.load %arg3[%c0_3, %c0_4] : memref<1x128xf32, #tpu.memory_space<vmem>>, vector<1x128xf32>
    %c17_i32 = arith.constant 17 : i32
    %17 = tpu.dynamic_rotate %15 by %c17_i32 dim 0 : vector<256x4xf32>, i32 -> vector<256x4xf32>
    %18 = arith.andi %6, %10 : vector<256x1xi1>
    %cst_5 = arith.constant 0.000000e+00 : f32
    %19 = vector.shape_cast %18 : vector<256x1xi1> to vector<256x1xi1>
    %20 = vector.broadcast %19 : vector<256x1xi1> to vector<256x4xi1>
    %21 = vector.broadcast %cst_5 : f32 to vector<256x4xf32>
    %22 = arith.select %20, %17, %21 : vector<256x4xi1>, vector<256x4xf32>
    %23 = arith.truncf %22 : vector<256x4xf32> to vector<256x4xbf16>
    %c0_6 = arith.constant 0 : index
    %c0_7 = arith.constant 0 : index
    %c0_8 = arith.constant 0 : index
    %24 = vector.load %arg2[%c0_6, %c0_7, %c0_8] : memref<9x4x128xbf16, #tpu.memory_space<vmem>>, vector<1x4x128xbf16>
    %25 = vector.shape_cast %24 : vector<1x4x128xbf16> to vector<4x128xbf16>
    %cst_9 = arith.constant dense<0.000000e+00> : vector<256x128xf32>
    %26 = tpu.matmul %23, %25, %cst_9 {dimension_numbers = #tpu.dot_dimension_numbers<[1], [0], [0], [1], [0, 0, 1, 1], [], []>} : vector<256x4xbf16>, vector<4x128xbf16>, vector<256x128xf32> -> vector<256x128xf32>
    %27 = vector.broadcast %16 : vector<1x128xf32> to vector<256x128xf32>
    %28 = arith.addf %27, %26 : vector<256x128xf32>
    %c16_i32_10 = arith.constant 16 : i32
    %29 = tpu.dynamic_rotate %15 by %c16_i32_10 dim 0 : vector<256x4xf32>, i32 -> vector<256x4xf32>
    %cst_11 = arith.constant 0.000000e+00 : f32
    %30 = vector.shape_cast %6 : vector<256x1xi1> to vector<256x1xi1>
    %31 = vector.broadcast %30 : vector<256x1xi1> to vector<256x4xi1>
    %32 = vector.broadcast %cst_11 : f32 to vector<256x4xf32>
    %33 = arith.select %31, %29, %32 : vector<256x4xi1>, vector<256x4xf32>
    %34 = arith.truncf %33 : vector<256x4xf32> to vector<256x4xbf16>
    %c1 = arith.constant 1 : index
    %c0_12 = arith.constant 0 : index
    %c0_13 = arith.constant 0 : index
    %35 = vector.load %arg2[%c1, %c0_12, %c0_13] : memref<9x4x128xbf16, #tpu.memory_space<vmem>>, vector<1x4x128xbf16>
    %36 = vector.shape_cast %35 : vector<1x4x128xbf16> to vector<4x128xbf16>
    %cst_14 = arith.constant dense<0.000000e+00> : vector<256x128xf32>
    %37 = tpu.matmul %34, %36, %cst_14 {dimension_numbers = #tpu.dot_dimension_numbers<[1], [0], [0], [1], [0, 0, 1, 1], [], []>} : vector<256x4xbf16>, vector<4x128xbf16>, vector<256x128xf32> -> vector<256x128xf32>
    %38 = arith.addf %28, %37 : vector<256x128xf32>
    %c15_i32_15 = arith.constant 15 : i32
    %39 = tpu.dynamic_rotate %15 by %c15_i32_15 dim 0 : vector<256x4xf32>, i32 -> vector<256x4xf32>
    %40 = arith.andi %6, %12 : vector<256x1xi1>
    %cst_16 = arith.constant 0.000000e+00 : f32
    %41 = vector.shape_cast %40 : vector<256x1xi1> to vector<256x1xi1>
    %42 = vector.broadcast %41 : vector<256x1xi1> to vector<256x4xi1>
    %43 = vector.broadcast %cst_16 : f32 to vector<256x4xf32>
    %44 = arith.select %42, %39, %43 : vector<256x4xi1>, vector<256x4xf32>
    %45 = arith.truncf %44 : vector<256x4xf32> to vector<256x4xbf16>
    %c2 = arith.constant 2 : index
    %c0_17 = arith.constant 0 : index
    %c0_18 = arith.constant 0 : index
    %46 = vector.load %arg2[%c2, %c0_17, %c0_18] : memref<9x4x128xbf16, #tpu.memory_space<vmem>>, vector<1x4x128xbf16>
    %47 = vector.shape_cast %46 : vector<1x4x128xbf16> to vector<4x128xbf16>
    %cst_19 = arith.constant dense<0.000000e+00> : vector<256x128xf32>
    %48 = tpu.matmul %45, %47, %cst_19 {dimension_numbers = #tpu.dot_dimension_numbers<[1], [0], [0], [1], [0, 0, 1, 1], [], []>} : vector<256x4xbf16>, vector<4x128xbf16>, vector<256x128xf32> -> vector<256x128xf32>
    %49 = arith.addf %38, %48 : vector<256x128xf32>
    %c1_i32 = arith.constant 1 : i32
    %50 = tpu.dynamic_rotate %15 by %c1_i32 dim 0 : vector<256x4xf32>, i32 -> vector<256x4xf32>
    %cst_20 = arith.constant 0.000000e+00 : f32
    %51 = vector.shape_cast %10 : vector<256x1xi1> to vector<256x1xi1>
    %52 = vector.broadcast %51 : vector<256x1xi1> to vector<256x4xi1>
    %53 = vector.broadcast %cst_20 : f32 to vector<256x4xf32>
    %54 = arith.select %52, %50, %53 : vector<256x4xi1>, vector<256x4xf32>
    %55 = arith.truncf %54 : vector<256x4xf32> to vector<256x4xbf16>
    %c3 = arith.constant 3 : index
    %c0_21 = arith.constant 0 : index
    %c0_22 = arith.constant 0 : index
    %56 = vector.load %arg2[%c3, %c0_21, %c0_22] : memref<9x4x128xbf16, #tpu.memory_space<vmem>>, vector<1x4x128xbf16>
    %57 = vector.shape_cast %56 : vector<1x4x128xbf16> to vector<4x128xbf16>
    %cst_23 = arith.constant dense<0.000000e+00> : vector<256x128xf32>
    %58 = tpu.matmul %55, %57, %cst_23 {dimension_numbers = #tpu.dot_dimension_numbers<[1], [0], [0], [1], [0, 0, 1, 1], [], []>} : vector<256x4xbf16>, vector<4x128xbf16>, vector<256x128xf32> -> vector<256x128xf32>
    %59 = arith.addf %49, %58 : vector<256x128xf32>
    %60 = arith.truncf %15 : vector<256x4xf32> to vector<256x4xbf16>
    %c4 = arith.constant 4 : index
    %c0_24 = arith.constant 0 : index
    %c0_25 = arith.constant 0 : index
    %61 = vector.load %arg2[%c4, %c0_24, %c0_25] : memref<9x4x128xbf16, #tpu.memory_space<vmem>>, vector<1x4x128xbf16>
    %62 = vector.shape_cast %61 : vector<1x4x128xbf16> to vector<4x128xbf16>
    %cst_26 = arith.constant dense<0.000000e+00> : vector<256x128xf32>
    %63 = tpu.matmul %60, %62, %cst_26 {dimension_numbers = #tpu.dot_dimension_numbers<[1], [0], [0], [1], [0, 0, 1, 1], [], []>} : vector<256x4xbf16>, vector<4x128xbf16>, vector<256x128xf32> -> vector<256x128xf32>
    %64 = arith.addf %59, %63 : vector<256x128xf32>
    %c255_i32 = arith.constant 255 : i32
    %65 = tpu.dynamic_rotate %15 by %c255_i32 dim 0 : vector<256x4xf32>, i32 -> vector<256x4xf32>
    %cst_27 = arith.constant 0.000000e+00 : f32
    %66 = vector.shape_cast %12 : vector<256x1xi1> to vector<256x1xi1>
    %67 = vector.broadcast %66 : vector<256x1xi1> to vector<256x4xi1>
    %68 = vector.broadcast %cst_27 : f32 to vector<256x4xf32>
    %69 = arith.select %67, %65, %68 : vector<256x4xi1>, vector<256x4xf32>
    %70 = arith.truncf %69 : vector<256x4xf32> to vector<256x4xbf16>
    %c5 = arith.constant 5 : index
    %c0_28 = arith.constant 0 : index
    %c0_29 = arith.constant 0 : index
    %71 = vector.load %arg2[%c5, %c0_28, %c0_29] : memref<9x4x128xbf16, #tpu.memory_space<vmem>>, vector<1x4x128xbf16>
    %72 = vector.shape_cast %71 : vector<1x4x128xbf16> to vector<4x128xbf16>
    %cst_30 = arith.constant dense<0.000000e+00> : vector<256x128xf32>
    %73 = tpu.matmul %70, %72, %cst_30 {dimension_numbers = #tpu.dot_dimension_numbers<[1], [0], [0], [1], [0, 0, 1, 1], [], []>} : vector<256x4xbf16>, vector<4x128xbf16>, vector<256x128xf32> -> vector<256x128xf32>
    %74 = arith.addf %64, %73 : vector<256x128xf32>
    %c241_i32 = arith.constant 241 : i32
    %75 = tpu.dynamic_rotate %15 by %c241_i32 dim 0 : vector<256x4xf32>, i32 -> vector<256x4xf32>
    %76 = arith.andi %8, %10 : vector<256x1xi1>
    %cst_31 = arith.constant 0.000000e+00 : f32
    %77 = vector.shape_cast %76 : vector<256x1xi1> to vector<256x1xi1>
    %78 = vector.broadcast %77 : vector<256x1xi1> to vector<256x4xi1>
    %79 = vector.broadcast %cst_31 : f32 to vector<256x4xf32>
    %80 = arith.select %78, %75, %79 : vector<256x4xi1>, vector<256x4xf32>
    %81 = arith.truncf %80 : vector<256x4xf32> to vector<256x4xbf16>
    %c6 = arith.constant 6 : index
    %c0_32 = arith.constant 0 : index
    %c0_33 = arith.constant 0 : index
    %82 = vector.load %arg2[%c6, %c0_32, %c0_33] : memref<9x4x128xbf16, #tpu.memory_space<vmem>>, vector<1x4x128xbf16>
    %83 = vector.shape_cast %82 : vector<1x4x128xbf16> to vector<4x128xbf16>
    %cst_34 = arith.constant dense<0.000000e+00> : vector<256x128xf32>
    %84 = tpu.matmul %81, %83, %cst_34 {dimension_numbers = #tpu.dot_dimension_numbers<[1], [0], [0], [1], [0, 0, 1, 1], [], []>} : vector<256x4xbf16>, vector<4x128xbf16>, vector<256x128xf32> -> vector<256x128xf32>
    %85 = arith.addf %74, %84 : vector<256x128xf32>
    %c240_i32_35 = arith.constant 240 : i32
    %86 = tpu.dynamic_rotate %15 by %c240_i32_35 dim 0 : vector<256x4xf32>, i32 -> vector<256x4xf32>
    %cst_36 = arith.constant 0.000000e+00 : f32
    %87 = vector.shape_cast %8 : vector<256x1xi1> to vector<256x1xi1>
    %88 = vector.broadcast %87 : vector<256x1xi1> to vector<256x4xi1>
    %89 = vector.broadcast %cst_36 : f32 to vector<256x4xf32>
    %90 = arith.select %88, %86, %89 : vector<256x4xi1>, vector<256x4xf32>
    %91 = arith.truncf %90 : vector<256x4xf32> to vector<256x4xbf16>
    %c7 = arith.constant 7 : index
    %c0_37 = arith.constant 0 : index
    %c0_38 = arith.constant 0 : index
    %92 = vector.load %arg2[%c7, %c0_37, %c0_38] : memref<9x4x128xbf16, #tpu.memory_space<vmem>>, vector<1x4x128xbf16>
    %93 = vector.shape_cast %92 : vector<1x4x128xbf16> to vector<4x128xbf16>
    %cst_39 = arith.constant dense<0.000000e+00> : vector<256x128xf32>
    %94 = tpu.matmul %91, %93, %cst_39 {dimension_numbers = #tpu.dot_dimension_numbers<[1], [0], [0], [1], [0, 0, 1, 1], [], []>} : vector<256x4xbf16>, vector<4x128xbf16>, vector<256x128xf32> -> vector<256x128xf32>
    %95 = arith.addf %85, %94 : vector<256x128xf32>
    %c239_i32 = arith.constant 239 : i32
    %96 = tpu.dynamic_rotate %15 by %c239_i32 dim 0 : vector<256x4xf32>, i32 -> vector<256x4xf32>
    %97 = arith.andi %8, %12 : vector<256x1xi1>
    %cst_40 = arith.constant 0.000000e+00 : f32
    %98 = vector.shape_cast %97 : vector<256x1xi1> to vector<256x1xi1>
    %99 = vector.broadcast %98 : vector<256x1xi1> to vector<256x4xi1>
    %100 = vector.broadcast %cst_40 : f32 to vector<256x4xf32>
    %101 = arith.select %99, %96, %100 : vector<256x4xi1>, vector<256x4xf32>
    %102 = arith.truncf %101 : vector<256x4xf32> to vector<256x4xbf16>
    %c8 = arith.constant 8 : index
    %c0_41 = arith.constant 0 : index
    %c0_42 = arith.constant 0 : index
    %103 = vector.load %arg2[%c8, %c0_41, %c0_42] : memref<9x4x128xbf16, #tpu.memory_space<vmem>>, vector<1x4x128xbf16>
    %104 = vector.shape_cast %103 : vector<1x4x128xbf16> to vector<4x128xbf16>
    %cst_43 = arith.constant dense<0.000000e+00> : vector<256x128xf32>
    %105 = tpu.matmul %102, %104, %cst_43 {dimension_numbers = #tpu.dot_dimension_numbers<[1], [0], [0], [1], [0, 0, 1, 1], [], []>} : vector<256x4xbf16>, vector<4x128xbf16>, vector<256x128xf32> -> vector<256x128xf32>
    %106 = arith.addf %95, %105 : vector<256x128xf32>
    %cst_44 = arith.constant 0.000000e+00 : f32
    %107 = vector.broadcast %cst_44 : f32 to vector<256x128xf32>
    %108 = arith.maximumf %106, %107 : vector<256x128xf32>
    %c0_45 = arith.constant 0 : index
    %c0_46 = arith.constant 0 : index
    %109 = vector.load %arg6[%c0_45, %c0_46] : memref<4x128xbf16, #tpu.memory_space<vmem>>, vector<4x128xbf16>
    %cst_47 = arith.constant dense<0.000000e+00> : vector<256x128xf32>
    %110 = tpu.matmul %1, %109, %cst_47 {dimension_numbers = #tpu.dot_dimension_numbers<[1], [0], [0], [1], [0, 0, 1, 1], [], []>} : vector<256x4xbf16>, vector<4x128xbf16>, vector<256x128xf32> -> vector<256x128xf32>
    %c0_48 = arith.constant 0 : index
    %c0_49 = arith.constant 0 : index
    %111 = vector.load %arg5[%c0_48, %c0_49] : memref<1x128xf32, #tpu.memory_space<vmem>>, vector<1x128xf32>
    %c0_50 = arith.constant 0 : index
    %c0_51 = arith.constant 0 : index
    %112 = vector.load %arg7[%c0_50, %c0_51] : memref<1x128xf32, #tpu.memory_space<vmem>>, vector<1x128xf32>
    %113 = arith.addf %111, %112 : vector<1x128xf32>
    %114 = vector.broadcast %113 : vector<1x128xf32> to vector<256x128xf32>
    %115 = arith.addf %110, %114 : vector<256x128xf32>
    %c17_i32_52 = arith.constant 17 : i32
    %116 = tpu.dynamic_rotate %108 by %c17_i32_52 dim 0 : vector<256x128xf32>, i32 -> vector<256x128xf32>
    %117 = arith.andi %6, %10 : vector<256x1xi1>
    %cst_53 = arith.constant 0.000000e+00 : f32
    %118 = vector.shape_cast %117 : vector<256x1xi1> to vector<256x1xi1>
    %119 = vector.broadcast %118 : vector<256x1xi1> to vector<256x128xi1>
    %120 = vector.broadcast %cst_53 : f32 to vector<256x128xf32>
    %121 = arith.select %119, %116, %120 : vector<256x128xi1>, vector<256x128xf32>
    %122 = arith.truncf %121 : vector<256x128xf32> to vector<256x128xbf16>
    %c0_54 = arith.constant 0 : index
    %c0_55 = arith.constant 0 : index
    %c0_56 = arith.constant 0 : index
    %123 = vector.load %arg4[%c0_54, %c0_55, %c0_56] : memref<9x128x128xbf16, #tpu.memory_space<vmem>>, vector<1x128x128xbf16>
    %124 = vector.shape_cast %123 : vector<1x128x128xbf16> to vector<128x128xbf16>
    %cst_57 = arith.constant dense<0.000000e+00> : vector<256x128xf32>
    %125 = tpu.matmul %122, %124, %cst_57 {dimension_numbers = #tpu.dot_dimension_numbers<[1], [0], [0], [1], [0, 0, 1, 1], [], []>} : vector<256x128xbf16>, vector<128x128xbf16>, vector<256x128xf32> -> vector<256x128xf32>
    %126 = arith.addf %115, %125 : vector<256x128xf32>
    %c16_i32_58 = arith.constant 16 : i32
    %127 = tpu.dynamic_rotate %108 by %c16_i32_58 dim 0 : vector<256x128xf32>, i32 -> vector<256x128xf32>
    %cst_59 = arith.constant 0.000000e+00 : f32
    %128 = vector.shape_cast %6 : vector<256x1xi1> to vector<256x1xi1>
    %129 = vector.broadcast %128 : vector<256x1xi1> to vector<256x128xi1>
    %130 = vector.broadcast %cst_59 : f32 to vector<256x128xf32>
    %131 = arith.select %129, %127, %130 : vector<256x128xi1>, vector<256x128xf32>
    %132 = arith.truncf %131 : vector<256x128xf32> to vector<256x128xbf16>
    %c1_60 = arith.constant 1 : index
    %c0_61 = arith.constant 0 : index
    %c0_62 = arith.constant 0 : index
    %133 = vector.load %arg4[%c1_60, %c0_61, %c0_62] : memref<9x128x128xbf16, #tpu.memory_space<vmem>>, vector<1x128x128xbf16>
    %134 = vector.shape_cast %133 : vector<1x128x128xbf16> to vector<128x128xbf16>
    %cst_63 = arith.constant dense<0.000000e+00> : vector<256x128xf32>
    %135 = tpu.matmul %132, %134, %cst_63 {dimension_numbers = #tpu.dot_dimension_numbers<[1], [0], [0], [1], [0, 0, 1, 1], [], []>} : vector<256x128xbf16>, vector<128x128xbf16>, vector<256x128xf32> -> vector<256x128xf32>
    %136 = arith.addf %126, %135 : vector<256x128xf32>
    %c15_i32_64 = arith.constant 15 : i32
    %137 = tpu.dynamic_rotate %108 by %c15_i32_64 dim 0 : vector<256x128xf32>, i32 -> vector<256x128xf32>
    %138 = arith.andi %6, %12 : vector<256x1xi1>
    %cst_65 = arith.constant 0.000000e+00 : f32
    %139 = vector.shape_cast %138 : vector<256x1xi1> to vector<256x1xi1>
    %140 = vector.broadcast %139 : vector<256x1xi1> to vector<256x128xi1>
    %141 = vector.broadcast %cst_65 : f32 to vector<256x128xf32>
    %142 = arith.select %140, %137, %141 : vector<256x128xi1>, vector<256x128xf32>
    %143 = arith.truncf %142 : vector<256x128xf32> to vector<256x128xbf16>
    %c2_66 = arith.constant 2 : index
    %c0_67 = arith.constant 0 : index
    %c0_68 = arith.constant 0 : index
    %144 = vector.load %arg4[%c2_66, %c0_67, %c0_68] : memref<9x128x128xbf16, #tpu.memory_space<vmem>>, vector<1x128x128xbf16>
    %145 = vector.shape_cast %144 : vector<1x128x128xbf16> to vector<128x128xbf16>
    %cst_69 = arith.constant dense<0.000000e+00> : vector<256x128xf32>
    %146 = tpu.matmul %143, %145, %cst_69 {dimension_numbers = #tpu.dot_dimension_numbers<[1], [0], [0], [1], [0, 0, 1, 1], [], []>} : vector<256x128xbf16>, vector<128x128xbf16>, vector<256x128xf32> -> vector<256x128xf32>
    %147 = arith.addf %136, %146 : vector<256x128xf32>
    %c1_i32_70 = arith.constant 1 : i32
    %148 = tpu.dynamic_rotate %108 by %c1_i32_70 dim 0 : vector<256x128xf32>, i32 -> vector<256x128xf32>
    %cst_71 = arith.constant 0.000000e+00 : f32
    %149 = vector.shape_cast %10 : vector<256x1xi1> to vector<256x1xi1>
    %150 = vector.broadcast %149 : vector<256x1xi1> to vector<256x128xi1>
    %151 = vector.broadcast %cst_71 : f32 to vector<256x128xf32>
    %152 = arith.select %150, %148, %151 : vector<256x128xi1>, vector<256x128xf32>
    %153 = arith.truncf %152 : vector<256x128xf32> to vector<256x128xbf16>
    %c3_72 = arith.constant 3 : index
    %c0_73 = arith.constant 0 : index
    %c0_74 = arith.constant 0 : index
    %154 = vector.load %arg4[%c3_72, %c0_73, %c0_74] : memref<9x128x128xbf16, #tpu.memory_space<vmem>>, vector<1x128x128xbf16>
    %155 = vector.shape_cast %154 : vector<1x128x128xbf16> to vector<128x128xbf16>
    %cst_75 = arith.constant dense<0.000000e+00> : vector<256x128xf32>
    %156 = tpu.matmul %153, %155, %cst_75 {dimension_numbers = #tpu.dot_dimension_numbers<[1], [0], [0], [1], [0, 0, 1, 1], [], []>} : vector<256x128xbf16>, vector<128x128xbf16>, vector<256x128xf32> -> vector<256x128xf32>
    %157 = arith.addf %147, %156 : vector<256x128xf32>
    %158 = arith.truncf %108 : vector<256x128xf32> to vector<256x128xbf16>
    %c4_76 = arith.constant 4 : index
    %c0_77 = arith.constant 0 : index
    %c0_78 = arith.constant 0 : index
    %159 = vector.load %arg4[%c4_76, %c0_77, %c0_78] : memref<9x128x128xbf16, #tpu.memory_space<vmem>>, vector<1x128x128xbf16>
    %160 = vector.shape_cast %159 : vector<1x128x128xbf16> to vector<128x128xbf16>
    %cst_79 = arith.constant dense<0.000000e+00> : vector<256x128xf32>
    %161 = tpu.matmul %158, %160, %cst_79 {dimension_numbers = #tpu.dot_dimension_numbers<[1], [0], [0], [1], [0, 0, 1, 1], [], []>} : vector<256x128xbf16>, vector<128x128xbf16>, vector<256x128xf32> -> vector<256x128xf32>
    %162 = arith.addf %157, %161 : vector<256x128xf32>
    %c255_i32_80 = arith.constant 255 : i32
    %163 = tpu.dynamic_rotate %108 by %c255_i32_80 dim 0 : vector<256x128xf32>, i32 -> vector<256x128xf32>
    %cst_81 = arith.constant 0.000000e+00 : f32
    %164 = vector.shape_cast %12 : vector<256x1xi1> to vector<256x1xi1>
    %165 = vector.broadcast %164 : vector<256x1xi1> to vector<256x128xi1>
    %166 = vector.broadcast %cst_81 : f32 to vector<256x128xf32>
    %167 = arith.select %165, %163, %166 : vector<256x128xi1>, vector<256x128xf32>
    %168 = arith.truncf %167 : vector<256x128xf32> to vector<256x128xbf16>
    %c5_82 = arith.constant 5 : index
    %c0_83 = arith.constant 0 : index
    %c0_84 = arith.constant 0 : index
    %169 = vector.load %arg4[%c5_82, %c0_83, %c0_84] : memref<9x128x128xbf16, #tpu.memory_space<vmem>>, vector<1x128x128xbf16>
    %170 = vector.shape_cast %169 : vector<1x128x128xbf16> to vector<128x128xbf16>
    %cst_85 = arith.constant dense<0.000000e+00> : vector<256x128xf32>
    %171 = tpu.matmul %168, %170, %cst_85 {dimension_numbers = #tpu.dot_dimension_numbers<[1], [0], [0], [1], [0, 0, 1, 1], [], []>} : vector<256x128xbf16>, vector<128x128xbf16>, vector<256x128xf32> -> vector<256x128xf32>
    %172 = arith.addf %162, %171 : vector<256x128xf32>
    %c241_i32_86 = arith.constant 241 : i32
    %173 = tpu.dynamic_rotate %108 by %c241_i32_86 dim 0 : vector<256x128xf32>, i32 -> vector<256x128xf32>
    %174 = arith.andi %8, %10 : vector<256x1xi1>
    %cst_87 = arith.constant 0.000000e+00 : f32
    %175 = vector.shape_cast %174 : vector<256x1xi1> to vector<256x1xi1>
    %176 = vector.broadcast %175 : vector<256x1xi1> to vector<256x128xi1>
    %177 = vector.broadcast %cst_87 : f32 to vector<256x128xf32>
    %178 = arith.select %176, %173, %177 : vector<256x128xi1>, vector<256x128xf32>
    %179 = arith.truncf %178 : vector<256x128xf32> to vector<256x128xbf16>
    %c6_88 = arith.constant 6 : index
    %c0_89 = arith.constant 0 : index
    %c0_90 = arith.constant 0 : index
    %180 = vector.load %arg4[%c6_88, %c0_89, %c0_90] : memref<9x128x128xbf16, #tpu.memory_space<vmem>>, vector<1x128x128xbf16>
    %181 = vector.shape_cast %180 : vector<1x128x128xbf16> to vector<128x128xbf16>
    %cst_91 = arith.constant dense<0.000000e+00> : vector<256x128xf32>
    %182 = tpu.matmul %179, %181, %cst_91 {dimension_numbers = #tpu.dot_dimension_numbers<[1], [0], [0], [1], [0, 0, 1, 1], [], []>} : vector<256x128xbf16>, vector<128x128xbf16>, vector<256x128xf32> -> vector<256x128xf32>
    %183 = arith.addf %172, %182 : vector<256x128xf32>
    %c240_i32_92 = arith.constant 240 : i32
    %184 = tpu.dynamic_rotate %108 by %c240_i32_92 dim 0 : vector<256x128xf32>, i32 -> vector<256x128xf32>
    %cst_93 = arith.constant 0.000000e+00 : f32
    %185 = vector.shape_cast %8 : vector<256x1xi1> to vector<256x1xi1>
    %186 = vector.broadcast %185 : vector<256x1xi1> to vector<256x128xi1>
    %187 = vector.broadcast %cst_93 : f32 to vector<256x128xf32>
    %188 = arith.select %186, %184, %187 : vector<256x128xi1>, vector<256x128xf32>
    %189 = arith.truncf %188 : vector<256x128xf32> to vector<256x128xbf16>
    %c7_94 = arith.constant 7 : index
    %c0_95 = arith.constant 0 : index
    %c0_96 = arith.constant 0 : index
    %190 = vector.load %arg4[%c7_94, %c0_95, %c0_96] : memref<9x128x128xbf16, #tpu.memory_space<vmem>>, vector<1x128x128xbf16>
    %191 = vector.shape_cast %190 : vector<1x128x128xbf16> to vector<128x128xbf16>
    %cst_97 = arith.constant dense<0.000000e+00> : vector<256x128xf32>
    %192 = tpu.matmul %189, %191, %cst_97 {dimension_numbers = #tpu.dot_dimension_numbers<[1], [0], [0], [1], [0, 0, 1, 1], [], []>} : vector<256x128xbf16>, vector<128x128xbf16>, vector<256x128xf32> -> vector<256x128xf32>
    %193 = arith.addf %183, %192 : vector<256x128xf32>
    %c239_i32_98 = arith.constant 239 : i32
    %194 = tpu.dynamic_rotate %108 by %c239_i32_98 dim 0 : vector<256x128xf32>, i32 -> vector<256x128xf32>
    %195 = arith.andi %8, %12 : vector<256x1xi1>
    %cst_99 = arith.constant 0.000000e+00 : f32
    %196 = vector.shape_cast %195 : vector<256x1xi1> to vector<256x1xi1>
    %197 = vector.broadcast %196 : vector<256x1xi1> to vector<256x128xi1>
    %198 = vector.broadcast %cst_99 : f32 to vector<256x128xf32>
    %199 = arith.select %197, %194, %198 : vector<256x128xi1>, vector<256x128xf32>
    %200 = arith.truncf %199 : vector<256x128xf32> to vector<256x128xbf16>
    %c8_100 = arith.constant 8 : index
    %c0_101 = arith.constant 0 : index
    %c0_102 = arith.constant 0 : index
    %201 = vector.load %arg4[%c8_100, %c0_101, %c0_102] : memref<9x128x128xbf16, #tpu.memory_space<vmem>>, vector<1x128x128xbf16>
    %202 = vector.shape_cast %201 : vector<1x128x128xbf16> to vector<128x128xbf16>
    %cst_103 = arith.constant dense<0.000000e+00> : vector<256x128xf32>
    %203 = tpu.matmul %200, %202, %cst_103 {dimension_numbers = #tpu.dot_dimension_numbers<[1], [0], [0], [1], [0, 0, 1, 1], [], []>} : vector<256x128xbf16>, vector<128x128xbf16>, vector<256x128xf32> -> vector<256x128xf32>
    %204 = arith.addf %193, %203 : vector<256x128xf32>
    %205 = vector.shape_cast %204 : vector<256x128xf32> to vector<16x16x128xf32>
    %206 = arith.truncf %205 : vector<16x16x128xf32> to vector<16x16x128xbf16>
    %c0_104 = arith.constant 0 : index
    %c0_105 = arith.constant 0 : index
    %c0_106 = arith.constant 0 : index
    %c0_107 = arith.constant 0 : index
    %207 = vector.load %arg8[%c0_104, %c0_105, %c0_106, %c0_107] : memref<1x16x16x128xbf16, #tpu.memory_space<vmem>>, vector<1x16x16x128xbf16>
    %208 = vector.shape_cast %207 : vector<1x16x16x128xbf16> to vector<16x16x128xbf16>
    %209 = vector.shape_cast %206 : vector<16x16x128xbf16> to vector<1x16x16x128xbf16>
    tpu.vector_store %arg8[%c0_104, %c0_105, %c0_106, %c0_107], %209 {strides = array<i32>} : memref<1x16x16x128xbf16, #tpu.memory_space<vmem>>, vector<1x16x16x128xbf16>,
    return
  }
  func.func @transform_0(%arg0: i32) -> (i32, i32, i32) {
    %c0_i32 = arith.constant 0 : i32
    %c0_i32_0 = arith.constant 0 : i32
    %c0_i32_1 = arith.constant 0 : i32
    return %arg0, %c0_i32, %c0_i32_0 : i32, i32, i32
  }
  func.func @transform_1(%arg0: i32) -> (i32, i32, i32) {
    %c0_i32 = arith.constant 0 : i32
    %c0_i32_0 = arith.constant 0 : i32
    %c0_i32_1 = arith.constant 0 : i32
    %c0_i32_2 = arith.constant 0 : i32
    return %c0_i32, %c0_i32_0, %c0_i32_1 : i32, i32, i32
  }
  func.func @transform_2(%arg0: i32) -> (i32, i32) {
    %c0_i32 = arith.constant 0 : i32
    %c0_i32_0 = arith.constant 0 : i32
    %c0_i32_1 = arith.constant 0 : i32
    return %c0_i32, %c0_i32_0 : i32, i32
  }
  func.func @transform_3(%arg0: i32) -> (i32, i32, i32) {
    %c0_i32 = arith.constant 0 : i32
    %c0_i32_0 = arith.constant 0 : i32
    %c0_i32_1 = arith.constant 0 : i32
    %c0_i32_2 = arith.constant 0 : i32
    return %c0_i32, %c0_i32_0, %c0_i32_1 : i32, i32, i32
  }
  func.func @transform_4(%arg0: i32) -> (i32, i32) {
    %c0_i32 = arith.constant 0 : i32
    %c0_i32_0 = arith.constant 0 : i32
    %c0_i32_1 = arith.constant 0 : i32
    return %c0_i32, %c0_i32_0 : i32, i32
  }
  func.func @transform_5(%arg0: i32) -> (i32, i32) {
    %c0_i32 = arith.constant 0 : i32
    %c0_i32_0 = arith.constant 0 : i32
    %c0_i32_1 = arith.constant 0 : i32
    return %c0_i32, %c0_i32_0 : i32, i32
  }
  func.func @transform_6(%arg0: i32) -> (i32, i32) {
    %c0_i32 = arith.constant 0 : i32
    %c0_i32_0 = arith.constant 0 : i32
    %c0_i32_1 = arith.constant 0 : i32
    return %c0_i32, %c0_i32_0 : i32, i32
  }
  func.func @transform_7(%arg0: i32) -> (i32, i32, i32, i32) {
    %c0_i32 = arith.constant 0 : i32
    %c0_i32_0 = arith.constant 0 : i32
    %c0_i32_1 = arith.constant 0 : i32
    %c0_i32_2 = arith.constant 0 : i32
    return %arg0, %c0_i32, %c0_i32_0, %c0_i32_1 : i32, i32, i32, i32
  }
}

</mosaic_0001>

<bundles_post_ra>
// kernel: resblock_discriminator.1
= control target key start
LH: loop header
LB: loop body
LE: loop exit
PB: predicated region body
PF: predicated region fallthrough
CT: control target
= control target key end

     0   :  { %s10144_s24 = smov 0   ;;  %s12596_s0 = inlined_call_operand.vmem [shape: bf16[2,256,4], index: 0, kind: input, shape index: {}]   ;;  %s12597_s1 = inlined_call_operand.vmem [shape: bf16[9,4,128], index: 1, kind: input, shape index: {}]   ;;  %s12598_s2 = inlined_call_operand.vmem [shape: f32[1,128], index: 2, kind: input, shape index: {}]   ;;  %s12599_s3 = inlined_call_operand.vmem [shape: bf16[9,128,128], index: 3, kind: input, shape index: {}]   ;;  %s12600_s4 = inlined_call_operand.vmem [shape: f32[1,128], index: 4, kind: input, shape index: {}]   ;;  %s12601_s5 = inlined_call_operand.vmem [shape: bf16[4,128], index: 5, kind: input, shape index: {}]   ;;  %s12602_s6 = inlined_call_operand.vmem [shape: f32[1,128], index: 6, kind: input, shape index: {}]   ;;  %s12603_s7 = inlined_call_operand.vmem [shape: bf16[2,16,16,128], index: 7, kind: output, shape index: {}]  }
   0x1 LB: > { %s7359_s25 = sadd.s32 4294967295, %s10100_s24   ;;  %p7363_p0 = scmp.ge.s32.totalorder %s10100_s24, 1  ;;  %s10100_s24 = sphi %s10144_s24, %s17_s24  }
   0x2   : > { %p237_p1 = scmp.lt.s32.totalorder %s10100_s24, 3 }
   0x4   : > { %p238_p2 = pnand %p7363_p0, %p237_p1 }
   0x6   : > { %241 = sbr.rel (%p238_p2) target bundleno = 1611 (0x64b), region = 48 }
   0xd   : > { %v779_v0 = vld [vmem:[%s12597_s1] sm:$0x3]  ;;  %vm12645_vm0 = vcmask 1041408   ;;  %v7384_v1 = vld [vmem:[%s12597_s1 + $0x2] sm:$0x3]  ;;  %v312_v2 = vlaneseq  ;;  %v12605_v4 = vmov 0.0|0.0  }
   0xe   : > { %9954 = vmatprep.subr.msk.bf16.mxu0 %vm12645_vm0, %v779_v0  ;;  %v831_v3 = vsel %vm12645_vm0, %v779_v0, 0  ;;  %8574 = vmatprep.mubr.bf16.mxu0 %v12605_v4  ;;  %p269_p3 = scmp.lt.s32.totalorder %s7359_s25, 1  ;;  %v1195_v9 = vsel %vm12645_vm0, %v7384_v1, 0  ;;  %vm12672_vm2 = vcmask 31744   ;;  %v12910_v34 = vmov 0 }
   0xf   : > { %8573 = vmatpush3.bf16.msra.mxu0 %v831_v3  ;;  %v10161_v5 = vshrl.u32 %v312_v2, 7  ;;  %v12913_v39 = vmov 0  ;;  %v10247_v52 = vld [vmem:[%s12597_s1 + $0x4] sm:$0x3]  ;;  %v12919_v55 = vmov 0  ;;  %v12924_v3 = vmov 0 }
  0x10   : > { %9955 = vmatprep.subr.msk.bf16.mxu0 %vm12645_vm0, %v7384_v1  ;;  %s13643_s25 = smov (!%p269_p3, %s7359_s25), 1 }
  0x11   : > { %12907 = vst [vmem:[#allocation2_spill] sm:$0xff] %v10161_v5  ;;  %v315_v6 = vadd.s32 16, %v10161_v5  ;;  %s8057_s30 = sshll.u32 %s13643_s25, 7  ;;  %v317_v7 = vadd.s32 32, %v10161_v5  ;;  %v319_v8 = vadd.s32 48, %v10161_v5  ;;  %vm12688_vm1 = vcmp.lt.s32.totalorder %v10161_v5, 1 }
  0x12   : > { %s10175_s10 = scalar_lea.vmem %s12596_s0, %s8057_s30  ;;  %v321_v10 = vadd.s32 64, %v10161_v5  ;;  %v10181_v11 = vadd.s32 80, %v10161_v5  ;;  %v10187_v15 = vadd.s32 96, %v10161_v5  ;;  %v10190_v16 = vadd.s32 112, %v10161_v5  ;;  %s12547_s27 = scalar_lea.vmem %s12603_s7, %s8057_s30 }
  0x13   : > { %v280_v12 = vld [vmem:[%s10175_s10] sm:$0xff]   ;;  %v311_v13 = vld [vmem:[%s10175_s10 + $0x7c] sm:$0xf]  ;;  %v282_v14 = vld [vmem:[%s10175_s10 + $0x8] sm:$0xff]   ;;  %v347_v17 = vand.u32 15, %v315_v6  ;;  %v349_v22 = vand.u32 15, %v317_v7 }
  0x14   : > { %v505_v18 = vunpack.c.l.bf16 %v280_v12  ;;  %v506_v19 = vunpack.c.h.bf16 %v280_v12  ;;  %v536_v20 = vunpack.c.l.bf16 %v311_v13  ;;  %v284_v21 = vld [vmem:[%s10175_s10 + $0x10] sm:$0xff]   ;;  %v507_v23 = vunpack.c.l.bf16 %v282_v14  ;;  %v286_v38 = vld [vmem:[%s10175_s10 + $0x18] sm:$0xff]   ;;  %v288_v51 = vld [vmem:[%s10175_s10 + $0x20] sm:$0xff]  }
  0x15   : > { %v508_v24 = vunpack.c.h.bf16 %v282_v14  ;;  %v351_v25 = vand.u32 15, %v319_v8  ;;  %v509_v29 = vunpack.c.l.bf16 %v284_v21  ;;  %v510_v32 = vunpack.c.h.bf16 %v284_v21  ;;  %v290_v0 = vld [vmem:[%s10175_s10 + $0x28] sm:$0xff]  }
  0x16   : > { %v10193_v26 = vmax.f32 %v505_v18, 0.0  ;;  %v10195_v27 = vmax.f32 %v506_v19, 0.0  ;;  %v10197_v28 = vmax.f32 %v536_v20, 0.0  ;;  %v10199_v30 = vmax.f32 %v507_v23, 0.0  ;;  %v292_v20 = vld [vmem:[%s10175_s10 + $0x30] sm:$0xff]  }
  0x17   : > { %v10201_v31 = vmax.f32 %v508_v24, 0.0  ;;  %v353_v33 = vand.u32 15, %v321_v10  ;;  %vm10203_vm3 = vcmp.gt.s32.totalorder %v347_v17, 0  ;;  %vm10211_vm4 = vcmp.gt.s32.totalorder %v349_v22, 0 }
  0x18   : > { %12908 = vst [vmem:[#allocation3_spill] sm:$0xff] %v10193_v26  ;;  %12909 = vst [vmem:[#allocation4_spill] sm:$0xff] %v10197_v28  ;;  %v12911_v34 = vsel %vm10203_vm3, 4294967295, %v12910_v34  ;;  %v570_v35 = vrot.slane %v10193_v26, 7  ;;  %v571_v36 = vrot.slane %v10195_v27, 7  ;;  %v12604_v37 = vrot.slane %v10197_v28, 7 }
  0x19   : > { %12912 = vst [vmem:[#allocation5_spill] sm:$0xff] %v12911_v34  ;;  %v12914_v39 = vsel %vm10211_vm4, 4294967295, %v12913_v39  ;;  %v572_v40 = vrot.slane %v10199_v30, 7  ;;  %v573_v41 = vrot.slane %v10201_v31, 7  ;;  %v355_v42 = vand.u32 15, %v10181_v11 }
  0x1a   : > { %12915 = vst [vmem:[#allocation6_spill] sm:$0xff] %v12914_v39  ;;  %v10220_v43 = vsel %vm12688_vm1, %v570_v35, %v571_v36  ;;  %v10226_v44 = vsel %vm12688_vm1, %v12604_v37, %v570_v35  ;;  %v10228_v45 = vmax.f32 %v509_v29, 0.0  ;;  %v10230_v46 = vmax.f32 %v510_v32, 0.0 }
  0x1b   : > { %12916 = vst [vmem:[#allocation7_spill] sm:$0xff] %v10220_v43  ;;  %v733_v47 = vsel %vm10203_vm3, %v10226_v44, 0.0  ;;  %v10237_v48 = vsel %vm12688_vm1, %v572_v40, %v573_v41  ;;  %v10241_v49 = vsel %vm12688_vm1, %v571_v36, %v572_v40  ;;  %v511_v50 = vunpack.c.l.bf16 %v286_v38 }
  0x1c   : > { %12917 = vst [vmem:[#allocation8_spill] sm:$0xff] %v10237_v48  ;;  %12918 = vst [vmem:[#allocation9_spill] sm:$0xff] %v10241_v49  ;;  %v764_v53 = vpack.c.bf16 %v10220_v43, %v733_v47  ;;  %v735_v54 = vsel %vm10211_vm4, %v10241_v49, 0.0  ;;  %vm10253_vm5 = vcmp.gt.s32.totalorder %v351_v25, 0  ;;  %v574_v56 = vrot.slane %v10228_v45, 7 }
  0x1d   : > { %v12920_v55 = vsel %vm10253_vm5, 4294967295, %v12919_v55  ;;  %v765_v57 = vpack.c.bf16 %v10237_v48, %v735_v54  ;;  %v575_v58 = vrot.slane %v10230_v46, 7  ;;  %v512_v59 = vunpack.c.h.bf16 %v286_v38  ;;  %v296_v54 = vld [vmem:[%s10175_s10 + $0x40] sm:$0xff]  }
  0x1e   : > { %12921 = vst [vmem:[#allocation10_spill] sm:$0xff] %v12920_v55  ;;  %v10261_v60 = vadd.s32 128, %v10161_v5  ;;  %8575 = vmatmul.mubr.msk.bf16.vlgmr.msra.gmra.mrb[0].mxu0 %vm12672_vm2, %v764_v53  ;;  %v10266_v61 = vsel %vm12688_vm1, %v573_v41, %v574_v56  ;;  %v10268_v62 = vmax.f32 %v511_v50, 0.0  ;;  %v513_v63 = vunpack.c.l.bf16 %v288_v51 }
  0x1f   : > { %12922 = vst [vmem:[#allocation11_spill] sm:$0xff] %v10266_v61  ;;  %8607 = vmatpush3.bf16.msra.mxu0 %v1195_v9  ;;  %8578 = vmatprep.mubr.msk.bf16.mxu0 %vm12672_vm2, %v765_v57  ;;  %v10274_v1 = vsel %vm12688_vm1, %v574_v56, %v575_v58  ;;  %v737_v2 = vsel %vm10253_vm5, %v10266_v61, 0.0  ;;  %vm10279_vm6 = vcmp.gt.s32.totalorder %v353_v33, 0  ;;  %v10283_v6 = vmax.f32 %v512_v59, 0.0 }
  0x20   : > { %12923 = vst [vmem:[#allocation12_spill] sm:$0xff] %v10274_v1  ;;  %v12925_v3 = vsel %vm10279_vm6, 4294967295, %v12924_v3  ;;  %v576_v7 = vrot.slane %v10268_v62, 7  ;;  %vm10286_vm7 = vcmp.gt.s32.totalorder %v355_v42, 0  ;;  %v12927_v8 = vmov 0  ;;  %9956 = vmatprep.subr.msk.bf16.mxu0 %vm12645_vm0, %v10247_v52 }
  0x21   : > { %12926 = vst [vmem:[#allocation13_spill] sm:$0xff] %v12925_v3  ;;  %v12928_v8 = vsel %vm10286_vm7, 4294967295, %v12927_v8  ;;  %v514_v9 = vunpack.c.h.bf16 %v288_v51  ;;  %v577_v10 = vrot.slane %v10283_v6, 7  ;;  %v10293_v11 = vmax.f32 %v513_v63, 0.0 }
  0x22   : > { %12929 = vst [vmem:[#allocation14_spill] sm:$0xff] %v12928_v8  ;;  %v357_v12 = vand.u32 15, %v10187_v15  ;;  %v515_v13 = vunpack.c.l.bf16 %v290_v0  ;;  %v766_v14 = vpack.c.bf16 %v10274_v1, %v737_v2  ;;  %v10299_v17 = vsel %vm12688_vm1, %v575_v58, %v576_v7 }
  0x23   : > { %12930 = vst [vmem:[#allocation15_spill] sm:$0xff] %v10299_v17  ;;  %v10301_v18 = vmax.f32 %v514_v9, 0.0  ;;  %v516_v19 = vunpack.c.h.bf16 %v290_v0  ;;  %v10306_v21 = vsel %vm12688_vm1, %v576_v7, %v577_v10  ;;  %v739_v15 = vsel %vm10279_vm6, %v10299_v17, 0.0  ;;  %v298_v7 = vld [vmem:[%s10175_s10 + $0x48] sm:$0xff]  }
  0x24   : > { %12931 = vst [vmem:[#allocation16_spill] sm:$0xff] %v10306_v21  ;;  %v578_v22 = vrot.slane %v10293_v11, 7  ;;  %v359_v23 = vand.u32 15, %v10190_v16  ;;  %v767_v24 = vpack.c.bf16 %v10306_v21, %v739_v15  ;;  %v10315_v29 = vmax.f32 %v515_v13, 0.0  ;;  %v294_v16 = vld [vmem:[%s10175_s10 + $0x38] sm:$0xff]  }
  0x25   : > { %v579_v25 = vrot.slane %v10301_v18, 7  ;;  %v10317_v32 = vmax.f32 %v516_v19, 0.0  ;;  %vm10323_vm8 = vcmp.gt.s32.totalorder %v357_v12, 0  ;;  %v12933_v35 = vmov 0 }
  0x26   : > { %v10321_v33 = vsel %vm12688_vm1, %v577_v10, %v578_v22  ;;  %v12934_v35 = vsel %vm10323_vm8, 4294967295, %v12933_v35  ;;  %v517_v36 = vunpack.c.l.bf16 %v292_v20  ;;  %v518_v38 = vunpack.c.h.bf16 %v292_v20  ;;  %8579 = vmatmul.mubr.msk.bf16.gmra.mrb[4].mxu0 %vm12672_vm2, %v766_v14 }
  0x27   : > { %12932 = vst [vmem:[#allocation17_spill] sm:$0xff] %v10321_v33  ;;  %12935 = vst [vmem:[#allocation18_spill] sm:$0xff] %v12934_v35  ;;  %v10331_v40 = vsel %vm12688_vm1, %v578_v22, %v579_v25  ;;  %v741_v41 = vsel %vm10286_vm7, %v10321_v33, 0.0  ;;  %v580_v42 = vrot.slane %v10315_v29, 7  ;;  %v581_v47 = vrot.slane %v10317_v32, 7  ;;  %8582 = vmatprep.mubr.msk.bf16.mxu0 %vm12672_vm2, %v767_v24 }
  0x28   : > { %12936 = vst [vmem:[#allocation19_spill] sm:$0xff] %v10331_v40  ;;  %v10339_v50 = vmax.f32 %v517_v36, 0.0  ;;  %v10341_v51 = vmax.f32 %v518_v38, 0.0  ;;  %v361_v53 = vand.u32 15, %v10261_v60  ;;  %v519_v58 = vunpack.c.l.bf16 %v294_v16 }
  0x29   : > { %v10347_v56 = vsel %vm12688_vm1, %v580_v42, %v581_v47  ;;  %v10351_v57 = vsel %vm12688_vm1, %v579_v25, %v580_v42  ;;  %v520_v59 = vunpack.c.h.bf16 %v294_v16  ;;  %v768_v63 = vpack.c.bf16 %v10331_v40, %v741_v41 }
  0x2a   : > { %12937 = vst [vmem:[#allocation20_spill] sm:$0xff] %v10347_v56  ;;  %12938 = vst [vmem:[#allocation21_spill] sm:$0xff] %v10351_v57  ;;  %v743_v0 = vsel %vm10323_vm8, %v10351_v57, 0.0  ;;  %vm10357_vm9 = vcmp.gt.s32.totalorder %v359_v23, 0  ;;  %v12939_v2 = vmov 0  ;;  %v582_v60 = vrot.slane %v10339_v50, 7 }
  0x2b   : > { %v12940_v2 = vsel %vm10357_vm9, 4294967295, %v12939_v2  ;;  %v583_v9 = vrot.slane %v10341_v51, 7  ;;  %v10364_v10 = vmax.f32 %v519_v58, 0.0  ;;  %v10366_v12 = vmax.f32 %v520_v59, 0.0 }
  0x2c   : > { %12941 = vst [vmem:[#allocation22_spill] sm:$0xff] %v12940_v2  ;;  %v331_v13 = vadd.s32 144, %v10161_v5  ;;  %v769_v14 = vpack.c.bf16 %v10347_v56, %v743_v0  ;;  %v10372_v19 = vsel %vm12688_vm1, %v581_v47, %v582_v60  ;;  %v521_v20 = vunpack.c.l.bf16 %v296_v54 }
  0x2d   : > { %12942 = vst [vmem:[#allocation23_spill] sm:$0xff] %v10372_v19  ;;  %v522_v15 = vunpack.c.h.bf16 %v296_v54  ;;  %vm10374_vm10 = vcmp.gt.s32.totalorder %v361_v53, 0  ;;  %v12943_v22 = vmov 0  ;;  %v584_v23 = vrot.slane %v10364_v10, 7  ;;  %v300_v54 = vld [vmem:[%s10175_s10 + $0x50] sm:$0xff]  }
  0x2e   : > { %v12944_v22 = vsel %vm10374_vm10, 4294967295, %v12943_v22  ;;  %v585_v24 = vrot.slane %v10366_v12, 7  ;;  %v363_v25 = vand.u32 15, %v331_v13  ;;  %v10380_v36 = vmax.f32 %v521_v20, 0.0  ;;  %8583 = vmatmul.mubr.msk.bf16.gmra.mrb[8].mxu0 %vm12672_vm2, %v768_v63 }
  0x2f   : > { %12945 = vst [vmem:[#allocation24_spill] sm:$0xff] %v12944_v22  ;;  %v10382_v38 = vmax.f32 %v522_v15, 0.0  ;;  %v333_v16 = vadd.s32 160, %v10161_v5  ;;  %v10388_v41 = vsel %vm12688_vm1, %v582_v60, %v583_v9  ;;  %v745_v42 = vsel %vm10357_vm9, %v10372_v19, 0.0  ;;  %8586 = vmatprep.mubr.msk.bf16.mxu0 %vm12672_vm2, %v769_v14  ;;  %v302_v60 = vld [vmem:[%s10175_s10 + $0x58] sm:$0xff]  }
  0x30   : > { %12946 = vst [vmem:[#allocation25_spill] sm:$0xff] %v10388_v41  ;;  %v10395_v47 = vsel %vm12688_vm1, %v583_v9, %v584_v23  ;;  %v523_v53 = vunpack.c.l.bf16 %v298_v7  ;;  %v10401_v58 = vsel %vm12688_vm1, %v584_v23, %v585_v24  ;;  %v586_v63 = vrot.slane %v10380_v36, 7 }
  0x31   : > { %12947 = vst [vmem:[#allocation26_spill] sm:$0xff] %v10395_v47  ;;  %12948 = vst [vmem:[#allocation27_spill] sm:$0xff] %v10401_v58  ;;  %v747_v59 = vsel %vm10374_vm10, %v10395_v47, 0.0  ;;  %v587_v0 = vrot.slane %v10382_v38, 7  ;;  %v365_v13 = vand.u32 15, %v333_v16  ;;  %v524_v9 = vunpack.c.h.bf16 %v298_v7 }
  0x32   : > { %v10409_v20 = vmax.f32 %v523_v53, 0.0  ;;  %v770_v15 = vpack.c.bf16 %v10388_v41, %v745_v42  ;;  %vm10412_vm11 = vcmp.gt.s32.totalorder %v363_v25, 0  ;;  %v12949_v14 = vmov 0 }
  0x33   : > { %v12950_v14 = vsel %vm10412_vm11, 4294967295, %v12949_v14  ;;  %v335_v23 = vadd.s32 176, %v10161_v5  ;;  %v525_v37 = vunpack.c.l.bf16 %v300_v54  ;;  %v771_v4 = vpack.c.bf16 %v10401_v58, %v747_v59  ;;  %v304_v58 = vld [vmem:[%s10175_s10 + $0x60] sm:$0xff]  }
  0x34   : > { %12951 = vst [vmem:[#allocation28_spill] sm:$0xff] %v12950_v14  ;;  %v10420_v28 = vsel %vm12688_vm1, %v585_v24, %v586_v63  ;;  %v10422_v16 = vmax.f32 %v524_v9, 0.0  ;;  %v588_v7 = vrot.slane %v10409_v20, 7  ;;  %v10427_v42 = vsel %vm12688_vm1, %v586_v63, %v587_v0 }
  0x35   : > { %12952 = vst [vmem:[#allocation29_spill] sm:$0xff] %v10420_v28  ;;  %12953 = vst [vmem:[#allocation30_spill] sm:$0xff] %v10427_v42  ;;  %v526_v25 = vunpack.c.h.bf16 %v300_v54  ;;  %v10429_v53 = vmax.f32 %v525_v37, 0.0  ;;  %v337_v22 = vadd.s32 192, %v10161_v5  ;;  %vm10432_vm12 = vcmp.gt.s32.totalorder %v365_v13, 0 }
  0x36   : > { %v12954_v2 = vmov 0  ;;  %v589_v24 = vrot.slane %v10422_v16, 7  ;;  %v10439_v59 = vsel %vm12688_vm1, %v587_v0, %v588_v7  ;;  %v527_v9 = vunpack.c.l.bf16 %v302_v60  ;;  %8587 = vmatmul.mubr.msk.bf16.gmra.mrb[12].mxu0 %vm12672_vm2, %v770_v15 }
  0x37   : > { %v12955_v2 = vsel %vm10432_vm12, 4294967295, %v12954_v2  ;;  %12957 = vst [vmem:[#allocation32_spill] sm:$0xff] %v10439_v59  ;;  %v749_v37 = vsel %vm10412_vm11, %v10420_v28, 0.0  ;;  %v367_v54 = vand.u32 15, %v335_v23  ;;  %v10445_v63 = vmax.f32 %v526_v25, 0.0  ;;  %8590 = vmatprep.mubr.msk.bf16.mxu0 %vm12672_vm2, %v771_v4 }
  0x38   : > { %12956 = vst [vmem:[#allocation31_spill] sm:$0xff] %v12955_v2  ;;  %v590_v13 = vrot.slane %v10429_v53, 7  ;;  %v369_v47 = vand.u32 15, %v337_v22  ;;  %v528_v41 = vunpack.c.h.bf16 %v302_v60  ;;  %v10449_v56 = vmax.f32 %v527_v9, 0.0  ;;  %v306_v60 = vld [vmem:[%s10175_s10 + $0x68] sm:$0xff]  }
  0x39   : > { %v10454_v0 = vsel %vm12688_vm1, %v588_v7, %v589_v24  ;;  %v751_v23 = vsel %vm10432_vm12, %v10439_v59, 0.0  ;;  %v339_v25 = vadd.s32 208, %v10161_v5  ;;  %v772_v14 = vpack.c.bf16 %v10427_v42, %v749_v37 }
  0x3a   : > { %12958 = vst [vmem:[#allocation33_spill] sm:$0xff] %v10454_v0  ;;  %v10461_v15 = vmax.f32 %v528_v41, 0.0  ;;  %v592_v22 = vrot.slane %v10449_v56, 7  ;;  %v591_v4 = vrot.slane %v10445_v63, 7  ;;  %v529_v9 = vunpack.c.l.bf16 %v304_v58 }
  0x3b   : > { %v530_v28 = vunpack.c.h.bf16 %v304_v58  ;;  %v341_v7 = vadd.s32 224, %v10161_v5  ;;  %v773_v35 = vpack.c.bf16 %v10454_v0, %v751_v23  ;;  %vm10468_vm13 = vcmp.gt.s32.totalorder %v367_v54, 0  ;;  %v308_v54 = vld [vmem:[%s10175_s10 + $0x70] sm:$0xff]  }
  0x3c   : > { %v12959_v2 = vmov 0  ;;  %v10474_v37 = vsel %vm12688_vm1, %v589_v24, %v590_v13  ;;  %vm10476_vm14 = vcmp.gt.s32.totalorder %v369_v47, 0  ;;  %v12963_v41 = vmov 0 }
  0x3d   : > { %v12960_v2 = vsel %vm10468_vm13, 4294967295, %v12959_v2  ;;  %12962 = vst [vmem:[#allocation35_spill] sm:$0xff] %v10474_v37  ;;  %v12964_v41 = vsel %vm10476_vm14, 4294967295, %v12963_v41  ;;  %v593_v59 = vrot.slane %v10461_v15, 7  ;;  %v10483_v58 = vsel %vm12688_vm1, %v591_v4, %v592_v22 }
  0x3e   : > { %12961 = vst [vmem:[#allocation34_spill] sm:$0xff] %v12960_v2  ;;  %12965 = vst [vmem:[#allocation36_spill] sm:$0xff] %v12964_v41  ;;  %v371_v42 = vand.u32 15, %v339_v25  ;;  %v10485_v23 = vmax.f32 %v529_v9, 0.0  ;;  %v10488_v0 = vmax.f32 %v530_v28, 0.0  ;;  %v373_v19 = vand.u32 15, %v341_v7  ;;  %8591 = vmatmul.mubr.msk.bf16.gmra.mrb[16].mxu0 %vm12672_vm2, %v772_v14 }
  0x3f   : > { %12966 = vst [vmem:[#allocation37_spill] sm:$0xff] %v10483_v58  ;;  %v531_v8 = vunpack.c.l.bf16 %v306_v60  ;;  %v532_v24 = vunpack.c.h.bf16 %v306_v60  ;;  %v1392_v57 = vrot.slane %v10199_v30, 1  ;;  %v753_v40 = vsel %vm10468_vm13, %v10474_v37, 0.0  ;;  %8594 = vmatprep.mubr.msk.bf16.mxu0 %vm12672_vm2, %v773_v35 }
  0x40   : > { %v343_v21 = vadd.s32 240, %v10161_v5  ;;  %v10499_v25 = vsel %vm12688_vm1, %v590_v13, %v591_v4  ;;  %v755_v28 = vsel %vm10476_vm14, %v10483_v58, 0.0  ;;  %v10511_v7 = vsel %vm12688_vm1, %v592_v22, %v593_v59 }
  0x41   : > { %12967 = vst [vmem:[#allocation38_spill] sm:$0xff] %v10499_v25  ;;  %v10504_v60 = vmax.f32 %v531_v8, 0.0  ;;  %v10506_v9 = vmax.f32 %v532_v24, 0.0  ;;  %12968 = vst [vmem:[#allocation39_spill] sm:$0xff] %v10511_v7  ;;  %v533_v47 = vunpack.c.l.bf16 %v308_v54  ;;  %v534_v14 = vunpack.c.h.bf16 %v308_v54 }
  0x42   : > { %v10515_v13 = vpack.c.bf16 %v10195_v27, %v10193_v26  ;;  %vm10517_vm15 = vcmp.gt.s32.totalorder %v371_v42, 0  ;;  %v12969_v4 = vmov 0  ;;  %v594_v8 = vrot.slane %v10485_v23, 7 }
  0x43   : > { %v12970_v4 = vsel %vm10517_vm15, 4294967295, %v12969_v4  ;;  %v595_v24 = vrot.slane %v10488_v0, 7  ;;  %vm10523_vm0 = vcmp.gt.s32.totalorder %v373_v19, 0  ;;  %v12972_v35 = vmov 0 }
  0x44   : > { %12971 = vst [vmem:[#allocation40_spill] sm:$0xff] %v12970_v4  ;;  %v12973_v35 = vsel %vm10523_vm0, 4294967295, %v12972_v35  ;;  %v596_v22 = vrot.slane %v10504_v60, 7  ;;  %v375_v41 = vand.u32 15, %v343_v21  ;;  %v10530_v54 = vpack.c.bf16 %v10201_v31, %v10199_v30 }
  0x45   : > { %12974 = vst [vmem:[#allocation41_spill] sm:$0xff] %v12973_v35  ;;  %v774_v42 = vpack.c.bf16 %v10499_v25, %v753_v40  ;;  %v775_v2 = vpack.c.bf16 %v10511_v7, %v755_v28  ;;  %v10536_v58 = vpack.c.bf16 %v10230_v46, %v10228_v45  ;;  %v10540_v19 = vpack.c.bf16 %v10283_v6, %v10268_v62 }
  0x46   : > { %v597_v37 = vrot.slane %v10506_v9, 7  ;;  %v10543_v3 = vmax.f32 %v533_v47, 0.0  ;;  %v10545_v21 = vmax.f32 %v534_v14, 0.0  ;;  %v10549_v30 = vpack.c.bf16 %v10301_v18, %v10293_v11 }
  0x47   : > { %v10553_v40 = vsel %vm12688_vm1, %v593_v59, %v594_v8  ;;  %v10557_v28 = vpack.c.bf16 %v10317_v32, %v10315_v29  ;;  %v10561_v7 = vpack.c.bf16 %v10341_v51, %v10339_v50  ;;  %v10565_v47 = vpack.c.bf16 %v10366_v12, %v10364_v10  ;;  %8595 = vmatmul.mubr.msk.bf16.gmra.mrb[20].mxu0 %vm12672_vm2, %v774_v42 }
  0x48   : > { %12975 = vst [vmem:[#allocation42_spill] sm:$0xff] %v10553_v40  ;;  %v10569_v14 = vsel %vm12688_vm1, %v595_v24, %v596_v22  ;;  %v10573_v59 = vpack.c.bf16 %v10382_v38, %v10380_v36  ;;  %v10577_v25 = vpack.c.bf16 %v10422_v16, %v10409_v20  ;;  %v10582_v33 = vsel %vm12688_vm1, %v594_v8, %v595_v24 }
  0x49   : > { %12976 = vst [vmem:[#allocation43_spill] sm:$0xff] %v10569_v14  ;;  %v10586_v55 = vpack.c.bf16 %v10445_v63, %v10429_v53  ;;  %v10590_v17 = vpack.c.bf16 %v10461_v15, %v10449_v56  ;;  %v10594_v1 = vpack.c.bf16 %v10488_v0, %v10485_v23  ;;  %8598 = vmatprep.mubr.msk.bf16.mxu0 %vm12672_vm2, %v775_v2  ;;  %v757_v42 = vsel %vm10517_vm15, %v10553_v40, 0.0 }
  0x4a   : > { %v10602_v8 = vsel %vm12688_vm1, %v596_v22, %v597_v37  ;;  %v10606_v24 = vpack.c.bf16 %v10506_v9, %v10504_v60  ;;  %v10610_v48 = vpack.c.bf16 %v10545_v21, %v10543_v3  ;;  %v759_v2 = vsel %vm10523_vm0, %v10569_v14, 0.0 }
  0x4b   : > { %12977 = vst [vmem:[#allocation44_spill] sm:$0xff] %v10594_v1  ;;  %v598_v39 = vrot.slane %v10543_v3, 7  ;;  %vm12701_vm2 = vcmp.lt.s32.totalorder %v10161_v5, 7  ;;  %v1393_v4 = vrot.slane %v10201_v31, 1  ;;  %v12980_v22 = vrot.slane %v10195_v27, 1 }
  0x4c   : > { %12978 = vst [vmem:[#allocation45_spill] sm:$0xff] %v10606_v24  ;;  %12979 = vst [vmem:[#allocation46_spill] sm:$0xff] %v10610_v48  ;;  %v1394_v61 = vrot.slane %v10228_v45, 1  ;;  %v776_v34 = vpack.c.bf16 %v10582_v33, %v757_v42  ;;  %v1395_v14 = vrot.slane %v10230_v46, 1  ;;  %v777_v49 = vpack.c.bf16 %v10602_v8, %v759_v2 }
  0x4d   : > { %v10622_v40 = vsel %vm12701_vm2, %v12980_v22, %v1392_v57  ;;  %v10628_v35 = vsel %vm12701_vm2, %v1392_v57, %v1393_v4  ;;  %v12702_v31 = vrot.slane %v10545_v21, 7  ;;  %v1396_v22 = vrot.slane %v10268_v62, 1 }
  0x4e   : > { %v10635_v43 = vsel %vm12701_vm2, %v1393_v4, %v1394_v61  ;;  %vm10638_vm1 = vcmp.gt.s32.totalorder %v375_v41, 0  ;;  %v12981_v45 = vmov 0  ;;  %vm12984_vm0 = vcmp.lt.s32.totalorder %v10161_v5, 1 }
  0x4f   : > { %v12982_v45 = vsel %vm10638_vm1, 4294967295, %v12981_v45  ;;  %v10644_v57 = vsel %vm12984_vm0, %v597_v37, %v598_v39  ;;  %v10648_v46 = vsel %vm12701_vm2, %v1395_v14, %v1396_v22  ;;  %vm12985_vm15 = vcmask 31744   ;;  %vm12988_vm13 = vmmov %vm12984_vm0 }
  0x50   : > { %12983 = vst [vmem:[#allocation47_spill] sm:$0xff] %v12982_v45  ;;  %8599 = vmatmul.mubr.msk.bf16.gmra.mrb[24].mxu0 %vm12985_vm15, %v776_v34  ;;  %v10653_v4 = vsel %vm12701_vm2, %v1394_v61, %v1395_v14  ;;  %vm12987_vm14 = vmmov %vm12985_vm15  ;;  %v10660_v62 = vsel %vm12988_vm13, %v598_v39, %v12702_v31  ;;  %v761_v37 = vsel %vm10638_vm1, %v10644_v57, 0.0  ;;  %v1397_v41 = vrot.slane %v10283_v6, 1 }
  0x51   : > { %12986 = vst [vmem:[#allocation48_spill] sm:$0xff] %v10653_v4  ;;  %8602 = vmatprep.mubr.msk.bf16.mxu0 %vm12987_vm14, %v777_v49  ;;  %v1398_v34 = vrot.slane %v10293_v11, 1  ;;  %v1399_v42 = vrot.slane %v10301_v18, 1  ;;  %v1400_v49 = vrot.slane %v10315_v29, 1  ;;  %v778_v14 = vpack.c.bf16 %v10660_v62, %v761_v37  ;;  %vm12992_vm0 = vmmov %vm12987_vm14 }
  0x52   : > { %v10670_v61 = vsel %vm12701_vm2, %v1396_v22, %v1397_v41  ;;  %v1401_v6 = vrot.slane %v10317_v32, 1  ;;  %v1402_v18 = vrot.slane %v10339_v50, 1  ;;  %v1403_v37 = vrot.slane %v10341_v51, 1  ;;  %vm12999_vm14 = vmmov %vm12992_vm0 }
  0x53   : > { %12989 = vst [vmem:[#allocation49_spill] sm:$0xff] %v10670_v61  ;;  %v10676_v39 = vsel %vm12701_vm2, %v1397_v41, %v1398_v34  ;;  %v10680_v2 = vsel %vm12701_vm2, %v1398_v34, %v1399_v42  ;;  %v10685_v11 = vsel %vm12701_vm2, %v1399_v42, %v1400_v49  ;;  %v1404_v32 = vrot.slane %v10364_v10, 1  ;;  %vm13000_vm15 = vmmov %vm12992_vm0 }
  0x54   : > { %12990 = vst [vmem:[#allocation50_spill] sm:$0xff] %v10685_v11  ;;  %v10690_v29 = vsel %vm12701_vm2, %v1400_v49, %v1401_v6  ;;  %v10694_v22 = vsel %vm12701_vm2, %v1401_v6, %v1402_v18  ;;  %v12993_v41 = vmov 0.0|0.0   ;;  %v10702_v34 = vsel %vm12701_vm2, %v1402_v18, %v1403_v37 }
  0x55   : > { %12991 = vst [vmem:[#allocation51_spill] sm:$0xff] %v10690_v29  ;;  %12994 = vst [vmem:[#allocation52_spill] sm:$0xff] %v10702_v34  ;;  %v1405_v50 = vrot.slane %v10366_v12, 1  ;;  %v10707_v42 = vsel %vm12701_vm2, %v1403_v37, %v1404_v32  ;;  %v1406_v49 = vrot.slane %v10380_v36, 1  ;;  %v1407_v10 = vrot.slane %v10382_v38, 1 }
  0x56   : > { %v1408_v6 = vrot.slane %v10409_v20, 1  ;;  %v1409_v18 = vrot.slane %v10422_v16, 1  ;;  %vm12997_vm13 = vcmask 1041408   ;;  %v1410_v38 = vrot.slane %v10429_v53, 1 }
  0x57   : > { %v10712_v51 = vsel %vm12701_vm2, %v1404_v32, %v1405_v50  ;;  %v10722_v12 = vsel %vm12701_vm2, %v1406_v49, %v1407_v10  ;;  %v1650_v36 = vsel %vm12997_vm13, %v10247_v52, 0  ;;  %v7416_v32 = vld [vmem:[%s12597_s1 + $0x6] sm:$0x3]  ;;  %v1411_v16 = vrot.slane %v10445_v63, 1 }
  0x58   : > { %8603 = vmatmul.mubr.msk.bf16.gmra.mrb[28].mxu0 %vm12992_vm0, %v778_v14  ;;  %12995 = vst [vmem:[#allocation53_spill] sm:$0xff] %v10712_v51  ;;  %v10717_v14 = vsel %vm12701_vm2, %v1405_v50, %v1406_v49  ;;  %v10729_v37 = vsel %vm12701_vm2, %v1407_v10, %v1408_v6  ;;  %v10737_v20 = vsel %vm12701_vm2, %v1408_v6, %v1409_v18  ;;  %v1412_v53 = vrot.slane %v10449_v56, 1  ;;  %vm13001_vm0 = vmmov %vm12997_vm13 }
  0x59   : > { %8608 = vmatprep.mubr.bf16.mxu0 %v12993_v41  ;;  %12996 = vst [vmem:[#allocation54_spill] sm:$0xff] %v10717_v14  ;;  %12998 = vst [vmem:[#allocation55_spill] sm:$0xff] %v10737_v20  ;;  %v10743_v52 = vsel %vm12701_vm2, %v1409_v18, %v1410_v38  ;;  %v1413_v50 = vrot.slane %v10461_v15, 1  ;;  %v10753_v49 = vsel %vm12701_vm2, %v1410_v38, %v1411_v16  ;;  %v1414_v10 = vrot.slane %v10485_v23, 1 }
  0x5a   : > { %13002 = vst [vmem:[#allocation56_spill] sm:$0xff] %v10753_v49  ;;  %v10758_v6 = vsel %vm12701_vm2, %v1411_v16, %v1412_v53  ;;  %v1415_v15 = vrot.slane %v10488_v0, 1  ;;  %v1416_v18 = vrot.slane %v10504_v60, 1  ;;  %v1417_v38 = vrot.slane %v10506_v9, 1  ;;  %vm13007_vm13 = vmmov %vm12999_vm14 }
  0x5b   : > { %13003 = vst [vmem:[#allocation57_spill] sm:$0xff] %v10758_v6  ;;  %v10762_v63 = vsel %vm12701_vm2, %v1412_v53, %v1413_v50  ;;  %v10766_v56 = vsel %vm12701_vm2, %v1413_v50, %v1414_v10  ;;  %v1418_v16 = vrot.slane %v10543_v3, 1  ;;  %v12703_v60 = vrot.slane %v10545_v21, 1 }
  0x5c   : > { %13004 = vst [vmem:[#allocation58_spill] sm:$0xff] %v10762_v63  ;;  %13005 = vst [vmem:[#allocation59_spill] sm:$0xff] %v10766_v56  ;;  %v10776_v23 = vsel %vm12701_vm2, %v1415_v15, %v1416_v18  ;;  %v10786_v0 = vsel %vm12701_vm2, %v1416_v18, %v1417_v38  ;;  %v316_v3 = vadd.s32 24, %v10161_v5  ;;  %v318_v50 = vadd.s32 40, %v10161_v5 }
  0x5d   : > { %13006 = vst [vmem:[#allocation60_spill] sm:$0xff] %v10776_v23  ;;  %13009 = vst [vmem:[#allocation61_spill] sm:$0xff] %v10786_v0  ;;  %v10791_v53 = vsel %vm12701_vm2, %v1417_v38, %v1418_v16  ;;  %v10797_v9 = vsel %vm12701_vm2, %v1418_v16, %v12703_v60  ;;  %v12712_v18 = vrot.slane %v10193_v26, 1  ;;  %v13020_v38 = vmov 0 }
  0x5e   : > { %13010 = vst [vmem:[#allocation62_spill] sm:$0xff] %v10797_v9  ;;  %v320_v16 = vadd.s32 56, %v10161_v5  ;;  %v13023_v31 = vmov 0  ;;  %v322_v60 = vadd.s32 72, %v10161_v5 }
  0x60   : > { %8609 = vmatmul.mubr.msk.bf16.vlgmr.msra.gmra.mrb[0].mxu0 %vm12999_vm14, %v10515_v13  ;;  %vm13008_vm14 = vmmov %vm13007_vm13 }
  0x61   : > { %8641 = vmatpush3.bf16.msra.mxu0 %v1650_v36  ;;  %8612 = vmatprep.mubr.msk.bf16.mxu0 %vm13000_vm15, %v10530_v54  ;;  %v10772_v36 = vsel %vm12701_vm2, %v1414_v10, %v1415_v15  ;;  %vm13011_vm15 = vmmov %vm13007_vm13  ;;  %v348_v10 = vand.u32 15, %v316_v3  ;;  %v350_v15 = vand.u32 15, %v318_v50  ;;  %v13027_v3 = vrot.slane %v10195_v27, 1 }
  0x62   : > { %9957 = vmatprep.subr.msk.bf16.mxu0 %vm13001_vm0, %v7416_v32  ;;  %vm13012_vm0 = vmmov %vm13007_vm13 }
  0x63   : > { %vm13015_vm1 = vmmov %vm13012_vm0 }
  0x64   : > { %vm13016_vm12 = vmmov %vm13012_vm0 }
  0x65   : > { %vm13017_vm2 = vmmov %vm13012_vm0 }
  0x68   : > { %8613 = vmatmul.mubr.msk.bf16.gmra.mrb[4].mxu0 %vm13007_vm13, %v10536_v58  ;;  %vm13013_vm13 = vmmov %vm13012_vm0 }
  0x69   : > { %8616 = vmatprep.mubr.msk.bf16.mxu0 %vm13008_vm14, %v10540_v19  ;;  %vm13014_vm14 = vmmov %vm13012_vm0 }
  0x70   : > { %8617 = vmatmul.mubr.msk.bf16.gmra.mrb[8].mxu0 %vm13011_vm15, %v10549_v30  ;;  %vm13018_vm15 = vmmov %vm13012_vm0 }
  0x71   : > { %8620 = vmatprep.mubr.msk.bf16.mxu0 %vm13012_vm0, %v10557_v28 }
  0x78   : > { %8621 = vmatmul.mubr.msk.bf16.gmra.mrb[12].mxu0 %vm13013_vm13, %v10561_v7  ;;  %vm13019_vm13 = vmmov %vm13012_vm0 }
  0x79   : > { %8624 = vmatprep.mubr.msk.bf16.mxu0 %vm13014_vm14, %v10565_v47  ;;  %vm13028_vm14 = vcmp.lt.s32.totalorder %v10161_v5, 7 }
  0x7a   : > { %v10841_v50 = vsel %vm13028_vm14, %v12712_v18, %v13027_v3  ;;  %v324_v3 = vadd.s32 88, %v10161_v5  ;;  %v13033_v18 = vmov 0 }
  0x80   : > { %8625 = vmatmul.mubr.msk.bf16.gmra.mrb[16].mxu0 %vm13015_vm1, %v10573_v59  ;;  %vm10822_vm1 = vcmp.lt.s32.totalorder %v348_v10, 15 }
  0x81   : > { %8628 = vmatprep.mubr.msk.bf16.mxu0 %vm13016_vm12, %v10577_v25  ;;  %v13021_v38 = vsel %vm10822_vm1, 4294967295, %v13020_v38  ;;  %vm13026_vm12 = vmmov %vm13012_vm0  ;;  %v1554_v10 = vsel %vm10822_vm1, %v10622_v40, 0.0 }
  0x82   : > { %13022 = vst [vmem:[#allocation63_spill] sm:$0xff] %v13021_v38  ;;  %vm13036_vm14 = vmmov %vm13026_vm12 }
  0x88   : > { %8629 = vmatmul.mubr.msk.bf16.gmra.mrb[20].mxu0 %vm13017_vm2, %v10586_v55  ;;  %vm10827_vm2 = vcmp.lt.s32.totalorder %v350_v15, 15 }
  0x89   : > { %8632 = vmatprep.mubr.msk.bf16.mxu0 %vm13018_vm15, %v10590_v17  ;;  %v13024_v31 = vsel %vm10827_vm2, 4294967295, %v13023_v31  ;;  %v1556_v15 = vsel %vm10827_vm2, %v10635_v43, 0.0  ;;  %vm13029_vm15 = vcmask 1041408  }
  0x8a   : > { %13025 = vst [vmem:[#allocation64_spill] sm:$0xff] %v13024_v31  ;;  %v1585_v27 = vpack.c.bf16 %v1556_v15, %v10628_v35  ;;  %v2008_v26 = vsel %vm13029_vm15, %v7416_v32, 0  ;;  %v326_v31 = vadd.s32 104, %v10161_v5  ;;  %v356_v32 = vand.u32 15, %v324_v3 }
  0x8b   : > { %v328_v15 = vadd.s32 120, %v10161_v5  ;;  %v330_v3 = vadd.s32 136, %v10161_v5 }
  0x90   : > { %8633 = vmatmul.mubr.msk.bf16.gmra.mrb[24].mxu0 %vm13012_vm0, %v10594_v1  ;;  %v13030_v1 = vmov 0 }
  0x91   : > { %8636 = vmatprep.mubr.msk.bf16.mxu0 %vm13019_vm13, %v10606_v24  ;;  %v352_v24 = vand.u32 15, %v320_v16  ;;  %v358_v16 = vand.u32 15, %v326_v31 }
  0x93   : > { %vm10852_vm0 = vcmp.lt.s32.totalorder %v352_v24, 15 }
  0x94   : > { %v13031_v1 = vsel %vm10852_vm0, 4294967295, %v13030_v1  ;;  %v1558_v24 = vsel %vm10852_vm0, %v10648_v46, 0.0 }
  0x95   : > { %13032 = vst [vmem:[#allocation65_spill] sm:$0xff] %v13031_v1 }
  0x98   : > { %8637 = vmatmul.mubr.msk.bf16.gmra.mrb[28].mxu0 %vm13026_vm12, %v10610_v48  ;;  %v354_v48 = vand.u32 15, %v322_v60  ;;  %v10865_v60 = vld [vmem:[%s12597_s1 + $0x8] sm:$0x3] }
  0x99   : > { %8642 = vmatprep.mubr.bf16.mxu0 %v12993_v41  ;;  %v1584_v41 = vpack.c.bf16 %v1554_v10, %v10841_v50  ;;  %v1586_v10 = vpack.c.bf16 %v1558_v24, %v10653_v4 }
  0x9a   : > { %vm10857_vm13 = vcmp.lt.s32.totalorder %v354_v48, 15 }
  0x9b   : > { %v13034_v18 = vsel %vm10857_vm13, 4294967295, %v13033_v18  ;;  %v1560_v48 = vsel %vm10857_vm13, %v10676_v39, 0.0  ;;  %vm13043_vm13 = vcmask 31744  }
  0x9c   : > { %13035 = vst [vmem:[#allocation66_spill] sm:$0xff] %v13034_v18  ;;  %v13045_v18 = vmov 0 }
  0xa0   : > { %8643 = vmatmul.mubr.msk.bf16.vlgmr.msra.gmra.mrb[0].mxu0 %vm13026_vm12, %v1584_v41  ;;  %v1587_v41 = vpack.c.bf16 %v1560_v48, %v10670_v61  ;;  %vm10879_vm12 = vcmp.lt.s32.totalorder %v356_v32, 15  ;;  %v360_v48 = vand.u32 15, %v328_v15  ;;  %v362_v32 = vand.u32 15, %v330_v3 }
  0xa1   : > { %8675 = vmatpush3.bf16.msra.mxu0 %v2008_v26  ;;  %8646 = vmatprep.mubr.msk.bf16.mxu0 %vm13036_vm14, %v1585_v27  ;;  %v13037_v26 = vmov 0  ;;  %vm10884_vm14 = vcmp.lt.s32.totalorder %v358_v16, 15  ;;  %v13040_v27 = vmov 0  ;;  %v1562_v31 = vsel %vm10879_vm12, %v10685_v11, 0.0 }
  0xa2   : > { %9958 = vmatprep.subr.msk.bf16.mxu0 %vm13029_vm15, %v10865_v60  ;;  %v13038_v26 = vsel %vm10879_vm12, 4294967295, %v13037_v26  ;;  %v13041_v27 = vsel %vm10884_vm14, 4294967295, %v13040_v27  ;;  %vm13044_vm15 = vmmov %vm13043_vm13  ;;  %v1564_v24 = vsel %vm10884_vm14, %v10694_v22, 0.0  ;;  %v1588_v16 = vpack.c.bf16 %v1562_v31, %v10680_v2 }
  0xa3   : > { %13039 = vst [vmem:[#allocation67_spill] sm:$0xff] %v13038_v26  ;;  %13042 = vst [vmem:[#allocation68_spill] sm:$0xff] %v13041_v27  ;;  %v1589_v61 = vpack.c.bf16 %v1564_v24, %v10690_v29  ;;  %vm10899_vm0 = vcmp.lt.s32.totalorder %v360_v48, 15  ;;  %v334_v26 = vadd.s32 168, %v10161_v5  ;;  %v13052_v29 = vmov 0 }
  0xa4   : > { %v13046_v18 = vsel %vm10899_vm0, 4294967295, %v13045_v18  ;;  %vm13051_vm14 = vmmov %vm13044_vm15  ;;  %v1566_v15 = vsel %vm10899_vm0, %v10707_v42, 0.0 }
  0xa5   : > { %13047 = vst [vmem:[#allocation69_spill] sm:$0xff] %v13046_v18  ;;  %v366_v24 = vand.u32 15, %v334_v26  ;;  %v1590_v48 = vpack.c.bf16 %v1566_v15, %v10702_v34 }
  0xa8   : > { %8647 = vmatmul.mubr.msk.bf16.gmra.mrb[4].mxu0 %vm13043_vm13, %v1586_v10  ;;  %v332_v10 = vadd.s32 152, %v10161_v5  ;;  %vm10904_vm13 = vcmp.lt.s32.totalorder %v362_v32, 15 }
  0xa9   : > { %8650 = vmatprep.mubr.msk.bf16.mxu0 %vm13044_vm15, %v1587_v41  ;;  %v13048_v41 = vmov 0  ;;  %v1568_v3 = vsel %vm10904_vm13, %v10717_v14, 0.0 }
  0xaa   : > { %v13049_v41 = vsel %vm10904_vm13, 4294967295, %v13048_v41  ;;  %v364_v31 = vand.u32 15, %v332_v10  ;;  %v1591_v32 = vpack.c.bf16 %v1568_v3, %v10712_v51  ;;  %vm13058_vm13 = vmmov %vm13044_vm15  ;;  %v13059_v51 = vmov 0 }
  0xab   : > { %13050 = vst [vmem:[#allocation70_spill] sm:$0xff] %v13049_v41  ;;  %v338_v41 = vadd.s32 200, %v10161_v5 }
  0xac   : > { %vm10919_vm12 = vcmp.lt.s32.totalorder %v364_v31, 15 }
  0xad   : > { %v13053_v29 = vsel %vm10919_vm12, 4294967295, %v13052_v29  ;;  %v1570_v26 = vsel %vm10919_vm12, %v10729_v37, 0.0  ;;  %v370_v3 = vand.u32 15, %v338_v41 }
  0xae   : > { %13054 = vst [vmem:[#allocation71_spill] sm:$0xff] %v13053_v29  ;;  %v1592_v31 = vpack.c.bf16 %v1570_v26, %v10722_v12  ;;  %v342_v29 = vadd.s32 232, %v10161_v5 }
  0xb0   : > { %8651 = vmatmul.mubr.msk.bf16.gmra.mrb[8].mxu0 %vm13044_vm15, %v1588_v16  ;;  %v13055_v16 = vmov 0 }
  0xb1   : > { %8654 = vmatprep.mubr.msk.bf16.mxu0 %vm13051_vm14, %v1589_v61  ;;  %v336_v61 = vadd.s32 184, %v10161_v5  ;;  %vm10924_vm14 = vcmp.lt.s32.totalorder %v366_v24, 15 }
  0xb2   : > { %v13056_v16 = vsel %vm10924_vm14, 4294967295, %v13055_v16  ;;  %v1572_v10 = vsel %vm10924_vm14, %v10743_v52, 0.0  ;;  %vm13066_vm14 = vmmov %vm13044_vm15 }
  0xb3   : > { %13057 = vst [vmem:[#allocation72_spill] sm:$0xff] %v13056_v16  ;;  %v368_v15 = vand.u32 15, %v336_v61  ;;  %v1593_v24 = vpack.c.bf16 %v1572_v10, %v10737_v20  ;;  %v10950_v16 = vld [vmem:[%s10175_s10 + $0x78] sm:$0xf] }
  0xb4   : > { %13065 = vst [vmem:[#allocation75_spill] sm:$0xff] %v10950_v16  ;;  %v535_v10 = vunpack.c.l.bf16 %v10950_v16 }
  0xb5   : > { %vm10939_vm0 = vcmp.lt.s32.totalorder %v368_v15, 15  ;;  %v374_v15 = vand.u32 15, %v342_v29 }
  0xb6   : > { %v13060_v51 = vsel %vm10939_vm0, 4294967295, %v13059_v51  ;;  %v1574_v41 = vsel %vm10939_vm0, %v10758_v6, 0.0  ;;  %v13070_v6 = vmov 0 }
  0xb7   : > { %13061 = vst [vmem:[#allocation73_spill] sm:$0xff] %v13060_v51  ;;  %v10968_v51 = vmax.f32 %v535_v10, 0.0 }
  0xb8   : > { %8655 = vmatmul.mubr.msk.bf16.gmra.mrb[12].mxu0 %vm13044_vm15, %v1590_v48  ;;  %v340_v48 = vadd.s32 216, %v10161_v5 }
  0xb9   : > { %8658 = vmatprep.mubr.msk.bf16.mxu0 %vm13058_vm13, %v1591_v32  ;;  %vm10944_vm13 = vcmp.lt.s32.totalorder %v370_v3, 15  ;;  %v13062_v32 = vmov 0  ;;  %v1594_v3 = vpack.c.bf16 %v1574_v41, %v10753_v49 }
  0xba   : > { %v13063_v32 = vsel %vm10944_vm13, 4294967295, %v13062_v32  ;;  %v1576_v61 = vsel %vm10944_vm13, %v10766_v56, 0.0  ;;  %v372_v26 = vand.u32 15, %v340_v48  ;;  %vm13073_vm13 = vmmov %vm13044_vm15 }
  0xbb   : > { %13064 = vst [vmem:[#allocation74_spill] sm:$0xff] %v13063_v32  ;;  %v1595_v20 = vpack.c.bf16 %v1576_v61, %v10762_v63  ;;  %v12762_v61 = vrot.slane %v10968_v51, 1 }
  0xbc   : > { %vm10963_vm12 = vcmp.lt.s32.totalorder %v372_v26, 15  ;;  %v345_v26 = vand.u32 15, %v10161_v5 }
  0xbd   : > { %v1578_v29 = vsel %vm10963_vm12, %v10776_v23, 0.0 }
  0xbe   : > { %v1596_v10 = vpack.c.bf16 %v1578_v29, %v10772_v36 }
  0xc0   : > { %8659 = vmatmul.mubr.msk.bf16.gmra.mrb[16].mxu0 %vm13044_vm15, %v1592_v31  ;;  %v13067_v31 = vmov 0 }
  0xc1   : > { %8662 = vmatprep.mubr.msk.bf16.mxu0 %vm13066_vm14, %v1593_v24  ;;  %v13068_v31 = vsel %vm10963_vm12, 4294967295, %v13067_v31  ;;  %v344_v24 = vadd.s32 248, %v10161_v5  ;;  %vm10970_vm14 = vcmp.lt.s32.totalorder %v374_v15, 15  ;;  %vm13083_vm12 = vcmask 31744  }
  0xc2   : > { %13069 = vst [vmem:[#allocation76_spill] sm:$0xff] %v13068_v31  ;;  %v13071_v6 = vsel %vm10970_vm14, 4294967295, %v13070_v6  ;;  %v1580_v48 = vsel %vm10970_vm14, %v10791_v53, 0.0  ;;  %vm10998_vm14 = vcmp.gt.s32.totalorder %v345_v26, 0  ;;  %vm13084_vm0 = vmmov %vm13083_vm12  ;;  %v13087_v26 = vld [vmem:[#allocation9_spill] sm:$0xff] }
  0xc3   : > { %13072 = vst [vmem:[#allocation77_spill] sm:$0xff] %v13071_v6  ;;  %v376_v41 = vand.u32 15, %v344_v24  ;;  %v1597_v15 = vpack.c.bf16 %v1580_v48, %v10786_v0  ;;  %v13080_v24 = vmov 0  ;;  %v1909_v48 = vsel %vm10998_vm14, %v10226_v44, 0.0  ;;  %v13099_v6 = vld [vmem:[#allocation17_spill] sm:$0xff]  ;;  %v13103_v0 = vld [vmem:[#allocation19_spill] sm:$0xff] }
  0xc4   : > { %v13081_v24 = vsel %vm10998_vm14, 4294967295, %v13080_v24 }
  0xc5   : > { %13082 = vst [vmem:[#allocation80_spill] sm:$0xff] %v13081_v24  ;;  %v13093_v24 = vld [vmem:[#allocation12_spill] sm:$0xff] }
  0xc8   : > { %8663 = vmatmul.mubr.msk.bf16.gmra.mrb[20].mxu0 %vm13044_vm15, %v1594_v3  ;;  %vm10986_vm15 = vcmp.lt.s32.totalorder %v376_v41, 15  ;;  %v13074_v3 = vmov 0 }
  0xc9   : > { %8666 = vmatprep.mubr.msk.bf16.mxu0 %vm13073_vm13, %v1595_v20  ;;  %v13075_v3 = vsel %vm10986_vm15, 4294967295, %v13074_v3  ;;  %v13077_v20 = vrot.slane %v10545_v21, 1  ;;  %vm13078_vm13 = vcmp.lt.s32.totalorder %v10161_v5, 7 }
  0xca   : > { %13076 = vst [vmem:[#allocation78_spill] sm:$0xff] %v13075_v3 }
  0xcb   : > { %v10996_v16 = vsel %vm13078_vm13, %v13077_v20, %v12762_v61  ;;  %v13085_v20 = vld [vmem:[#allocation7_spill] sm:$0xff]  ;;  %vm13086_vm13 = vmmov %vm13084_vm0 }
  0xcc   : > { %13079 = vst [vmem:[#allocation79_spill] sm:$0xff] %v10996_v16  ;;  %v1582_v29 = vsel %vm10986_vm15, %v10996_v16, 0.0  ;;  %v1941_v61 = vpack.c.bf16 %v13085_v20, %v1909_v48  ;;  %v13092_v16 = vld [vmem:[#allocation8_spill] sm:$0xff]  ;;  %v7450_v48 = vld [vmem:[%s12597_s1 + $0xa] sm:$0x3] }
  0xcd   : > { %v1598_v41 = vpack.c.bf16 %v1582_v29, %v10797_v9 }
  0xd0   : > { %8667 = vmatmul.mubr.msk.bf16.gmra.mrb[24].mxu0 %vm13083_vm12, %v1596_v10  ;;  %v1911_v10 = vsel %vm10203_vm3, %v13087_v26, 0.0  ;;  %vm13089_vm12 = vmmov %vm13084_vm0  ;;  %v13111_v26 = vld [vmem:[#allocation25_spill] sm:$0xff] }
  0xd1   : > { %8670 = vmatprep.mubr.msk.bf16.mxu0 %vm13084_vm0, %v1597_v15  ;;  %v13090_v15 = vld [vmem:[#allocation11_spill] sm:$0xff]  ;;  %v1942_v31 = vpack.c.bf16 %v13092_v16, %v1911_v10  ;;  %vm13094_vm0 = vcmask 1041408   ;;  %vm13096_vm3 = vmmov %vm13089_vm12  ;;  %v13110_v10 = vld [vmem:[#allocation20_spill] sm:$0xff] }
  0xd2   : > { %v1913_v3 = vsel %vm10211_vm4, %v13090_v15, 0.0  ;;  %v2270_v29 = vsel %vm13094_vm0, %v10865_v60, 0  ;;  %v13102_v60 = vld [vmem:[#allocation16_spill] sm:$0xff] }
  0xd3   : > { %v1943_v44 = vpack.c.bf16 %v13093_v24, %v1913_v3  ;;  %v1917_v3 = vsel %vm10279_vm6, %v13099_v6, 0.0 }
  0xd4   : > { %v1945_v15 = vpack.c.bf16 %v13103_v0, %v1917_v3  ;;  %v13116_v3 = vld [vmem:[#allocation29_spill] sm:$0xff]  ;;  %v13127_v0 = vld [vmem:[#allocation38_spill] sm:$0xff] }
  0xd8   : > { %8671 = vmatmul.mubr.msk.bf16.gmra.mrb[28].mxu0 %vm13086_vm13, %v1598_v41  ;;  %vm13095_vm13 = vmmov %vm13089_vm12  ;;  %v13108_v41 = vld [vmem:[#allocation23_spill] sm:$0xff] }
  0xd9   : > { %8676 = vmatprep.mubr.msk.bf16.mxu0 %vm13089_vm12, %v1941_v61  ;;  %v13097_v61 = vld [vmem:[#allocation15_spill] sm:$0xff]  ;;  %vm13101_vm12 = vmmov %vm13094_vm0  ;;  %v1921_v16 = vsel %vm10323_vm8, %v13108_v41, 0.0 }
  0xda   : > { %v1915_v20 = vsel %vm10253_vm5, %v13097_v61, 0.0  ;;  %vm13104_vm0 = vmmov %vm13096_vm3  ;;  %v1947_v9 = vpack.c.bf16 %v13111_v26, %v1921_v16  ;;  %v13119_v61 = vld [vmem:[#allocation30_spill] sm:$0xff]  ;;  %v13121_v16 = vld [vmem:[#allocation32_spill] sm:$0xff] }
  0xdb   : > { %v1944_v24 = vpack.c.bf16 %v13102_v60, %v1915_v20  ;;  %v13114_v20 = vld [vmem:[#allocation26_spill] sm:$0xff]  ;;  %v13124_v26 = vld [vmem:[#allocation31_spill] sm:$0xff] }
  0xe0   : > { %8677 = vmatmul.mubr.msk.bf16.vlgmr.msra.gmra.mrb[0].mxu0 %vm13095_vm13, %v1942_v31  ;;  %vm13105_vm13 = vmmov %vm13104_vm0  ;;  %v13106_v31 = vld [vmem:[#allocation21_spill] sm:$0xff] }
  0xe1   : > { %8709 = vmatpush3.bf16.msra.mxu0 %v2270_v29  ;;  %8680 = vmatprep.mubr.msk.bf16.mxu0 %vm13096_vm3, %v1943_v44  ;;  %v1919_v29 = vsel %vm10286_vm7, %v13106_v31, 0.0  ;;  %vm13112_vm3 = vmmov %vm13104_vm0  ;;  %v1925_v44 = vsel %vm10374_vm10, %v13116_v3, 0.0  ;;  %v13118_v31 = vld [vmem:[#allocation27_spill] sm:$0xff] }
  0xe2   : > { %9959 = vmatprep.subr.msk.bf16.mxu0 %vm13101_vm12, %v7450_v48  ;;  %v1946_v6 = vpack.c.bf16 %v13110_v10, %v1919_v29  ;;  %vm13113_vm12 = vmmov %vm13104_vm0  ;;  %v1949_v41 = vpack.c.bf16 %v13119_v61, %v1925_v44  ;;  %v13123_v29 = vld [vmem:[#allocation35_spill] sm:$0xff]  ;;  %v13130_v44 = vld [vmem:[#allocation37_spill] sm:$0xff] }
  0xe3   : > { %vm13129_vm10 = vmmov %vm13104_vm0  ;;  %v13134_v61 = vld [vmem:[#allocation36_spill] sm:$0xff] }
  0xe8   : > { %8681 = vmatmul.mubr.msk.bf16.gmra.mrb[4].mxu0 %vm13104_vm0, %v1944_v24 }
  0xe9   : > { %8684 = vmatprep.mubr.msk.bf16.mxu0 %vm13105_vm13, %v1945_v15  ;;  %v1923_v15 = vsel %vm10357_vm9, %v13114_v20, 0.0  ;;  %vm13120_vm13 = vmmov %vm13104_vm0  ;;  %v13126_v20 = vld [vmem:[#allocation33_spill] sm:$0xff] }
  0xea   : > { %v1948_v60 = vpack.c.bf16 %v13118_v31, %v1923_v15  ;;  %v13133_v15 = vld [vmem:[#allocation42_spill] sm:$0xff] }
  0xf0   : > { %8685 = vmatmul.mubr.msk.bf16.gmra.mrb[8].mxu0 %vm13112_vm3, %v1946_v6  ;;  %vm13125_vm3 = vnez %v13124_v26 }
  0xf1   : > { %8688 = vmatprep.mubr.msk.bf16.mxu0 %vm13113_vm12, %v1947_v9  ;;  %v1927_v9 = vsel %vm10412_vm11, %v13121_v16, 0.0  ;;  %v1929_v24 = vsel %vm13125_vm3, %v13123_v29, 0.0  ;;  %vm13128_vm12 = vmmov %vm13104_vm0  ;;  %v13136_v16 = vld [vmem:[#allocation39_spill] sm:$0xff] }
  0xf2   : > { %v1950_v10 = vpack.c.bf16 %v13126_v20, %v1927_v9  ;;  %v1951_v3 = vpack.c.bf16 %v13127_v0, %v1929_v24  ;;  %vm13137_vm3 = vmmov %vm13129_vm10  ;;  %v13139_v24 = vld [vmem:[#allocation43_spill] sm:$0xff]  ;;  %v13142_v9 = vld [vmem:[#allocation41_spill] sm:$0xff]  ;;  %v600_v0 = vrot.slane %v10968_v51, 7 }
  0xf3   : > { %vm13138_vm11 = vmmov %vm13137_vm3 }
  0xf8   : > { %8689 = vmatmul.mubr.msk.bf16.gmra.mrb[12].mxu0 %vm13104_vm0, %v1948_v60  ;;  %v13131_v60 = vld [vmem:[#allocation34_spill] sm:$0xff] }
  0xf9   : > { %8692 = vmatprep.mubr.msk.bf16.mxu0 %vm13120_vm13, %v1949_v41  ;;  %vm13132_vm0 = vnez %v13131_v60  ;;  %vm13135_vm13 = vnez %v13134_v61 }
  0xfa   : > { %v1931_v41 = vsel %vm13132_vm0, %v13130_v44, 0.0  ;;  %v1933_v6 = vsel %vm13135_vm13, %v13133_v15, 0.0  ;;  %vm13146_vm13 = vmmov %vm13138_vm11 }
  0xfb   : > { %v1952_v31 = vpack.c.bf16 %v13136_v16, %v1931_v41  ;;  %v1953_v26 = vpack.c.bf16 %v10582_v33, %v1933_v6  ;;  %v13144_v6 = vrot.slane %v10545_v21, 7  ;;  %vm13151_vm0 = vmmov %vm13138_vm11 }
  0xfc   : > { %vm13159_vm9 = vmmov %vm13151_vm0 }
  0xfd   : > { %vm13161_vm8 = vmmov %vm13151_vm0 }
 0x100   : > { %8693 = vmatmul.mubr.msk.bf16.gmra.mrb[16].mxu0 %vm13128_vm12, %v1950_v10  ;;  %v13140_v10 = vld [vmem:[#allocation40_spill] sm:$0xff] }
 0x101   : > { %8696 = vmatprep.mubr.msk.bf16.mxu0 %vm13129_vm10, %v1951_v3  ;;  %vm13141_vm12 = vnez %v13140_v10  ;;  %vm13143_vm10 = vnez %v13142_v9 }
 0x102   : > { %v1935_v3 = vsel %vm13141_vm12, %v13139_v24, 0.0  ;;  %v1937_v60 = vsel %vm13143_vm10, %v10644_v57, 0.0  ;;  %vm13150_vm12 = vnez %v12982_v45  ;;  %v2534_v45 = vsel %vm10827_vm2, %v10648_v46, 0.0 }
 0x103   : > { %v1954_v61 = vpack.c.bf16 %v10602_v8, %v1935_v3  ;;  %v1955_v41 = vpack.c.bf16 %v10660_v62, %v1937_v60  ;;  %v7467_v3 = vld [vmem:[%s12597_s1 + $0xc] sm:$0x3] }
 0x108   : > { %8697 = vmatmul.mubr.msk.bf16.gmra.mrb[20].mxu0 %vm13137_vm3, %v1952_v31  ;;  %vm13145_vm3 = vcmp.lt.s32.totalorder %v10161_v5, 1 }
 0x109   : > { %8700 = vmatprep.mubr.msk.bf16.mxu0 %vm13138_vm11, %v1953_v26  ;;  %v11093_v31 = vsel %vm13145_vm3, %v13144_v6, %v600_v0  ;;  %v13147_v26 = vld [vmem:[#allocation4_spill] sm:$0xff]  ;;  %vm13149_vm10 = vmmov %vm13145_vm3  ;;  %v13171_v6 = vld [vmem:[#allocation46_spill] sm:$0xff] }
 0x10a   : > { %v13148_v10 = vrot.slane %v13147_v26, 7  ;;  %v1939_v60 = vsel %vm13150_vm12, %v11093_v31, 0.0  ;;  %vm13152_vm3 = vmmov %vm13151_vm0 }
 0x10c   : > { %v11101_v9 = vsel %vm13149_vm10, %v600_v0, %v13148_v10  ;;  %vm13155_vm10 = vmmov %vm13151_vm0  ;;  %v13164_v0 = vld [vmem:[#allocation44_spill] sm:$0xff]  ;;  %v13166_v10 = vmov 0 }
 0x10d   : > { %v1956_v21 = vpack.c.bf16 %v11101_v9, %v1939_v60 }
 0x110   : > { %8701 = vmatmul.mubr.msk.bf16.gmra.mrb[24].mxu0 %vm13138_vm11, %v1954_v61  ;;  %vm13153_vm11 = vcmask 1041408  }
 0x111   : > { %8704 = vmatprep.mubr.msk.bf16.mxu0 %vm13146_vm13, %v1955_v41  ;;  %v2628_v61 = vsel %vm13153_vm11, %v7450_v48, 0  ;;  %vm13154_vm13 = vmmov %vm13151_vm0  ;;  %v13169_v41 = vld [vmem:[#allocation45_spill] sm:$0xff] }
 0x112   : > { %vm13156_vm12 = vmmov %vm13153_vm11 }
 0x113   : > { %vm13158_vm11 = vmmov %vm13151_vm0 }
 0x118   : > { %8705 = vmatmul.mubr.msk.bf16.gmra.mrb[28].mxu0 %vm13151_vm0, %v1956_v21  ;;  %v11153_v21 = vpack.c.bf16 %v13147_v26, %v10968_v51 }
 0x119   : > { %8710 = vmatprep.mubr.msk.bf16.mxu0 %vm13152_vm3, %v10515_v13  ;;  %vm13157_vm3 = vmmov %vm13151_vm0  ;;  %v314_v13 = vadd.s32 8, %v10161_v5 }
 0x11b   : > { %v346_v48 = vand.u32 15, %v314_v13  ;;  %v2532_v13 = vsel %vm10822_vm1, %v10635_v43, 0.0 }
 0x120   : > { %8711 = vmatmul.mubr.msk.bf16.vlgmr.msra.gmra.mrb[0].mxu0 %vm13154_vm13, %v10530_v54  ;;  %vm13160_vm13 = vmmov %vm13151_vm0 }
 0x121   : > { %8743 = vmatpush3.bf16.msra.mxu0 %v2628_v61  ;;  %8714 = vmatprep.mubr.msk.bf16.mxu0 %vm13155_vm10, %v10536_v58  ;;  %vm13163_vm10 = vmmov %vm13151_vm0 }
 0x122   : > { %9960 = vmatprep.subr.msk.bf16.mxu0 %vm13156_vm12, %v7467_v3  ;;  %vm13162_vm12 = vmmov %vm13151_vm0 }
 0x128   : > { %8715 = vmatmul.mubr.msk.bf16.gmra.mrb[4].mxu0 %vm13151_vm0, %v10540_v19 }
 0x129   : > { %8718 = vmatprep.mubr.msk.bf16.mxu0 %vm13157_vm3, %v10549_v30  ;;  %vm13165_vm3 = vmmov %vm13151_vm0 }
 0x130   : > { %8719 = vmatmul.mubr.msk.bf16.gmra.mrb[8].mxu0 %vm13158_vm11, %v10557_v28  ;;  %vm13172_vm11 = vmmov %vm13151_vm0 }
 0x131   : > { %8722 = vmatprep.mubr.msk.bf16.mxu0 %vm13159_vm9, %v10561_v7  ;;  %vm11140_vm9 = vcmp.lt.s32.totalorder %v346_v48, 15 }
 0x132   : > { %v13167_v10 = vsel %vm11140_vm9, 4294967295, %v13166_v10  ;;  %v2530_v60 = vsel %vm11140_vm9, %v10622_v40, 0.0  ;;  %v2562_v40 = vpack.c.bf16 %v2532_v13, %v10628_v35 }
 0x133   : > { %13168 = vst [vmem:[#allocation7_spill] sm:$0xff] %v13167_v10  ;;  %v2561_v61 = vpack.c.bf16 %v2530_v60, %v10841_v50  ;;  %v2563_v10 = vpack.c.bf16 %v2534_v45, %v10653_v4  ;;  %v7483_v50 = vld [vmem:[%s12597_s1 + $0xe] sm:$0x3]  ;;  %v13182_v45 = vld [vmem:[#allocation49_spill] sm:$0xff] }
 0x138   : > { %8723 = vmatmul.mubr.msk.bf16.gmra.mrb[12].mxu0 %vm13160_vm13, %v10565_v47  ;;  %vm13173_vm13 = vmmov %vm13151_vm0 }
 0x139   : > { %8726 = vmatprep.mubr.msk.bf16.mxu0 %vm13161_vm8, %v10573_v59  ;;  %vm13170_vm8 = vmmov %vm13151_vm0 }
 0x140   : > { %8727 = vmatmul.mubr.msk.bf16.gmra.mrb[16].mxu0 %vm13162_vm12, %v10577_v25  ;;  %vm13174_vm12 = vmmov %vm13151_vm0 }
 0x141   : > { %8730 = vmatprep.mubr.msk.bf16.mxu0 %vm13163_vm10, %v10586_v55  ;;  %vm13176_vm10 = vcmask 1041408  }
 0x148   : > { %8731 = vmatmul.mubr.msk.bf16.gmra.mrb[20].mxu0 %vm13151_vm0, %v10590_v17 }
 0x149   : > { %8734 = vmatprep.mubr.msk.bf16.mxu0 %vm13165_vm3, %v13164_v0  ;;  %vm13177_vm3 = vmmov %vm13151_vm0 }
 0x150   : > { %8735 = vmatmul.mubr.msk.bf16.gmra.mrb[24].mxu0 %vm13170_vm8, %v13169_v41  ;;  %vm13178_vm8 = vnez %v13031_v1 }
 0x151   : > { %8738 = vmatprep.mubr.msk.bf16.mxu0 %vm13172_vm11, %v13171_v6  ;;  %v3018_v6 = vsel %vm13176_vm10, %v7467_v3, 0  ;;  %v2536_v60 = vsel %vm13178_vm8, %v10676_v39, 0.0 }
 0x152   : > { %v2564_v3 = vpack.c.bf16 %v2536_v60, %v13182_v45  ;;  %v13192_v60 = vld [vmem:[#allocation70_spill] sm:$0xff] }
 0x158   : > { %8739 = vmatmul.mubr.msk.bf16.gmra.mrb[28].mxu0 %vm13173_vm13, %v11153_v21  ;;  %vm13181_vm13 = vmmov %vm13176_vm10 }
 0x159   : > { %8744 = vmatprep.mubr.msk.bf16.mxu0 %vm13174_vm12, %v2561_v61  ;;  %v13179_v61 = vld [vmem:[#allocation66_spill] sm:$0xff]  ;;  %vm13183_vm12 = vmmov %vm13151_vm0 }
 0x15a   : > { %vm13180_vm11 = vnez %v13179_v61  ;;  %vm13184_vm10 = vmmov %vm13151_vm0  ;;  %v13188_v61 = vld [vmem:[#allocation51_spill] sm:$0xff] }
 0x15b   : > { %v2538_v13 = vsel %vm13180_vm11, %v10685_v11, 0.0  ;;  %vm13190_vm11 = vmmov %vm13184_vm10 }
 0x15c   : > { %v2565_v4 = vpack.c.bf16 %v2538_v13, %v10680_v2 }
 0x160   : > { %8745 = vmatmul.mubr.msk.bf16.vlgmr.msra.gmra.mrb[0].mxu0 %vm13151_vm0, %v2562_v40 }
 0x161   : > { %8777 = vmatpush3.bf16.msra.mxu0 %v3018_v6  ;;  %8748 = vmatprep.mubr.msk.bf16.mxu0 %vm13177_vm3, %v2563_v10  ;;  %v13185_v10 = vld [vmem:[#allocation67_spill] sm:$0xff]  ;;  %vm13187_vm3 = vnez %v13041_v27 }
 0x162   : > { %9961 = vmatprep.subr.msk.bf16.mxu0 %vm13181_vm13, %v7483_v50  ;;  %vm13186_vm0 = vnez %v13185_v10  ;;  %v2542_v40 = vsel %vm13187_vm3, %v10707_v42, 0.0  ;;  %vm13189_vm13 = vmmov %vm13184_vm10 }
 0x163   : > { %v2540_v6 = vsel %vm13186_vm0, %v10694_v22, 0.0  ;;  %v2567_v11 = vpack.c.bf16 %v2542_v40, %v10702_v34  ;;  %vm13195_vm3 = vmmov %vm13190_vm11  ;;  %v13200_v40 = vld [vmem:[#allocation72_spill] sm:$0xff]  ;;  %v13202_v34 = vld [vmem:[#allocation55_spill] sm:$0xff] }
 0x164   : > { %v2566_v1 = vpack.c.bf16 %v2540_v6, %v13188_v61  ;;  %vm13196_vm0 = vmmov %vm13195_vm3  ;;  %v13199_v6 = vld [vmem:[#allocation57_spill] sm:$0xff] }
 0x168   : > { %8749 = vmatmul.mubr.msk.bf16.gmra.mrb[4].mxu0 %vm13183_vm12, %v2564_v3  ;;  %vm13191_vm12 = vnez %v13046_v18  ;;  %v13194_v3 = vld [vmem:[#allocation53_spill] sm:$0xff] }
 0x169   : > { %8752 = vmatprep.mubr.msk.bf16.mxu0 %vm13184_vm10, %v2565_v4  ;;  %v2544_v4 = vsel %vm13191_vm12, %v10717_v14, 0.0  ;;  %vm13193_vm10 = vnez %v13192_v60  ;;  %vm13204_vm12 = vmmov %vm13196_vm0 }
 0x16a   : > { %v2546_v13 = vsel %vm13193_vm10, %v10729_v37, 0.0  ;;  %v2568_v10 = vpack.c.bf16 %v2544_v4, %v13194_v3  ;;  %vm13203_vm10 = vmmov %vm13196_vm0 }
 0x16b   : > { %v2569_v27 = vpack.c.bf16 %v2546_v13, %v10722_v12 }
 0x170   : > { %8753 = vmatmul.mubr.msk.bf16.gmra.mrb[8].mxu0 %vm13189_vm13, %v2566_v1  ;;  %v13197_v1 = vld [vmem:[#allocation71_spill] sm:$0xff] }
 0x171   : > { %8756 = vmatprep.mubr.msk.bf16.mxu0 %vm13190_vm11, %v2567_v11  ;;  %vm13198_vm13 = vnez %v13197_v1  ;;  %vm13201_vm11 = vnez %v13200_v40 }
 0x172   : > { %v2548_v11 = vsel %vm13198_vm13, %v10743_v52, 0.0  ;;  %v2550_v18 = vsel %vm13201_vm11, %v13199_v6, 0.0  ;;  %vm13208_vm11 = vmmov %vm13203_vm10 }
 0x173   : > { %v2570_v14 = vpack.c.bf16 %v2548_v11, %v13202_v34  ;;  %v2571_v60 = vpack.c.bf16 %v2550_v18, %v10753_v49  ;;  %vm13209_vm13 = vmmov %vm13203_vm10  ;;  %v13213_v11 = vld [vmem:[#allocation77_spill] sm:$0xff]  ;;  %v1421_v49 = vrot.slane %v13147_v26, 1 }
 0x178   : > { %8757 = vmatmul.mubr.msk.bf16.gmra.mrb[12].mxu0 %vm13195_vm3, %v2568_v10  ;;  %v13205_v10 = vld [vmem:[#allocation73_spill] sm:$0xff] }
 0x179   : > { %8760 = vmatprep.mubr.msk.bf16.mxu0 %vm13196_vm0, %v2569_v27  ;;  %vm13206_vm3 = vnez %v13205_v10  ;;  %vm13207_vm0 = vnez %v13063_v32  ;;  %v13215_v32 = vld [vmem:[#allocation61_spill] sm:$0xff] }
 0x17a   : > { %v2552_v27 = vsel %vm13206_vm3, %v10766_v56, 0.0  ;;  %v2554_v4 = vsel %vm13207_vm0, %v10776_v23, 0.0  ;;  %v13216_v56 = vld [vmem:[#allocation62_spill] sm:$0xff]  ;;  %vm13221_vm0 = vmmov %vm13209_vm13 }
 0x17b   : > { %v2572_v13 = vpack.c.bf16 %v2552_v27, %v10762_v63  ;;  %v2573_v40 = vpack.c.bf16 %v2554_v4, %v10772_v36  ;;  %v13217_v63 = vld [vmem:[#allocation3_spill] sm:$0xff] }
 0x17c   : > { %v13218_v4 = vrot.slane %v13217_v63, 1  ;;  %v13237_v63 = vld [vmem:[#allocation16_spill] sm:$0xff] }
 0x180   : > { %8761 = vmatmul.mubr.msk.bf16.gmra.mrb[16].mxu0 %vm13203_vm10, %v2570_v14  ;;  %v13210_v14 = vld [vmem:[#allocation76_spill] sm:$0xff] }
 0x181   : > { %8764 = vmatprep.mubr.msk.bf16.mxu0 %vm13204_vm12, %v2571_v60  ;;  %vm13211_vm10 = vnez %v13210_v14  ;;  %v13212_v60 = vld [vmem:[#allocation79_spill] sm:$0xff]  ;;  %vm13214_vm12 = vnez %v13213_v11  ;;  %v13228_v14 = vld [vmem:[#allocation8_spill] sm:$0xff] }
 0x182   : > { %v2556_v18 = vsel %vm13211_vm10, %v10791_v53, 0.0  ;;  %v2558_v10 = vsel %vm13214_vm12, %v13212_v60, 0.0 }
 0x183   : > { %v2574_v23 = vpack.c.bf16 %v2556_v18, %v13215_v32  ;;  %v2575_v27 = vpack.c.bf16 %v2558_v10, %v13216_v56  ;;  %v13226_v18 = vld [vmem:[#allocation9_spill] sm:$0xff] }
 0x184   : > { %v2919_v56 = vsel %vm10998_vm14, %v13226_v18, 0.0 }
 0x188   : > { %8765 = vmatmul.mubr.msk.bf16.gmra.mrb[20].mxu0 %vm13208_vm11, %v2572_v13  ;;  %vm13219_vm11 = vcmp.lt.s32.totalorder %v10161_v5, 7 }
 0x189   : > { %8768 = vmatprep.mubr.msk.bf16.mxu0 %vm13209_vm13, %v2573_v40  ;;  %v11237_v13 = vsel %vm13219_vm11, %v1421_v49, %v13218_v4  ;;  %v13222_v40 = vrot.slane %v10968_v51, 1  ;;  %vm13223_vm12 = vmmov %vm13219_vm11  ;;  %v13231_v51 = vld [vmem:[#allocation5_spill] sm:$0xff] }
 0x18a   : > { %13220 = vst [vmem:[#allocation35_spill] sm:$0xff] %v11237_v13  ;;  %v2560_v10 = vsel %vm10986_vm15, %v11237_v13, 0.0  ;;  %vm13229_vm11 = vmmov %vm13221_vm0  ;;  %v13236_v13 = vld [vmem:[#allocation12_spill] sm:$0xff] }
 0x18b   : > { %v11245_v11 = vsel %vm13223_vm12, %v13222_v40, %v1421_v49  ;;  %vm13233_vm12 = vmmov %vm13229_vm11  ;;  %v13234_v49 = vld [vmem:[#allocation15_spill] sm:$0xff] }
 0x18c   : > { %13224 = vst [vmem:[#allocation33_spill] sm:$0xff] %v11245_v11  ;;  %v2576_v4 = vpack.c.bf16 %v2560_v10, %v11245_v11  ;;  %v2923_v26 = vsel %vm10211_vm4, %v13234_v49, 0.0  ;;  %vm13239_vm14 = vmmov %vm13229_vm11  ;;  %v13253_v49 = vld [vmem:[#allocation25_spill] sm:$0xff] }
 0x18d   : > { %v2953_v18 = vpack.c.bf16 %v13237_v63, %v2923_v26  ;;  %v13246_v26 = vld [vmem:[#allocation20_spill] sm:$0xff]  ;;  %vm13256_vm15 = vmmov %vm13229_vm11 }
 0x190   : > { %8769 = vmatmul.mubr.msk.bf16.gmra.mrb[24].mxu0 %vm13209_vm13, %v2574_v23  ;;  %v2951_v23 = vpack.c.bf16 %v13228_v14, %v2919_v56  ;;  %vm13238_vm13 = vcmask 1041408   ;;  %v7499_v56 = vld [vmem:[%s12597_s1 + $0x10] sm:$0x3]  ;;  %v13240_v14 = vld [vmem:[#allocation17_spill] sm:$0xff] }
 0x191   : > { %8772 = vmatprep.mubr.msk.bf16.mxu0 %vm13221_vm0, %v2575_v27  ;;  %v13230_v27 = vld [vmem:[#allocation11_spill] sm:$0xff]  ;;  %vm13232_vm0 = vnez %v13231_v51  ;;  %v3376_v10 = vsel %vm13238_vm13, %v7483_v50, 0 }
 0x192   : > { %v2921_v5 = vsel %vm13232_vm0, %v13230_v27, 0.0  ;;  %v13242_v27 = vld [vmem:[#allocation21_spill] sm:$0xff]  ;;  %v13245_v50 = vld [vmem:[#allocation19_spill] sm:$0xff] }
 0x193   : > { %v2952_v60 = vpack.c.bf16 %v13236_v13, %v2921_v5  ;;  %v2927_v5 = vsel %vm10279_vm6, %v13242_v27, 0.0  ;;  %v13254_v51 = vld [vmem:[#allocation27_spill] sm:$0xff] }
 0x194   : > { %v2955_v63 = vpack.c.bf16 %v13246_v26, %v2927_v5  ;;  %v13258_v5 = vld [vmem:[#allocation22_spill] sm:$0xff]  ;;  %v13261_v26 = vld [vmem:[#allocation24_spill] sm:$0xff] }
 0x198   : > { %8773 = vmatmul.mubr.msk.bf16.gmra.mrb[28].mxu0 %vm13229_vm11, %v2576_v4  ;;  %v13250_v4 = vld [vmem:[#allocation26_spill] sm:$0xff] }
 0x199   : > { %8778 = vmatprep.mubr.msk.bf16.mxu0 %vm13233_vm12, %v2951_v23  ;;  %v2925_v23 = vsel %vm10253_vm5, %v13240_v14, 0.0  ;;  %vm13244_vm12 = vmmov %vm13238_vm13  ;;  %v13251_v14 = vld [vmem:[#allocation18_spill] sm:$0xff] }
 0x19a   : > { %v2954_v13 = vpack.c.bf16 %v13245_v50, %v2925_v23  ;;  %vm13247_vm13 = vmmov %vm13229_vm11  ;;  %v13257_v23 = vld [vmem:[#allocation29_spill] sm:$0xff] }
 0x1a0   : > { %8779 = vmatmul.mubr.msk.bf16.vlgmr.msra.gmra.mrb[0].mxu0 %vm13229_vm11, %v2952_v60  ;;  %v13248_v60 = vld [vmem:[#allocation23_spill] sm:$0xff] }
 0x1a1   : > { %8811 = vmatpush3.bf16.msra.mxu0 %v3376_v10  ;;  %8782 = vmatprep.mubr.msk.bf16.mxu0 %vm13239_vm14, %v2953_v18  ;;  %v2929_v10 = vsel %vm10286_vm7, %v13248_v60, 0.0  ;;  %vm13252_vm14 = vnez %v13251_v14  ;;  %v13263_v60 = vld [vmem:[#allocation30_spill] sm:$0xff] }
 0x1a2   : > { %9962 = vmatprep.subr.msk.bf16.mxu0 %vm13244_vm12, %v7499_v56  ;;  %v2931_v40 = vsel %vm13252_vm14, %v13250_v4, 0.0  ;;  %v2956_v27 = vpack.c.bf16 %v13253_v49, %v2929_v10  ;;  %vm13255_vm12 = vmmov %vm13229_vm11  ;;  %v13270_v10 = vld [vmem:[#allocation38_spill] sm:$0xff] }
 0x1a3   : > { %v2957_v11 = vpack.c.bf16 %v13254_v51, %v2931_v40  ;;  %vm13264_vm14 = vmmov %vm13255_vm12  ;;  %v13266_v51 = vld [vmem:[#allocation28_spill] sm:$0xff]  ;;  %v13268_v40 = vld [vmem:[#allocation31_spill] sm:$0xff] }
 0x1a4   : > { %vm13265_vm7 = vmmov %vm13255_vm12 }
 0x1a8   : > { %8783 = vmatmul.mubr.msk.bf16.gmra.mrb[4].mxu0 %vm13247_vm13, %v2954_v13  ;;  %vm13259_vm13 = vnez %v13258_v5  ;;  %v13260_v13 = vld [vmem:[#allocation32_spill] sm:$0xff] }
 0x1a9   : > { %8786 = vmatprep.mubr.msk.bf16.mxu0 %vm13229_vm11, %v2955_v63  ;;  %v2933_v50 = vsel %vm13259_vm13, %v13257_v23, 0.0  ;;  %vm13262_vm11 = vnez %v13261_v26  ;;  %vm13272_vm13 = vmmov %vm13265_vm7 }
 0x1aa   : > { %v2935_v63 = vsel %vm13262_vm11, %v13260_v13, 0.0  ;;  %v2958_v18 = vpack.c.bf16 %v13263_v60, %v2933_v50  ;;  %vm13271_vm11 = vmmov %vm13265_vm7  ;;  %v13275_v50 = vld [vmem:[#allocation36_spill] sm:$0xff]  ;;  %v13281_v60 = vld [vmem:[#allocation41_spill] sm:$0xff] }
 0x1ab   : > { %v2959_v4 = vpack.c.bf16 %v13126_v20, %v2935_v63  ;;  %v13273_v20 = vld [vmem:[#allocation34_spill] sm:$0xff] }
 0x1b0   : > { %8787 = vmatmul.mubr.msk.bf16.gmra.mrb[8].mxu0 %vm13255_vm12, %v2956_v27  ;;  %vm13267_vm12 = vnez %v13266_v51 }
 0x1b1   : > { %8790 = vmatprep.mubr.msk.bf16.mxu0 %vm13256_vm15, %v2957_v11  ;;  %v2937_v11 = vsel %vm13267_vm12, %v13123_v29, 0.0  ;;  %vm13269_vm15 = vnez %v13268_v40  ;;  %vm13278_vm12 = vmmov %vm13271_vm11 }
 0x1b2   : > { %v2939_v49 = vsel %vm13269_vm15, %v13130_v44, 0.0  ;;  %v2960_v27 = vpack.c.bf16 %v13270_v10, %v2937_v11  ;;  %vm13277_vm15 = vmmov %vm13271_vm11  ;;  %v13326_v10 = vld [vmem:[#allocation59_spill] sm:$0xff] }
 0x1b3   : > { %v2961_v23 = vpack.c.bf16 %v13136_v16, %v2939_v49  ;;  %v13279_v16 = vld [vmem:[#allocation40_spill] sm:$0xff] }
 0x1b8   : > { %8791 = vmatmul.mubr.msk.bf16.gmra.mrb[12].mxu0 %vm13264_vm14, %v2958_v18  ;;  %vm13274_vm14 = vnez %v13273_v20 }
 0x1b9   : > { %8794 = vmatprep.mubr.msk.bf16.mxu0 %vm13265_vm7, %v2959_v4  ;;  %v2941_v18 = vsel %vm13274_vm14, %v13133_v15, 0.0  ;;  %vm13276_vm7 = vnez %v13275_v50 }
 0x1ba   : > { %v2943_v29 = vsel %vm13276_vm7, %v13139_v24, 0.0  ;;  %v2962_v13 = vpack.c.bf16 %v10582_v33, %v2941_v18  ;;  %vm13283_vm7 = vmmov %vm13278_vm12  ;;  %v13285_v33 = vmov 0.0|0.0  }
 0x1bb   : > { %v2963_v44 = vpack.c.bf16 %v10602_v8, %v2943_v29  ;;  %vm13284_vm14 = vmmov %vm13283_vm7  ;;  %v13330_v29 = vld [vmem:[#allocation58_spill] sm:$0xff] }
 0x1bc   : > { %vm13290_vm6 = vmmov %vm13283_vm7 }
 0x1c0   : > { %8795 = vmatmul.mubr.msk.bf16.gmra.mrb[16].mxu0 %vm13271_vm11, %v2960_v27  ;;  %vm13280_vm11 = vnez %v13279_v16  ;;  %v13327_v27 = vld [vmem:[#allocation72_spill] sm:$0xff] }
 0x1c1   : > { %8798 = vmatprep.mubr.msk.bf16.mxu0 %vm13272_vm13, %v2961_v23  ;;  %v2945_v63 = vsel %vm13280_vm11, %v10644_v57, 0.0  ;;  %vm13282_vm13 = vnez %v13281_v60  ;;  %vm13288_vm11 = vmmov %vm13283_vm7  ;;  %v13329_v23 = vld [vmem:[#allocation56_spill] sm:$0xff] }
 0x1c2   : > { %v2947_v15 = vsel %vm13282_vm13, %v11093_v31, 0.0  ;;  %v2964_v4 = vpack.c.bf16 %v10660_v62, %v2945_v63  ;;  %vm13289_vm13 = vmmov %vm13283_vm7  ;;  %v13314_v31 = vld [vmem:[#allocation54_spill] sm:$0xff] }
 0x1c3   : > { %v2965_v24 = vpack.c.bf16 %v11101_v9, %v2947_v15 }
 0x1c8   : > { %8799 = vmatmul.mubr.msk.bf16.gmra.mrb[20].mxu0 %vm13277_vm15, %v2962_v13  ;;  %vm13287_vm15 = vcmask 1041408  }
 0x1c9   : > { %8802 = vmatprep.mubr.msk.bf16.mxu0 %vm13278_vm12, %v2963_v44  ;;  %vm13286_vm12 = vmmov %vm13283_vm7  ;;  %v3766_v8 = vsel %vm13287_vm15, %v7499_v56, 0  ;;  %v13321_v56 = vld [vmem:[#allocation70_spill] sm:$0xff] }
 0x1ca   : > { %vm13294_vm15 = vmmov %vm13290_vm6  ;;  %v13335_v44 = vld [vmem:[#allocation74_spill] sm:$0xff] }
 0x1d0   : > { %8803 = vmatmul.mubr.msk.bf16.gmra.mrb[24].mxu0 %vm13283_vm7, %v2964_v4  ;;  %vm13291_vm7 = vmmov %vm13290_vm6  ;;  %v13338_v4 = vld [vmem:[#allocation79_spill] sm:$0xff] }
 0x1d1   : > { %8806 = vmatprep.mubr.msk.bf16.mxu0 %vm13284_vm14, %v2965_v24  ;;  %vm13292_vm14 = vmmov %vm13290_vm6 }
 0x1d8   : > { %8807 = vmatmul.mubr.bf16.gmra.mrb[28].mxu0 %v13285_v33 }
 0x1d9   : > { %8812 = vmatprep.mubr.msk.bf16.mxu0 %vm13286_vm12, %v10530_v54  ;;  %vm13293_vm12 = vmmov %vm13290_vm6  ;;  %v3672_v54 = vsel %vm10827_vm2, %v10676_v39, 0.0  ;;  %v13312_v39 = vld [vmem:[#allocation67_spill] sm:$0xff] }
 0x1e0   : > { %8813 = vmatmul.mubr.msk.bf16.vlgmr.msra.gmra.mrb[0].mxu0 %vm13288_vm11, %v10536_v58  ;;  %vm13295_vm11 = vmmov %vm13290_vm6  ;;  %v13299_v58 = vld [vmem:[#allocation46_spill] sm:$0xff] }
 0x1e1   : > { %8845 = vmatpush3.bf16.msra.mxu0 %v3766_v8  ;;  %8816 = vmatprep.mubr.msk.bf16.mxu0 %vm13289_vm13, %v10540_v19  ;;  %vm13296_vm13 = vmmov %vm13290_vm6  ;;  %v13304_v19 = vld [vmem:[#allocation48_spill] sm:$0xff]  ;;  %v3694_v8 = vsel %vm13211_vm10, %v13338_v4, 0.0 }
 0x1e8   : > { %8817 = vmatmul.mubr.msk.bf16.gmra.mrb[4].mxu0 %vm13290_vm6, %v10549_v30 }
 0x1e9   : > { %8820 = vmatprep.mubr.msk.bf16.mxu0 %vm13291_vm7, %v10557_v28  ;;  %vm13297_vm7 = vmmov %vm13290_vm6  ;;  %v3701_v28 = vpack.c.bf16 %v3672_v54, %v13182_v45  ;;  %v13344_v54 = vld [vmem:[#allocation33_spill] sm:$0xff] }
 0x1f0   : > { %8821 = vmatmul.mubr.msk.bf16.gmra.mrb[8].mxu0 %vm13292_vm14, %v10561_v7  ;;  %vm13298_vm14 = vmmov %vm13290_vm6  ;;  %v3668_v7 = vsel %vm11140_vm9, %v10635_v43, 0.0  ;;  %v13306_v43 = vld [vmem:[#allocation50_spill] sm:$0xff] }
 0x1f1   : > { %8824 = vmatprep.mubr.msk.bf16.mxu0 %vm13293_vm12, %v10565_v47  ;;  %vm13300_vm12 = vmmov %vm13290_vm6  ;;  %v3674_v47 = vsel %vm13178_vm8, %v13306_v43, 0.0  ;;  %v10079_v43 = vld [vmem:[%s10175_s10 + $0x48] sm:$0xff]  }
 0x1f2   : > { %vm13323_vm9 = vmmov %vm13290_vm6 }
 0x1f8   : > { %8825 = vmatmul.mubr.msk.bf16.gmra.mrb[12].mxu0 %vm13294_vm15, %v10573_v59  ;;  %vm13301_vm15 = vmmov %vm13290_vm6  ;;  %v13308_v59 = vld [vmem:[#allocation66_spill] sm:$0xff] }
 0x1f9   : > { %8828 = vmatprep.mubr.msk.bf16.mxu0 %vm13295_vm11, %v10577_v25  ;;  %vm13303_vm11 = vmmov %vm13290_vm6 }
 0x200   : > { %8829 = vmatmul.mubr.msk.bf16.gmra.mrb[16].mxu0 %vm13296_vm13, %v10586_v55  ;;  %v3699_v55 = vpack.c.bf16 %v3668_v7, %v10628_v35  ;;  %vm13305_vm13 = vmmov %vm13290_vm6  ;;  %v13341_v7 = vld [vmem:[#allocation77_spill] sm:$0xff] }
 0x201   : > { %8832 = vmatprep.mubr.msk.bf16.mxu0 %vm13290_vm6, %v10590_v17  ;;  %v3670_v17 = vsel %vm10822_vm1, %v10648_v46, 0.0  ;;  %v3702_v46 = vpack.c.bf16 %v3674_v47, %v10680_v2  ;;  %v13319_v2 = vld [vmem:[#allocation69_spill] sm:$0xff]  ;;  %v9978_v47 = vld [vmem:[%s12599_s3 + $0x8] sm:$0xff]  }
 0x202   : > { %v3700_v30 = vpack.c.bf16 %v3670_v17, %v13304_v19  ;;  %v13343_v17 = vld [vmem:[#allocation62_spill] sm:$0xff] }
 0x208   : > { %8833 = vmatmul.mubr.msk.bf16.gmra.mrb[20].mxu0 %vm13297_vm7, %v13164_v0  ;;  %vm13309_vm7 = vnez %v13308_v59  ;;  %v13315_v0 = vld [vmem:[#allocation68_spill] sm:$0xff] }
 0x209   : > { %8836 = vmatprep.mubr.msk.bf16.mxu0 %vm13298_vm14, %v13169_v41  ;;  %v3676_v57 = vsel %vm13309_vm7, %v10694_v22, 0.0  ;;  %vm13310_vm14 = vmmov %vm13290_vm6 }
 0x20a   : > { %v3703_v62 = vpack.c.bf16 %v3676_v57, %v13188_v61  ;;  %v10080_v57 = vld [vmem:[%s10175_s10 + $0x50] sm:$0xff]  }
 0x210   : > { %8837 = vmatmul.mubr.msk.bf16.gmra.mrb[24].mxu0 %vm13300_vm12, %v13299_v58  ;;  %vm13311_vm12 = vmmov %vm13290_vm6  ;;  %v13340_v58 = vld [vmem:[#allocation35_spill] sm:$0xff] }
 0x211   : > { %8840 = vmatprep.mubr.msk.bf16.mxu0 %vm13301_vm15, %v11153_v21  ;;  %vm13313_vm15 = vnez %v13312_v39  ;;  %v13317_v21 = vld [vmem:[#allocation52_spill] sm:$0xff] }
 0x212   : > { %v3678_v9 = vsel %vm13313_vm15, %v10707_v42, 0.0 }
 0x213   : > { %v3704_v45 = vpack.c.bf16 %v3678_v9, %v13317_v21  ;;  %v9982_v9 = vld [vmem:[%s12599_s3 + $0x18] sm:$0xff]   ;;  %v10083_v21 = vld [vmem:[%s10175_s10 + $0x68] sm:$0xff]  }
 0x218   : > { %8841 = vmatmul.mubr.bf16.gmra.mrb[28].mxu0 %v13285_v33 }
 0x219   : > { %8846 = vmatprep.mubr.msk.bf16.mxu0 %vm13303_vm11, %v3699_v55  ;;  %vm13316_vm11 = vnez %v13315_v0 }
 0x21a   : > { %v3680_v41 = vsel %vm13316_vm11, %v13314_v31, 0.0  ;;  %vm13324_vm11 = vmmov %vm13290_vm6  ;;  %v10082_v31 = vld [vmem:[%s10175_s10 + $0x60] sm:$0xff]  }
 0x21b   : > { %v3705_v22 = vpack.c.bf16 %v3680_v41, %v13194_v3  ;;  %v9984_v41 = vld [vmem:[%s12599_s3 + $0x20] sm:$0xff]  }
 0x220   : > { %8847 = vmatmul.mubr.msk.bf16.vlgmr.msra.gmra.mrb[0].mxu0 %vm13305_vm13, %v3700_v30  ;;  %vm13318_vm13 = vmmov %vm13290_vm6  ;;  %v10078_v30 = vld [vmem:[%s10175_s10 + $0x40] sm:$0xff]  }
 0x221   : > { %8850 = vmatprep.mubr.msk.bf16.mxu0 %vm13290_vm6, %v3701_v28  ;;  %v9976_v28 = vld [vmem:[%s12599_s3] sm:$0xff]  }
 0x228   : > { %8851 = vmatmul.mubr.msk.bf16.gmra.mrb[4].mxu0 %vm13310_vm14, %v3702_v46  ;;  %vm13320_vm14 = vnez %v13319_v2  ;;  %v9980_v46 = vld [vmem:[%s12599_s3 + $0x10] sm:$0xff]  }
 0x229   : > { %8854 = vmatprep.mubr.msk.bf16.mxu0 %vm13311_vm12, %v3703_v62  ;;  %v3682_v61 = vsel %vm13320_vm14, %v10729_v37, 0.0  ;;  %vm13322_vm12 = vnez %v13321_v56  ;;  %vm13332_vm14 = vmmov %vm13323_vm9  ;;  %v10081_v62 = vld [vmem:[%s10175_s10 + $0x58] sm:$0xff]  }
 0x22a   : > { %v3684_v42 = vsel %vm13322_vm12, %v10743_v52, 0.0  ;;  %v3706_v11 = vpack.c.bf16 %v3682_v61, %v10722_v12  ;;  %vm13331_vm12 = vmmov %vm13323_vm9  ;;  %v9988_v61 = vld [vmem:[%s12599_s3 + $0x30] sm:$0xff]  }
 0x22b   : > { %v3707_v49 = vpack.c.bf16 %v3684_v42, %v13202_v34  ;;  %v13333_v34 = vld [vmem:[#allocation60_spill] sm:$0xff]  ;;  %v10085_v42 = vld [vmem:[%s10175_s10 + $0x7c] sm:$0xf] }
 0x22c   : > { %v3690_v13 = vsel %vm13206_vm3, %v13333_v34, 0.0 }
 0x22d   : > { %v3710_v63 = vpack.c.bf16 %v3690_v13, %v10772_v36 }
 0x230   : > { %8855 = vmatmul.mubr.msk.bf16.gmra.mrb[8].mxu0 %vm13318_vm13, %v3704_v45  ;;  %vm13325_vm13 = vnez %v13197_v1  ;;  %v9986_v45 = vld [vmem:[%s12599_s3 + $0x28] sm:$0xff]  }
 0x231   : > { %8858 = vmatprep.mubr.msk.bf16.mxu0 %vm13290_vm6, %v3705_v22  ;;  %v3686_v3 = vsel %vm13325_vm13, %v13199_v6, 0.0  ;;  %vm13328_vm6 = vnez %v13327_v27  ;;  %v10084_v22 = vld [vmem:[%s10175_s10 + $0x70] sm:$0xff]  }
 0x232   : > { %v3688_v37 = vsel %vm13328_vm6, %v13326_v10, 0.0  ;;  %v3708_v18 = vpack.c.bf16 %v3686_v3, %v13329_v23  ;;  %vm13337_vm6 = vmmov %vm13324_vm11  ;;  %v9990_v3 = vld [vmem:[%s12599_s3 + $0x38] sm:$0xff]   ;;  %v11492_v10 = vld [vmem:[%s12599_s3 + $0x40] sm:$0xff]  }
 0x233   : > { %v3709_v52 = vpack.c.bf16 %v3688_v37, %v13330_v29  ;;  %v11498_v37 = vld [vmem:[%s12598_s2] ss:$0 sm:$0xff] }
 0x238   : > { %8859 = vmatmul.mubr.msk.bf16.gmra.mrb[12].mxu0 %vm13323_vm9, %v3706_v11  ;;  %vm13336_vm9 = vnez %v13335_v44  ;;  %v13355_v11 = vld [vmem:[#allocation75_spill] sm:$0xff] }
 0x239   : > { %8862 = vmatprep.mubr.msk.bf16.mxu0 %vm13324_vm11, %v3707_v49  ;;  %v3692_v6 = vsel %vm13336_vm9, %v10791_v53, 0.0  ;;  %v3712_v53 = vpack.c.bf16 %v3694_v8, %v13343_v17  ;;  %vm13346_vm9 = vmmov %vm13337_vm6  ;;  %v7530_v49 = vcombine.low %v13355_v11, %v10085_v42 }
 0x23a   : > { %v3711_v15 = vpack.c.bf16 %v3692_v6, %v13215_v32  ;;  %v3993_v32 = vld [vmem:[%s12601_s5] sm:$0x3]  ;;  %8896 = vmatprep.mubr.msk.bf16.mxu1 %vm13346_vm9, %v10078_v30 }
 0x240   : > { %8863 = vmatmul.mubr.msk.bf16.gmra.mrb[16].mxu0 %vm13331_vm12, %v3708_v18  ;;  %vm13345_vm12 = vmmov %vm13337_vm6 }
 0x241   : > { %8866 = vmatprep.mubr.msk.bf16.mxu0 %vm13332_vm14, %v3709_v52  ;;  %vm13342_vm14 = vnez %v13341_v7 }
 0x242   : > { %v3696_v55 = vsel %vm13342_vm14, %v13340_v58, 0.0 }
 0x243   : > { %v3713_v36 = vpack.c.bf16 %v3696_v55, %v13344_v54 }
 0x248   : > { %8867 = vmatmul.mubr.msk.bf16.gmra.mrb[20].mxu0 %vm13324_vm11, %v3710_v63 }
 0x249   : > { %8870 = vmatprep.mubr.msk.bf16.mxu0 %vm13337_vm6, %v3711_v15  ;;  %vm13347_vm6 = vcmask 1041408  }
 0x24a   : > { %9964 = vmatprep.subr.msk.bf16.mxu1 %vm13347_vm6, %v3993_v32  ;;  %vm13348_vm11 = vmmov %vm13347_vm6 }
 0x24b   : > { %v4132_v19 = vsel %vm13348_vm11, %v3993_v32, 0  ;;  %vm13349_vm14 = vmmov %vm13347_vm6 }
 0x24c   : > { %9963 = vmatprep.subr.msk.bf16.mxu0 %vm13349_vm14, %v3993_v32  ;;  %9345 = vmatpush3.bf16.msra.mxu1 %v4132_v19  ;;  %vm13351_vm14 = vmmov %vm13346_vm9 }
 0x24d   : > { %8879 = vmatpush3.bf16.msra.mxu0 %v4132_v19  ;;  %8912 = vmatprep.subr.bf16.mxu1 %v9976_v28  ;;  %vm13352_vm6 = vmmov %vm13346_vm9 }
 0x24e   : > { %vm13353_vm11 = vmmov %vm13352_vm6 }
 0x250   : > { %8871 = vmatmul.mubr.msk.bf16.gmra.mrb[24].mxu0 %vm13345_vm12, %v3712_v53  ;;  %vm13350_vm12 = vmmov %vm13346_vm9 }
 0x251   : > { %8874 = vmatprep.mubr.msk.bf16.mxu0 %vm13346_vm9, %v3713_v36  ;;  %8897 = vmatmul.mubr.msk.bf16.vlgmr.msra.gmra.mrb[0].mxu1 %vm13350_vm12, %v10079_v43  ;;  %vm13354_vm9 = vmmov %vm13352_vm6 }
 0x252   : > { %8913 = vmatpush3.bf16.msra.mxu1 %v9976_v28  ;;  %8900 = vmatprep.mubr.msk.bf16.mxu1 %vm13351_vm14, %v10080_v57  ;;  %vm13356_vm12 = vmmov %vm13352_vm6 }
 0x253   : > { %8914 = vmatprep.subr.bf16.mxu1 %v9978_v47  ;;  %vm13357_vm14 = vmmov %vm13352_vm6 }
 0x256   : > { %8915 = vmatpush3.bf16.msra.mxu1 %v9978_v47 }
 0x257   : > { %8916 = vmatprep.subr.bf16.mxu1 %v9980_v46 }
 0x258   : > { %8875 = vmatmul.mubr.bf16.gmra.mrb[28].mxu0 %v13285_v33 }
 0x259   : > { %8901 = vmatmul.mubr.msk.bf16.gmra.mrb[4].mxu1 %vm13352_vm6, %v10081_v62  ;;  %v13358_v62 = vld [vmem:[#allocation2_spill] sm:$0xff] }
 0x25a   : > { %8917 = vmatpush3.bf16.msra.mxu1 %v9980_v46  ;;  %8904 = vmatprep.mubr.msk.bf16.mxu1 %vm13353_vm11, %v10082_v31  ;;  %vm13359_vm6 = vcmp.lt.s32.totalorder %v13358_v62, 1  ;;  %vm13360_vm11 = vcmp.lt.s32.totalorder %v13358_v62, 7 }
 0x25b   : > { %8918 = vmatprep.subr.bf16.mxu1 %v9982_v9 }
 0x25e   : > { %8919 = vmatpush3.bf16.msra.mxu1 %v9982_v9 }
 0x25f   : > { %8920 = vmatprep.subr.bf16.mxu1 %v9984_v41 }
 0x261   : > { %8905 = vmatmul.mubr.msk.bf16.gmra.mrb[8].mxu1 %vm13354_vm9, %v10083_v21  ;;  %vm13361_vm9 = vmmov %vm13359_vm6 }
 0x262   : > { %8921 = vmatpush3.bf16.msra.mxu1 %v9984_v41  ;;  %8908 = vmatprep.mubr.msk.bf16.mxu1 %vm13356_vm12, %v10084_v22  ;;  %vm13362_vm12 = vmmov %vm13360_vm11 }
 0x263   : > { %8922 = vmatprep.subr.bf16.mxu1 %v9986_v45 }
 0x266   : > { %8923 = vmatpush3.bf16.msra.mxu1 %v9986_v45 }
 0x267   : > { %8924 = vmatprep.subr.bf16.mxu1 %v9988_v61 }
 0x269   : > { %8909 = vmatmul.mubr.msk.bf16.gmra.mrb[12].mxu1 %vm13357_vm14, %v7530_v49  ;;  %vm13363_vm14 = vmmov %vm13360_vm11 }
 0x26a   : > { %8925 = vmatpush3.bf16.msra.mxu1 %v9988_v61  ;;  %8928 = vmatprep.mubr.bf16.mxu1 %v13285_v33 }
 0x26b   : > { %8926 = vmatprep.subr.bf16.mxu1 %v9990_v3 }
 0x26e   : > { %8927 = vmatpush3.bf16.msra.mxu1 %v9990_v3 }
 0x26f   : > { %8960 = vmatprep.subr.bf16.mxu1 %v11492_v10 }
 0x2f3   : > { %v8848_v23 = vpop.f32.mrb[0].mxu0 }
 0x2f4   : > { %v9346_v18 = vadd.f32 %v8848_v23, %v11498_v37  ;;  %v3802_v29 = vpop.f32.mrb[1].mxu0 }
 0x2f5   : > { %v9347_v52 = vadd.f32 %v11498_v37, %v3802_v29  ;;  %v8849_v34 = vpop.f32.mrb[2].mxu0 }
 0x2f6   : > { %v3963_v13 = vmax.f32 %v9346_v18, 0.0  ;;  %v9348_v6 = vadd.f32 %v8849_v34, %v11498_v37  ;;  %v3805_v63 = vpop.f32.mrb[3].mxu0 }
 0x2f7   : > { %v11503_v15 = vmax.f32 %v9347_v52, 0.0  ;;  %v9349_v4 = vadd.f32 %v11498_v37, %v3805_v63 }
 0x2f8   : > { %v3964_v8 = vmax.f32 %v9348_v6, 0.0  ;;  %v4297_v58 = vrot.slane %v3963_v13, 7  ;;  %v4972_v55 = vrot.slane %v3963_v13, 1 }
 0x2f9   : > { %v3962_v17 = vmax.f32 %v9349_v4, 0.0  ;;  %v12816_v53 = vrot.slane %v11503_v15, 7  ;;  %v12815_v19 = vrot.slane %v11503_v15, 1 }
 0x2fa   : > { %v4298_v54 = vrot.slane %v3964_v8, 7  ;;  %v4973_v36 = vrot.slane %v3964_v8, 1  ;;  %v11507_v32 = vpack.c.bf16 %v3964_v8, %v3963_v13 }
 0x2fb   : > { %v4296_v30 = vrot.slane %v3962_v17, 7  ;;  %v11511_v28 = vpack.c.bf16 %v3962_v17, %v11503_v15  ;;  %v4971_v43 = vrot.slane %v3962_v17, 1  ;;  %v8852_v47 = vpop.f32.mrb[4].mxu0 }
 0x2fc   : > { %v9350_v57 = vadd.f32 %v8852_v47, %v11498_v37  ;;  %v3818_v46 = vpop.f32.mrb[5].mxu0  ;;  %v4355_v9 = vsel %vm13359_vm6, %v4297_v58, %v4298_v54  ;;  %v5030_v31 = vsel %vm13360_vm11, %v4972_v55, %v4973_v36  ;;  %vm13365_vm11 = vmmov %vm13359_vm6 }
 0x2fd   : > { %v11522_v41 = vsel %vm13361_vm9, %v12816_v53, %v4296_v30  ;;  %v5031_v21 = vsel %vm13362_vm12, %v4971_v43, %v4972_v55  ;;  %v5032_v45 = vsel %vm13363_vm14, %v12815_v19, %v4971_v43  ;;  %v9351_v22 = vadd.f32 %v11498_v37, %v3818_v46  ;;  %v8853_v61 = vpop.f32.mrb[6].mxu0  ;;  %vm13366_vm9 = vmmov %vm13359_vm6 }
 0x2fe   : > { %v11531_v42 = vpack.c.bf16 %v5031_v21, %v5032_v45  ;;  %v3967_v11 = vmax.f32 %v9350_v57, 0.0  ;;  %v9352_v49 = vadd.f32 %v8853_v61, %v11498_v37  ;;  %v3821_v3 = vpop.f32.mrb[7].mxu0  ;;  %v4356_v23 = vsel %vm13359_vm6, %v4296_v30, %v4297_v58  ;;  %vm13367_vm14 = vmmov %vm13362_vm12 }
 0x2ff   : > { %v3965_v18 = vmax.f32 %v9351_v22, 0.0  ;;  %v9353_v29 = vadd.f32 %v11498_v37, %v3821_v3  ;;  %v11537_v52 = vpack.c.bf16 %v4355_v9, %v4356_v23 }
 0x300   : > { %13364 = vst [vmem:[#allocation37_spill] sm:$0xff] %v11531_v42  ;;  %v3968_v34 = vmax.f32 %v9352_v49, 0.0  ;;  %v4301_v13 = vrot.slane %v3967_v11, 7  ;;  %v4976_v8 = vrot.slane %v3967_v11, 1 }
 0x301   : > { %v4299_v6 = vrot.slane %v3965_v18, 7  ;;  %v4974_v63 = vrot.slane %v3965_v18, 1  ;;  %v3966_v4 = vmax.f32 %v9353_v29, 0.0 }
 0x302   : > { %v4302_v55 = vrot.slane %v3968_v34, 7  ;;  %v4977_v17 = vrot.slane %v3968_v34, 1  ;;  %v11539_v43 = vpack.c.bf16 %v3968_v34, %v3967_v11 }
 0x303   : > { %v4300_v47 = vrot.slane %v3966_v4, 7  ;;  %v4975_v57 = vrot.slane %v3966_v4, 1  ;;  %v8856_v46 = vpop.f32.mrb[8].mxu0  ;;  %v4354_v58 = vsel %vm13365_vm11, %v4298_v54, %v4299_v6  ;;  %v11543_v30 = vpack.c.bf16 %v3966_v4, %v3965_v18  ;;  %vm13368_vm11 = vmmov %vm13359_vm6 }
 0x304   : > { %v9354_v9 = vadd.f32 %v8856_v46, %v11498_v37  ;;  %v3834_v21 = vpop.f32.mrb[9].mxu0  ;;  %v4351_v45 = vsel %vm13366_vm9, %v4301_v13, %v4302_v55  ;;  %v5029_v22 = vsel %vm13362_vm12, %v4973_v36, %v4974_v63  ;;  %v5026_v61 = vsel %vm13367_vm14, %v4976_v8, %v4977_v17  ;;  %vm13370_vm9 = vmmov %vm13362_vm12 }
 0x305   : > { %v9355_v11 = vadd.f32 %v11498_v37, %v3834_v21  ;;  %v8857_v49 = vpop.f32.mrb[10].mxu0  ;;  %v4353_v54 = vsel %vm13359_vm6, %v4299_v6, %v4300_v47  ;;  %v4352_v3 = vsel %vm13368_vm11, %v4300_v47, %v4301_v13  ;;  %v11557_v23 = vpack.c.bf16 %v5029_v22, %v5030_v31  ;;  %vm13371_vm12 = vmmov %vm13370_vm9 }
 0x306   : > { %v3971_v18 = vmax.f32 %v9354_v9, 0.0  ;;  %v9356_v29 = vadd.f32 %v8857_v49, %v11498_v37  ;;  %v3837_v34 = vpop.f32.mrb[11].mxu0  ;;  %v11560_v4 = vpack.c.bf16 %v4353_v54, %v4354_v58  ;;  %v11562_v36 = vpack.c.bf16 %v4351_v45, %v4352_v3  ;;  %vm13373_vm14 = vmmov %vm13359_vm6 }
 0x307   : > { %13369 = vst [vmem:[#allocation42_spill] sm:$0xff] %v11557_v23  ;;  %v3969_v46 = vmax.f32 %v9355_v11, 0.0  ;;  %v9357_v21 = vadd.f32 %v11498_v37, %v3837_v34  ;;  %v5027_v19 = vsel %vm13370_vm9, %v4975_v57, %v4976_v8  ;;  %v5028_v6 = vsel %vm13371_vm12, %v4974_v63, %v4975_v57  ;;  %vm13374_vm11 = vmmov %vm13370_vm9 }
 0x308   : > { %v3972_v13 = vmax.f32 %v9356_v29, 0.0  ;;  %v11569_v31 = vpack.c.bf16 %v5027_v19, %v5028_v6  ;;  %v4305_v47 = vrot.slane %v3971_v18, 7  ;;  %v4980_v58 = vrot.slane %v3971_v18, 1  ;;  %vm13375_vm12 = vmmov %vm13359_vm6 }
 0x309   : > { %v4303_v9 = vrot.slane %v3969_v46, 7  ;;  %v4978_v22 = vrot.slane %v3969_v46, 1  ;;  %v3970_v49 = vmax.f32 %v9357_v21, 0.0 }
 0x30a   : > { %13372 = vst [vmem:[#allocation39_spill] sm:$0xff] %v11569_v31  ;;  %v4306_v54 = vrot.slane %v3972_v13, 7  ;;  %v4981_v45 = vrot.slane %v3972_v13, 1  ;;  %v11571_v3 = vpack.c.bf16 %v3972_v13, %v3971_v18 }
 0x30b   : > { %v4304_v11 = vrot.slane %v3970_v49, 7  ;;  %v4979_v34 = vrot.slane %v3970_v49, 1  ;;  %v8860_v53 = vpop.f32.mrb[12].mxu0  ;;  %v4350_v8 = vsel %vm13373_vm14, %v4302_v55, %v4303_v9  ;;  %v11575_v25 = vpack.c.bf16 %v3970_v49, %v3969_v46  ;;  %vm13376_vm14 = vmmov %vm13359_vm6 }
 0x30c   : > { %v9358_v19 = vadd.f32 %v8860_v53, %v11498_v37  ;;  %v3850_v63 = vpop.f32.mrb[13].mxu0  ;;  %v4347_v57 = vsel %vm13359_vm6, %v4305_v47, %v4306_v54  ;;  %v5025_v29 = vsel %vm13374_vm11, %v4977_v17, %v4978_v22  ;;  %v5022_v18 = vsel %vm13370_vm9, %v4980_v58, %v4981_v45  ;;  %vm13378_vm6 = vmmov %vm13370_vm9 }
 0x30d   : > { %v9359_v21 = vadd.f32 %v11498_v37, %v3850_v63  ;;  %v8861_v6 = vpop.f32.mrb[14].mxu0  ;;  %v4349_v55 = vsel %vm13375_vm12, %v4303_v9, %v4304_v11  ;;  %v4348_v46 = vsel %vm13376_vm14, %v4304_v11, %v4305_v47  ;;  %v11589_v53 = vpack.c.bf16 %v5025_v29, %v5026_v61  ;;  %vm13379_vm11 = vmmov %vm13378_vm6 }
 0x30e   : > { %v3975_v13 = vmax.f32 %v9358_v19, 0.0  ;;  %v9360_v49 = vadd.f32 %v8861_v6, %v11498_v37  ;;  %v3853_v7 = vpop.f32.mrb[15].mxu0  ;;  %v11592_v24 = vpack.c.bf16 %v4349_v55, %v4350_v8  ;;  %v11594_v17 = vpack.c.bf16 %v4347_v57, %v4348_v46  ;;  %vm13381_vm9 = vmmov %vm13375_vm12 }
 0x30f   : > { %13377 = vst [vmem:[#allocation43_spill] sm:$0xff] %v11589_v53  ;;  %v3973_v44 = vmax.f32 %v9359_v21, 0.0  ;;  %v9361_v63 = vadd.f32 %v11498_v37, %v3853_v7  ;;  %v5023_v12 = vsel %vm13378_vm6, %v4979_v34, %v4980_v58  ;;  %v5024_v9 = vsel %vm13379_vm11, %v4978_v22, %v4979_v34  ;;  %vm13382_vm12 = vmmov %vm13381_vm9 }
 0x310   : > { %v3976_v47 = vmax.f32 %v9360_v49, 0.0  ;;  %v11601_v61 = vpack.c.bf16 %v5023_v12, %v5024_v9  ;;  %v4309_v11 = vrot.slane %v3975_v13, 7  ;;  %v4984_v8 = vrot.slane %v3975_v13, 1  ;;  %vm13383_vm14 = vmmov %vm13378_vm6 }
 0x311   : > { %v4307_v19 = vrot.slane %v3973_v44, 7  ;;  %v4982_v29 = vrot.slane %v3973_v44, 1  ;;  %v3974_v6 = vmax.f32 %v9361_v63, 0.0  ;;  %vm13384_vm11 = vmmov %vm13381_vm9  ;;  %v13496_v62 = vld [vmem:[#allocation39_spill] sm:$0xff] }
 0x312   : > { %13380 = vst [vmem:[#allocation4_spill] sm:$0xff] %v11601_v61  ;;  %v4310_v55 = vrot.slane %v3976_v47, 7  ;;  %v4985_v57 = vrot.slane %v3976_v47, 1  ;;  %v11603_v46 = vpack.c.bf16 %v3976_v47, %v3975_v13 }
 0x313   : > { %v4308_v21 = vrot.slane %v3974_v6, 7  ;;  %v4983_v7 = vrot.slane %v3974_v6, 1  ;;  %v8864_v27 = vpop.f32.mrb[16].mxu0  ;;  %v4346_v58 = vsel %vm13381_vm9, %v4306_v54, %v4307_v19  ;;  %v11607_v1 = vpack.c.bf16 %v3974_v6, %v3973_v44 }
 0x314   : > { %v9362_v12 = vadd.f32 %v8864_v27, %v11498_v37  ;;  %v3866_v22 = vpop.f32.mrb[17].mxu0  ;;  %v4343_v34 = vsel %vm13382_vm12, %v4309_v11, %v4310_v55  ;;  %v5021_v49 = vsel %vm13383_vm14, %v4981_v45, %v4982_v29  ;;  %v5018_v13 = vsel %vm13378_vm6, %v4984_v8, %v4985_v57  ;;  %vm13386_vm12 = vmmov %vm13378_vm6 }
 0x315   : > { %v9363_v63 = vadd.f32 %v11498_v37, %v3866_v22  ;;  %v8865_v9 = vpop.f32.mrb[18].mxu0  ;;  %v4345_v54 = vsel %vm13384_vm11, %v4307_v19, %v4308_v21  ;;  %v4344_v44 = vsel %vm13381_vm9, %v4308_v21, %v4309_v11  ;;  %v11621_v27 = vpack.c.bf16 %v5021_v49, %v5022_v18  ;;  %vm13387_vm14 = vmmov %vm13378_vm6 }
 0x316   : > { %v3979_v47 = vmax.f32 %v9362_v12, 0.0  ;;  %v9364_v6 = vadd.f32 %v8865_v9, %v11498_v37  ;;  %v3869_v56 = vpop.f32.mrb[19].mxu0  ;;  %v11624_v2 = vpack.c.bf16 %v4345_v54, %v4346_v58  ;;  %v11626_v45 = vpack.c.bf16 %v4343_v34, %v4344_v44  ;;  %vm13389_vm6 = vmmov %vm13381_vm9 }
 0x317   : > { %13385 = vst [vmem:[#allocation44_spill] sm:$0xff] %v11621_v27  ;;  %v3977_v61 = vmax.f32 %v9363_v63, 0.0  ;;  %v9365_v22 = vadd.f32 %v11498_v37, %v3869_v56  ;;  %v5019_v0 = vsel %vm13386_vm12, %v4983_v7, %v4984_v8  ;;  %v5020_v19 = vsel %vm13387_vm14, %v4982_v29, %v4983_v7  ;;  %vm13390_vm11 = vmmov %vm13389_vm6 }
 0x318   : > { %v3980_v11 = vmax.f32 %v9364_v6, 0.0  ;;  %v11633_v18 = vpack.c.bf16 %v5019_v0, %v5020_v19  ;;  %v4313_v21 = vrot.slane %v3979_v47, 7  ;;  %v4988_v58 = vrot.slane %v3979_v47, 1  ;;  %vm13391_vm9 = vmmov %vm13386_vm12 }
 0x319   : > { %v4311_v12 = vrot.slane %v3977_v61, 7  ;;  %v4986_v49 = vrot.slane %v3977_v61, 1  ;;  %v3978_v9 = vmax.f32 %v9365_v22, 0.0  ;;  %vm13392_vm12 = vmmov %vm13391_vm9 }
 0x31a   : > { %13388 = vst [vmem:[#allocation45_spill] sm:$0xff] %v11633_v18  ;;  %v4314_v54 = vrot.slane %v3980_v11, 7  ;;  %v4989_v34 = vrot.slane %v3980_v11, 1  ;;  %v11635_v44 = vpack.c.bf16 %v3980_v11, %v3979_v47  ;;  %vm13393_vm14 = vmmov %vm13389_vm6 }
 0x31b   : > { %v4312_v63 = vrot.slane %v3978_v9, 7  ;;  %v4987_v56 = vrot.slane %v3978_v9, 1  ;;  %v8868_v27 = vpop.f32.mrb[20].mxu0  ;;  %v4342_v8 = vsel %vm13389_vm6, %v4310_v55, %v4311_v12  ;;  %v11639_v39 = vpack.c.bf16 %v3978_v9, %v3977_v61 }
 0x31c   : > { %v9366_v0 = vadd.f32 %v8868_v27, %v11498_v37  ;;  %v3882_v29 = vpop.f32.mrb[21].mxu0  ;;  %v4339_v7 = vsel %vm13390_vm11, %v4313_v21, %v4314_v54  ;;  %v5017_v6 = vsel %vm13391_vm9, %v4985_v57, %v4986_v49  ;;  %v5014_v47 = vsel %vm13392_vm12, %v4988_v58, %v4989_v34  ;;  %vm13395_vm11 = vmmov %vm13391_vm9 }
 0x31d   : > { %v9367_v22 = vadd.f32 %v11498_v37, %v3882_v29  ;;  %v8869_v19 = vpop.f32.mrb[22].mxu0  ;;  %v4341_v55 = vsel %vm13393_vm14, %v4311_v12, %v4312_v63  ;;  %v4340_v61 = vsel %vm13389_vm6, %v4312_v63, %v4313_v21  ;;  %v11653_v27 = vpack.c.bf16 %v5017_v6, %v5018_v13  ;;  %vm13398_vm12 = vmmov %vm13389_vm6 }
 0x31e   : > { %v3983_v11 = vmax.f32 %v9366_v0, 0.0  ;;  %v9368_v9 = vadd.f32 %v8869_v19, %v11498_v37  ;;  %v3885_v18 = vpop.f32.mrb[23].mxu0  ;;  %v11656_v53 = vpack.c.bf16 %v4341_v55, %v4342_v8  ;;  %v11658_v57 = vpack.c.bf16 %v4339_v7, %v4340_v61  ;;  %vm13399_vm14 = vmmov %vm13389_vm6 }
 0x31f   : > { %13394 = vst [vmem:[#allocation49_spill] sm:$0xff] %v11653_v27  ;;  %v3981_v31 = vmax.f32 %v9367_v22, 0.0  ;;  %v9369_v29 = vadd.f32 %v11498_v37, %v3885_v18  ;;  %v5015_v59 = vsel %vm13395_vm11, %v4987_v56, %v4988_v58  ;;  %v5016_v12 = vsel %vm13391_vm9, %v4986_v49, %v4987_v56  ;;  %vm13400_vm6 = vmmov %vm13391_vm9 }
 0x320   : > { %v3984_v21 = vmax.f32 %v9368_v9, 0.0  ;;  %v11665_v13 = vpack.c.bf16 %v5015_v59, %v5016_v12  ;;  %v4317_v63 = vrot.slane %v3983_v11, 7  ;;  %v4992_v8 = vrot.slane %v3983_v11, 1  ;;  %vm13401_vm11 = vmmov %vm13400_vm6 }
 0x321   : > { %v4315_v0 = vrot.slane %v3981_v31, 7  ;;  %v4990_v6 = vrot.slane %v3981_v31, 1  ;;  %v3982_v19 = vmax.f32 %v9369_v29, 0.0  ;;  %vm13402_vm9 = vmmov %vm13398_vm12 }
 0x322   : > { %13396 = vst [vmem:[#allocation51_spill] sm:$0xff] %v11665_v13  ;;  %v4318_v55 = vrot.slane %v3984_v21, 7  ;;  %v4993_v7 = vrot.slane %v3984_v21, 1  ;;  %v11667_v61 = vpack.c.bf16 %v3984_v21, %v3983_v11 }
 0x323   : > { %v4316_v22 = vrot.slane %v3982_v19, 7  ;;  %v4991_v18 = vrot.slane %v3982_v19, 1  ;;  %v8872_v27 = vpop.f32.mrb[24].mxu0  ;;  %v4338_v58 = vsel %vm13398_vm12, %v4314_v54, %v4315_v0  ;;  %v11671_v35 = vpack.c.bf16 %v3982_v19, %v3981_v31  ;;  %vm13403_vm12 = vmmov %vm13402_vm9 }
 0x324   : > { %13397 = vst [vmem:[#allocation53_spill] sm:$0xff] %v11667_v61  ;;  %v9370_v59 = vadd.f32 %v8872_v27, %v11498_v37  ;;  %v3898_v49 = vpop.f32.mrb[25].mxu0  ;;  %v4335_v56 = vsel %vm13399_vm14, %v4317_v63, %v4318_v55  ;;  %v5013_v9 = vsel %vm13400_vm6, %v4989_v34, %v4990_v6  ;;  %v5010_v11 = vsel %vm13401_vm11, %v4992_v8, %v4993_v7  ;;  %vm13405_vm14 = vmmov %vm13400_vm6 }
 0x325   : > { %v9371_v29 = vadd.f32 %v11498_v37, %v3898_v49  ;;  %v8873_v12 = vpop.f32.mrb[26].mxu0  ;;  %v4337_v54 = vsel %vm13402_vm9, %v4315_v0, %v4316_v22  ;;  %v4336_v31 = vsel %vm13403_vm12, %v4316_v22, %v4317_v63  ;;  %v11685_v27 = vpack.c.bf16 %v5013_v9, %v5014_v47  ;;  %vm13408_vm11 = vmmov %vm13402_vm9 }
 0x326   : > { %v3987_v21 = vmax.f32 %v9370_v59, 0.0  ;;  %v9372_v19 = vadd.f32 %v8873_v12, %v11498_v37  ;;  %v3901_v13 = vpop.f32.mrb[27].mxu0  ;;  %v11688_v23 = vpack.c.bf16 %v4337_v54, %v4338_v58  ;;  %v11690_v34 = vpack.c.bf16 %v4335_v56, %v4336_v31  ;;  %vm13410_vm12 = vmmov %vm13400_vm6 }
 0x327   : > { %13404 = vst [vmem:[#allocation57_spill] sm:$0xff] %v11685_v27  ;;  %v3985_v42 = vmax.f32 %v9371_v29, 0.0  ;;  %v9373_v49 = vadd.f32 %v11498_v37, %v3901_v13  ;;  %v5011_v48 = vsel %vm13405_vm14, %v4991_v18, %v4992_v8  ;;  %v5012_v0 = vsel %vm13400_vm6, %v4990_v6, %v4991_v18  ;;  %vm13411_vm14 = vmmov %vm13400_vm6 }
 0x328   : > { %v3988_v63 = vmax.f32 %v9372_v19, 0.0  ;;  %v11697_v47 = vpack.c.bf16 %v5011_v48, %v5012_v0  ;;  %v4321_v22 = vrot.slane %v3987_v21, 7  ;;  %v4996_v58 = vrot.slane %v3987_v21, 1  ;;  %vm13412_vm6 = vmmov %vm13402_vm9 }
 0x329   : > { %v4319_v59 = vrot.slane %v3985_v42, 7  ;;  %v4994_v9 = vrot.slane %v3985_v42, 1  ;;  %v3986_v12 = vmax.f32 %v9373_v49, 0.0 }
 0x32a   : > { %13406 = vst [vmem:[#allocation55_spill] sm:$0xff] %v11697_v47  ;;  %v4322_v54 = vrot.slane %v3988_v63, 7  ;;  %v4997_v56 = vrot.slane %v3988_v63, 1  ;;  %v11699_v31 = vpack.c.bf16 %v3988_v63, %v3987_v21 }
 0x32b   : > { %v4320_v29 = vrot.slane %v3986_v12, 7  ;;  %v4995_v13 = vrot.slane %v3986_v12, 1  ;;  %v8876_v27 = vpop.f32.mrb[28].mxu0  ;;  %v4334_v8 = vsel %vm13408_vm11, %v4318_v55, %v4319_v59  ;;  %v11703_v38 = vpack.c.bf16 %v3986_v12, %v3985_v42  ;;  %vm13413_vm11 = vmmov %vm13412_vm6 }
 0x32c   : > { %13407 = vst [vmem:[#allocation61_spill] sm:$0xff] %v11699_v31  ;;  %v9374_v48 = vadd.f32 %v8876_v27, %v11498_v37  ;;  %v3914_v6 = vpop.f32.mrb[29].mxu0  ;;  %v4331_v18 = vsel %vm13402_vm9, %v4321_v22, %v4322_v54  ;;  %v5009_v19 = vsel %vm13410_vm12, %v4993_v7, %v4994_v9  ;;  %v5006_v21 = vsel %vm13411_vm14, %v4996_v58, %v4997_v56  ;;  %vm13414_vm9 = vmmov %vm13410_vm12 }
 0x32d   : > { %13409 = vst [vmem:[#allocation3_spill] sm:$0xff] %v11703_v38  ;;  %v9375_v49 = vadd.f32 %v11498_v37, %v3914_v6  ;;  %v8877_v0 = vpop.f32.mrb[30].mxu0  ;;  %v4333_v55 = vsel %vm13412_vm6, %v4319_v59, %v4320_v29  ;;  %v4332_v42 = vsel %vm13413_vm11, %v4320_v29, %v4321_v22  ;;  %v11717_v27 = vpack.c.bf16 %v5009_v19, %v5010_v11  ;;  %vm13415_vm12 = vmmov %vm13414_vm9 }
 0x32e   : > { %v3991_v63 = vmax.f32 %v9374_v48, 0.0  ;;  %v9376_v12 = vadd.f32 %v8877_v0, %v11498_v37  ;;  %v3917_v47 = vpop.f32.mrb[31].mxu0  ;;  %v11720_v31 = vpack.c.bf16 %v4333_v55, %v4334_v8  ;;  %v11722_v7 = vpack.c.bf16 %v4331_v18, %v4332_v42  ;;  %vm13417_vm14 = vmmov %vm13412_vm6 }
 0x32f   : > { %v3989_v38 = vmax.f32 %v9375_v49, 0.0  ;;  %v9377_v6 = vadd.f32 %v11498_v37, %v3917_v47  ;;  %v5007_v61 = vsel %vm13414_vm9, %v4995_v13, %v4996_v58  ;;  %v5008_v59 = vsel %vm13415_vm12, %v4994_v9, %v4995_v13  ;;  %vm13423_vm10 = vmmov %vm13415_vm12 }
 0x330   : > { %v3992_v22 = vmax.f32 %v9376_v12, 0.0  ;;  %v11729_v11 = vpack.c.bf16 %v5007_v61, %v5008_v59  ;;  %v4325_v29 = vrot.slane %v3991_v63, 7  ;;  %v5000_v8 = vrot.slane %v3991_v63, 1  ;;  %v10091_v12 = vld [vmem:[%s10175_s10 + $0x28] sm:$0xff]  }
 0x331   : > { %v4323_v48 = vrot.slane %v3989_v38, 7  ;;  %v4998_v19 = vrot.slane %v3989_v38, 1  ;;  %v3990_v0 = vmax.f32 %v9377_v6, 0.0  ;;  %v13418_v9 = vrot.slane %v11503_v15, 7 }
 0x332   : > { %v4326_v55 = vrot.slane %v3992_v22, 7  ;;  %v5001_v18 = vrot.slane %v3992_v22, 1  ;;  %v11731_v42 = vpack.c.bf16 %v3992_v22, %v3991_v63  ;;  %vm12895_vm11 = vmmov 1  }
 0x333   : > { %v4324_v49 = vrot.slane %v3990_v0, 7  ;;  %v4999_v37 = vrot.slane %v3990_v0, 1  ;;  %v4330_v47 = vsel %vm13417_vm14, %v4322_v54, %v4323_v48  ;;  %v11735_v58 = vpack.c.bf16 %v3990_v0, %v3989_v38  ;;  %vm11744_vm9 = vmpackc.low %vm12895_vm11, %vm13232_vm0 }
 0x334   : > { %13416 = vst [vmem:[#allocation9_spill] sm:$0xff] %v11731_v42  ;;  %v4358_v61 = vsel %vm13412_vm6, %v4326_v55, %v13418_v9  ;;  %v5005_v63 = vsel %vm13415_vm12, %v4997_v56, %v4998_v19  ;;  %vm13422_vm14 = vmmov %vm13412_vm6  ;;  %v5002_v54 = vsel %vm13423_vm10, %v5000_v8, %v5001_v18  ;;  %v13425_v22 = vmov 0  ;;  %v9992_v56 = vld [vmem:[%s12599_s3 + $0x48] sm:$0xff]  }
 0x335   : > { %v4327_v38 = vsel %vm13422_vm14, %v4325_v29, %v4326_v55  ;;  %v11755_v6 = vpack.c.bf16 %v11522_v41, %v4358_v61  ;;  %vm11760_vm6 = vmpackc.low %vm12895_vm11, %vm10211_vm4  ;;  %v11769_v55 = vpack.c.bf16 %v5005_v63, %v5006_v21  ;;  %v5003_v41 = vsel %vm13423_vm10, %v4999_v37, %v5000_v8 }
 0x336   : > { %v13426_v22 = vsel %vm11760_vm6, 4294967295, %v13425_v22  ;;  %vm13427_vm0 = vmmov %vm13422_vm14  ;;  %v13430_v59 = vrot.slane %v11503_v15, 1  ;;  %v9993_v15 = vld [vmem:[%s12599_s3 + $0x50] sm:$0xff]   ;;  %v13445_v63 = vmov 0 }
 0x337   : > { %v4329_v0 = vsel %vm13427_vm0, %v4323_v48, %v4324_v49  ;;  %vm13428_vm12 = vmmov %vm13423_vm10  ;;  %8929 = vmatmul.mubr.msk.bf16.vlgmr.msra.gmra.mrb[16].mxu1 %vm11744_vm9, %v11755_v6 }
 0x338   : > { %v11773_v9 = vpack.c.bf16 %v4329_v0, %v4330_v47  ;;  %v5004_v61 = vsel %vm13428_vm12, %v4998_v19, %v4999_v37  ;;  %vm13429_vm4 = vmmov %vm13427_vm0  ;;  %8961 = vmatpush3.bf16.msra.mxu1 %v11492_v10  ;;  %8932 = vmatprep.mubr.msk.bf16.mxu1 %vm11760_vm6, %v11537_v52  ;;  %v13434_v19 = vmov 0  ;;  %v13438_v10 = vmov 0  ;;  %v13440_v37 = vld [vmem:[#allocation14_spill] sm:$0xff]  ;;  %v9998_v0 = vld [vmem:[%s12599_s3 + $0x78] sm:$0xff]  }
 0x339   : > { %v4328_v13 = vsel %vm13429_vm4, %v4324_v49, %v4325_v29  ;;  %vm13431_vm14 = vmmov %vm13423_vm10  ;;  %v11786_v21 = vpack.c.bf16 %v5003_v41, %v5004_v61  ;;  %8962 = vmatprep.subr.bf16.mxu1 %v9992_v56  ;;  %v9995_v49 = vld [vmem:[%s12599_s3 + $0x60] sm:$0xff]   ;;  %v13442_v47 = vmov 0  ;;  %v13457_v41 = vmov 0  ;;  %v10004_v29 = vld [vmem:[%s12599_s3 + $0xa8] sm:$0xff]  }
 0x33a   : > { %v5033_v42 = vsel %vm13431_vm14, %v5001_v18, %v13430_v59  ;;  %v11788_v48 = vpack.c.bf16 %v4327_v38, %v4328_v13  ;;  %vm11802_vm0 = vmpackc.low %vm12895_vm11, %vm10253_vm5  ;;  %v13436_v18 = vld [vmem:[#allocation13_spill] sm:$0xff]  ;;  %vm13441_vm5 = vnez %v13440_v37  ;;  %vm13444_vm14 = vnez %v13251_v14  ;;  %v9996_v38 = vld [vmem:[%s12599_s3 + $0x68] sm:$0xff]  }
 0x33b   : > { %v11790_v8 = vpack.c.bf16 %v5033_v42, %v5002_v54  ;;  %v13435_v19 = vsel %vm11802_vm0, 4294967295, %v13434_v19  ;;  %vm13437_vm10 = vnez %v13436_v18  ;;  %v9994_v42 = vld [vmem:[%s12599_s3 + $0x58] sm:$0xff]   ;;  %vm11828_vm4 = vmpackc.low %vm12895_vm11, %vm13441_vm5  ;;  %v9997_v14 = vld [vmem:[%s12599_s3 + $0x70] sm:$0xff]   ;;  %vm13447_vm5 = vnez %v13258_v5 }
 0x33c   : > { %8963 = vmatpush3.bf16.msra.mxu1 %v9992_v56  ;;  %vm11809_vm12 = vmpackc.low %vm12895_vm11, %vm13437_vm10  ;;  %v13443_v47 = vsel %vm11828_vm4, 4294967295, %v13442_v47  ;;  %v13448_v54 = vmov 0  ;;  %v13451_v56 = vmov 0  ;;  %v9999_v5 = vld [vmem:[%s12599_s3 + $0x80] sm:$0xff]   ;;  %v10001_v13 = vld [vmem:[%s12599_s3 + $0x90] sm:$0xff]  }
 0x33d   : > { %13432 = vst [vmem:[#allocation8_spill] sm:$0xff] %v11790_v8  ;;  %v13439_v10 = vsel %vm11809_vm12, 4294967295, %v13438_v10  ;;  %8964 = vmatprep.subr.bf16.mxu1 %v9993_v15  ;;  %vm11835_vm10 = vmpackc.low %vm12895_vm11, %vm13444_vm14  ;;  %v10002_v59 = vld [vmem:[%s12599_s3 + $0x98] sm:$0xff]   ;;  %v10005_v18 = vld [vmem:[%s12599_s3 + $0xb0] sm:$0xff]  }
 0x33e   : > { %v13446_v63 = vsel %vm11835_vm10, 4294967295, %v13445_v63  ;;  %vm11854_vm14 = vmpackc.low %vm12895_vm11, %vm13447_vm5  ;;  %v13475_v37 = vld [vmem:[#allocation53_spill] sm:$0xff]  ;;  %v13502_v8 = vld [vmem:[#allocation68_spill] sm:$0xff] }
 0x33f   : > { %8933 = vmatmul.mubr.msk.bf16.gmra.mrb[20].mxu1 %vm11802_vm0, %v11560_v4  ;;  %v13449_v54 = vsel %vm11854_vm14, 4294967295, %v13448_v54  ;;  %v10027_v61 = vld [vmem:[%s12599_s3 + $0x160] sm:$0xff]  }
 0x340   : > { %8936 = vmatprep.mubr.msk.bf16.mxu1 %vm11809_vm12, %v11562_v36  ;;  %8965 = vmatpush3.bf16.msra.mxu1 %v9993_v15  ;;  %v10003_v15 = vld [vmem:[%s12599_s3 + $0xa0] sm:$0xff]  }
 0x341   : > { %8966 = vmatprep.subr.bf16.mxu1 %v9994_v42 }
 0x344   : > { %8967 = vmatpush3.bf16.msra.mxu1 %v9994_v42  ;;  %v10006_v42 = vld [vmem:[%s12599_s3 + $0xb8] sm:$0xff]  }
 0x345   : > { %8968 = vmatprep.subr.bf16.mxu1 %v9995_v49 }
 0x347   : > { %8937 = vmatmul.mubr.msk.bf16.gmra.mrb[24].mxu1 %vm11828_vm4, %v11592_v24  ;;  %vm13450_vm4 = vnez %v13261_v26  ;;  %v13454_v26 = vmov 0 }
 0x348   : > { %8940 = vmatprep.mubr.msk.bf16.mxu1 %vm11835_vm10, %v11594_v17  ;;  %8969 = vmatpush3.bf16.msra.mxu1 %v9995_v49  ;;  %vm11861_vm12 = vmpackc.low %vm12895_vm11, %vm13450_vm4  ;;  %vm13453_vm4 = vnez %v13266_v51  ;;  %v10007_v49 = vld [vmem:[%s12599_s3 + $0xc0] sm:$0xff]  }
 0x349   : > { %8970 = vmatprep.subr.bf16.mxu1 %v9996_v38  ;;  %v13452_v56 = vsel %vm11861_vm12, 4294967295, %v13451_v56  ;;  %vm11880_vm5 = vmpackc.low %vm12895_vm11, %vm13453_vm4  ;;  %vm13459_vm4 = vnez %v13273_v20  ;;  %v13466_v20 = vmov 0 }
 0x34a   : > { %v13455_v26 = vsel %vm11880_vm5, 4294967295, %v13454_v26 }
 0x34c   : > { %8971 = vmatpush3.bf16.msra.mxu1 %v9996_v38  ;;  %v13476_v38 = vld [vmem:[#allocation3_spill] sm:$0xff] }
 0x34d   : > { %8972 = vmatprep.subr.bf16.mxu1 %v9997_v14 }
 0x34f   : > { %8941 = vmatmul.mubr.msk.bf16.gmra.mrb[28].mxu1 %vm11854_vm14, %v11624_v2  ;;  %vm13456_vm14 = vnez %v13268_v40  ;;  %v13463_v40 = vmov 0 }
 0x350   : > { %8944 = vmatprep.mubr.msk.bf16.mxu1 %vm11861_vm12, %v11626_v45  ;;  %8973 = vmatpush3.bf16.msra.mxu1 %v9997_v14  ;;  %vm11887_vm10 = vmpackc.low %vm12895_vm11, %vm13456_vm14  ;;  %vm13462_vm14 = vnez %v13275_v50  ;;  %v13469_v50 = vmov 0  ;;  %v13477_v14 = vld [vmem:[#allocation61_spill] sm:$0xff] }
 0x351   : > { %8974 = vmatprep.subr.bf16.mxu1 %v9998_v0  ;;  %v13458_v41 = vsel %vm11887_vm10, 4294967295, %v13457_v41  ;;  %vm11900_vm12 = vmpackc.low %vm12895_vm11, %vm13459_vm4  ;;  %vm13465_vm4 = vnez %v13279_v16  ;;  %v13471_v16 = vld [vmem:[#allocation47_spill] sm:$0xff] }
 0x352   : > { %vm11907_vm0 = vmpackc.low %vm12895_vm11, %vm13462_vm14  ;;  %vm13468_vm14 = vnez %v13281_v60  ;;  %v10000_v60 = vld [vmem:[%s12599_s3 + $0x88] sm:$0xff]  }
 0x353   : > { %v13464_v40 = vsel %vm11907_vm0, 4294967295, %v13463_v40 }
 0x354   : > { %8975 = vmatpush3.bf16.msra.mxu1 %v9998_v0  ;;  %v13508_v0 = vld [vmem:[#allocation44_spill] sm:$0xff] }
 0x355   : > { %9008 = vmatprep.subr.bf16.mxu1 %v9999_v5 }
 0x357   : > { %8945 = vmatmul.mubr.msk.bf16.gmra.mrb[0].mxu1 %vm11880_vm5, %v11656_v53  ;;  %vm11927_vm5 = vmpackc.low %vm12895_vm11, %vm13468_vm14 }
 0x358   : > { %8948 = vmatprep.mubr.msk.bf16.mxu1 %vm11887_vm10, %v11658_v57  ;;  %vm11920_vm10 = vmpackc.low %vm12895_vm11, %vm13465_vm4  ;;  %v13470_v50 = vsel %vm11927_vm5, 4294967295, %v13469_v50  ;;  %vm13472_vm4 = vnez %v13471_v16  ;;  %v10010_v16 = vld [vmem:[%s12599_s3 + $0xd8] sm:$0xff]  }
 0x359   : > { %v13467_v20 = vsel %vm11920_vm10, 4294967295, %v13466_v20  ;;  %vm11991_vm14 = vmpackc.low %vm10822_vm1, %vm12895_vm11 }
 0x35a   : > { %vm12017_vm1 = vmpackc.low %vm13178_vm8, %vm12895_vm11 }
 0x35b   : > { %vm12043_vm8 = vmpackc.low %vm13313_vm15, %vm12895_vm11 }
 0x35f   : > { %8949 = vmatmul.mubr.msk.bf16.gmra.mrb[4].mxu1 %vm11900_vm12, %v11688_v23 }
 0x360   : > { %8952 = vmatprep.mubr.msk.bf16.mxu1 %vm11907_vm0, %v11690_v34  ;;  %vm11940_vm0 = vmpackc.low %vm12895_vm11, %vm13472_vm4 }
 0x361   : > { %vm11998_vm4 = vmpackc.low %vm10827_vm2, %vm12895_vm11 }
 0x362   : > { %vm12024_vm2 = vmpackc.low %vm13309_vm7, %vm12895_vm11  ;;  %vm13503_vm7 = vnez %v13502_v8  ;;  %v10013_v8 = vld [vmem:[%s12599_s3 + $0xf0] sm:$0xff]  }
 0x367   : > { %8953 = vmatmul.mubr.msk.bf16.gmra.mrb[8].mxu1 %vm11920_vm10, %v11720_v31 }
 0x368   : > { %8956 = vmatprep.mubr.msk.bf16.mxu1 %vm11927_vm5, %v11722_v7 }
 0x36f   : > { %8957 = vmatmul.mubr.msk.bf16.gmra.mrb[12].mxu1 %vm11940_vm0, %v11773_v9 }
 0x370   : > { %8976 = vmatprep.mubr.bf16.mxu1 %v13285_v33 }
 0x377   : > { %8977 = vmatmul.mubr.bf16.vlgmr.msra.gmra.mrb[16].mxu1 %v11511_v28 }
 0x378   : > { %9009 = vmatpush3.bf16.msra.mxu1 %v9999_v5  ;;  %8980 = vmatprep.mubr.bf16.mxu1 %v11507_v32  ;;  %v13479_v5 = vmov 0 }
 0x379   : > { %9010 = vmatprep.subr.bf16.mxu1 %v10000_v60  ;;  %v13480_v5 = vsel %vm11991_vm14, 4294967295, %v13479_v5 }
 0x37a   : > { %13481 = vst [vmem:[#allocation11_spill] sm:$0xff] %v13480_v5 }
 0x37c   : > { %9011 = vmatpush3.bf16.msra.mxu1 %v10000_v60  ;;  %v13483_v60 = vmov 0 }
 0x37d   : > { %9012 = vmatprep.subr.bf16.mxu1 %v10001_v13  ;;  %v13484_v60 = vsel %vm11998_vm4, 4294967295, %v13483_v60 }
 0x37e   : > { %13485 = vst [vmem:[#allocation15_spill] sm:$0xff] %v13484_v60  ;;  %v10035_v60 = vld [vmem:[%s12599_s3 + $0x1a0] sm:$0xff]  }
 0x37f   : > { %8981 = vmatmul.mubr.bf16.gmra.mrb[20].mxu1 %v11543_v30 }
 0x380   : > { %8984 = vmatprep.mubr.bf16.mxu1 %v11539_v43  ;;  %9013 = vmatpush3.bf16.msra.mxu1 %v10001_v13  ;;  %v10008_v13 = vld [vmem:[%s12599_s3 + $0xc8] sm:$0xff]  }
 0x381   : > { %9014 = vmatprep.subr.bf16.mxu1 %v10002_v59 }
 0x384   : > { %9015 = vmatpush3.bf16.msra.mxu1 %v10002_v59  ;;  %v13486_v59 = vld [vmem:[#allocation37_spill] sm:$0xff] }
 0x385   : > { %9016 = vmatprep.subr.bf16.mxu1 %v10003_v15 }
 0x387   : > { %8985 = vmatmul.mubr.bf16.gmra.mrb[24].mxu1 %v11575_v25 }
 0x388   : > { %8988 = vmatprep.mubr.bf16.mxu1 %v11571_v3  ;;  %9017 = vmatpush3.bf16.msra.mxu1 %v10003_v15  ;;  %v13487_v15 = vld [vmem:[#allocation42_spill] sm:$0xff] }
 0x389   : > { %9018 = vmatprep.subr.bf16.mxu1 %v10004_v29 }
 0x38c   : > { %9019 = vmatpush3.bf16.msra.mxu1 %v10004_v29  ;;  %v10009_v29 = vld [vmem:[%s12599_s3 + $0xd0] sm:$0xff]  }
 0x38d   : > { %9020 = vmatprep.subr.bf16.mxu1 %v10005_v18 }
 0x38f   : > { %8989 = vmatmul.mubr.bf16.gmra.mrb[28].mxu1 %v11607_v1 }
 0x390   : > { %8992 = vmatprep.mubr.bf16.mxu1 %v11603_v46  ;;  %9021 = vmatpush3.bf16.msra.mxu1 %v10005_v18  ;;  %v13497_v18 = vld [vmem:[#allocation43_spill] sm:$0xff] }
 0x391   : > { %9022 = vmatprep.subr.bf16.mxu1 %v10006_v42 }
 0x394   : > { %9023 = vmatpush3.bf16.msra.mxu1 %v10006_v42  ;;  %v13489_v42 = vmov 0 }
 0x395   : > { %9056 = vmatprep.subr.bf16.mxu1 %v10007_v49  ;;  %v13490_v42 = vsel %vm12017_vm1, 4294967295, %v13489_v42 }
 0x396   : > { %13491 = vst [vmem:[#allocation12_spill] sm:$0xff] %v13490_v42  ;;  %v13507_v42 = vld [vmem:[#allocation4_spill] sm:$0xff] }
 0x397   : > { %8993 = vmatmul.mubr.bf16.gmra.mrb[0].mxu1 %v11639_v39 }
 0x398   : > { %8996 = vmatprep.mubr.bf16.mxu1 %v11635_v44 }
 0x39f   : > { %8997 = vmatmul.mubr.bf16.gmra.mrb[4].mxu1 %v11671_v35 }
 0x3a0   : > { %9000 = vmatprep.mubr.bf16.mxu1 %v13475_v37 }
 0x3a7   : > { %9001 = vmatmul.mubr.bf16.gmra.mrb[8].mxu1 %v13476_v38 }
 0x3a8   : > { %9004 = vmatprep.mubr.bf16.mxu1 %v13477_v14 }
 0x3af   : > { %9005 = vmatmul.mubr.bf16.gmra.mrb[12].mxu1 %v11735_v58 }
 0x3b0   : > { %9024 = vmatprep.mubr.bf16.mxu1 %v13285_v33  ;;  %v13499_v33 = vmov 0 }
 0x3b1   : > { %v13500_v33 = vsel %vm12043_vm8, 4294967295, %v13499_v33 }
 0x3b2   : > { %13501 = vst [vmem:[#allocation17_spill] sm:$0xff] %v13500_v33  ;;  %v13514_v33 = vld [vmem:[#allocation70_spill] sm:$0xff] }
 0x3b7   : > { %9025 = vmatmul.mubr.msk.bf16.vlgmr.msra.gmra.mrb[16].mxu1 %vm11991_vm14, %v13486_v59 }
 0x3b8   : > { %9057 = vmatpush3.bf16.msra.mxu1 %v10007_v49  ;;  %9028 = vmatprep.mubr.msk.bf16.mxu1 %vm11998_vm4, %v13487_v15  ;;  %v13493_v49 = vmov 0 }
 0x3b9   : > { %9058 = vmatprep.subr.bf16.mxu1 %v10008_v13  ;;  %v13494_v49 = vsel %vm12024_vm2, 4294967295, %v13493_v49 }
 0x3ba   : > { %13495 = vst [vmem:[#allocation16_spill] sm:$0xff] %v13494_v49  ;;  %v13504_v49 = vmov 0 }
 0x3bc   : > { %9059 = vmatpush3.bf16.msra.mxu1 %v10008_v13  ;;  %v10011_v13 = vld [vmem:[%s12599_s3 + $0xe0] sm:$0xff]  }
 0x3bd   : > { %9060 = vmatprep.subr.bf16.mxu1 %v10009_v29 }
 0x3bf   : > { %9029 = vmatmul.mubr.msk.bf16.gmra.mrb[20].mxu1 %vm12017_vm1, %v13496_v62  ;;  %vm12050_vm1 = vmpackc.low %vm13503_vm7, %vm12895_vm11 }
 0x3c0   : > { %9032 = vmatprep.mubr.msk.bf16.mxu1 %vm12024_vm2, %v13497_v18  ;;  %9061 = vmatpush3.bf16.msra.mxu1 %v10009_v29  ;;  %v13505_v49 = vsel %vm12050_vm1, 4294967295, %v13504_v49  ;;  %v10012_v29 = vld [vmem:[%s12599_s3 + $0xe8] sm:$0xff]   ;;  %v13511_v18 = vmov 0 }
 0x3c1   : > { %9062 = vmatprep.subr.bf16.mxu1 %v10010_v16  ;;  %13506 = vst [vmem:[#allocation21_spill] sm:$0xff] %v13505_v49  ;;  %v13516_v49 = vmov 0  ;;  %v13579_v5 = vld [vmem:[#allocation16_spill] sm:$0xff] }
 0x3c4   : > { %9063 = vmatpush3.bf16.msra.mxu1 %v10010_v16  ;;  %v13509_v16 = vld [vmem:[#allocation69_spill] sm:$0xff] }
 0x3c5   : > { %9064 = vmatprep.subr.bf16.mxu1 %v10011_v13  ;;  %vm13510_vm15 = vnez %v13509_v16  ;;  %v13520_v16 = vld [vmem:[#allocation49_spill] sm:$0xff] }
 0x3c6   : > { %vm12069_vm7 = vmpackc.low %vm13510_vm15, %vm12895_vm11 }
 0x3c7   : > { %9033 = vmatmul.mubr.msk.bf16.gmra.mrb[24].mxu1 %vm12043_vm8, %v13507_v42  ;;  %v13512_v18 = vsel %vm12069_vm7, 4294967295, %v13511_v18  ;;  %vm13515_vm8 = vnez %v13514_v33  ;;  %v10015_v33 = vld [vmem:[%s12599_s3 + $0x100] sm:$0xff]   ;;  %v13522_v42 = vmov 0 }
 0x3c8   : > { %9036 = vmatprep.mubr.msk.bf16.mxu1 %vm12050_vm1, %v13508_v0  ;;  %9065 = vmatpush3.bf16.msra.mxu1 %v10011_v13  ;;  %13513 = vst [vmem:[#allocation19_spill] sm:$0xff] %v13512_v18  ;;  %vm12076_vm2 = vmpackc.low %vm13515_vm8, %vm12895_vm11  ;;  %v10014_v13 = vld [vmem:[%s12599_s3 + $0xf8] sm:$0xff]   ;;  %v13525_v18 = vld [vmem:[#allocation72_spill] sm:$0xff] }
 0x3c9   : > { %9066 = vmatprep.subr.bf16.mxu1 %v10012_v29  ;;  %v13517_v49 = vsel %vm12076_vm2, 4294967295, %v13516_v49  ;;  %v13519_v0 = vld [vmem:[#allocation45_spill] sm:$0xff]  ;;  %vm12095_vm8 = vmpackc.low %vm13325_vm13, %vm12895_vm11  ;;  %vm13526_vm15 = vnez %v13525_v18  ;;  %v13536_v18 = vld [vmem:[#allocation74_spill] sm:$0xff] }
 0x3ca   : > { %13518 = vst [vmem:[#allocation20_spill] sm:$0xff] %v13517_v49  ;;  %v13523_v42 = vsel %vm12095_vm8, 4294967295, %v13522_v42  ;;  %v13527_v49 = vmov 0  ;;  %vm12115_vm13 = vmpackc.low %vm13206_vm3, %vm12895_vm11 }
 0x3cb   : > { %13524 = vst [vmem:[#allocation23_spill] sm:$0xff] %v13523_v42  ;;  %v13541_v42 = vld [vmem:[#allocation55_spill] sm:$0xff] }
 0x3cc   : > { %9067 = vmatpush3.bf16.msra.mxu1 %v10012_v29  ;;  %v13542_v29 = vld [vmem:[#allocation76_spill] sm:$0xff] }
 0x3cd   : > { %9068 = vmatprep.subr.bf16.mxu1 %v10013_v8  ;;  %vm13543_vm3 = vnez %v13542_v29  ;;  %v13551_v29 = vld [vmem:[#allocation78_spill] sm:$0xff] }
 0x3cf   : > { %9037 = vmatmul.mubr.msk.bf16.gmra.mrb[28].mxu1 %vm12069_vm7, %v13519_v0  ;;  %vm12102_vm7 = vmpackc.low %vm13526_vm15, %vm12895_vm11  ;;  %vm13537_vm15 = vnez %v13536_v18  ;;  %v13538_v0 = vmov 0  ;;  %v13547_v18 = vld [vmem:[#allocation77_spill] sm:$0xff] }
 0x3d0   : > { %9040 = vmatprep.mubr.msk.bf16.mxu1 %vm12076_vm2, %v13520_v16  ;;  %9069 = vmatpush3.bf16.msra.mxu1 %v10013_v8  ;;  %v13528_v49 = vsel %vm12102_vm7, 4294967295, %v13527_v49  ;;  %v13530_v8 = vld [vmem:[#allocation51_spill] sm:$0xff]  ;;  %v13531_v16 = vld [vmem:[#allocation57_spill] sm:$0xff]  ;;  %vm12122_vm2 = vmpackc.low %vm13537_vm15, %vm12895_vm11  ;;  %vm13548_vm15 = vnez %v13547_v18 }
 0x3d1   : > { %9070 = vmatprep.subr.bf16.mxu1 %v10014_v13  ;;  %13529 = vst [vmem:[#allocation26_spill] sm:$0xff] %v13528_v49  ;;  %v13539_v0 = vsel %vm12122_vm2, 4294967295, %v13538_v0  ;;  %v13544_v49 = vmov 0  ;;  %v13555_v18 = vld [vmem:[#allocation80_spill] sm:$0xff] }
 0x3d2   : > { %13540 = vst [vmem:[#allocation25_spill] sm:$0xff] %v13539_v0  ;;  %v10089_v0 = vld [vmem:[%s10175_s10 + $0x18] sm:$0xff]  }
 0x3d4   : > { %9071 = vmatpush3.bf16.msra.mxu1 %v10014_v13  ;;  %v13533_v13 = vmov 0 }
 0x3d5   : > { %9104 = vmatprep.subr.bf16.mxu1 %v10015_v33  ;;  %v13534_v13 = vsel %vm12115_vm13, 4294967295, %v13533_v13 }
 0x3d6   : > { %13535 = vst [vmem:[#allocation18_spill] sm:$0xff] %v13534_v13  ;;  %v10041_v13 = vld [vmem:[%s12599_s3 + $0x1d0] sm:$0xff]  }
 0x3d7   : > { %9041 = vmatmul.mubr.msk.bf16.gmra.mrb[0].mxu1 %vm12095_vm8, %v13530_v8  ;;  %vm12142_vm8 = vmpackc.low %vm13548_vm15, %vm12895_vm11  ;;  %vm13556_vm15 = vnez %v13555_v18  ;;  %v10017_v18 = vld [vmem:[%s12599_s3 + $0x110] sm:$0xff]  }
 0x3d8   : > { %9044 = vmatprep.mubr.msk.bf16.mxu1 %vm12102_vm7, %v13531_v16  ;;  %vm12135_vm7 = vmpackc.low %vm13543_vm3, %vm12895_vm11  ;;  %vm13552_vm3 = vnez %v13551_v29  ;;  %v10016_v29 = vld [vmem:[%s12599_s3 + $0x108] sm:$0xff]   ;;  %v3995_v16 = vld [vmem:[%s12602_s6] sm:$0x1] }
 0x3d9   : > { %v13545_v49 = vsel %vm12135_vm7, 4294967295, %v13544_v49 }
 0x3da   : > { %13546 = vst [vmem:[#allocation27_spill] sm:$0xff] %v13545_v49  ;;  %v10040_v49 = vld [vmem:[%s12599_s3 + $0x1c8] sm:$0xff]  }
 0x3df   : > { %9045 = vmatmul.mubr.msk.bf16.gmra.mrb[4].mxu1 %vm12115_vm13, %v13541_v42  ;;  %vm12162_vm13 = vmpackc.low %vm12895_vm11, %vm13556_vm15  ;;  %vm13560_vm15 = vnez %v13439_v10 }
 0x3e0   : > { %9048 = vmatprep.mubr.msk.bf16.mxu1 %vm12122_vm2, %v11717_v27  ;;  %vm12155_vm2 = vmpackc.low %vm13552_vm3, %vm12895_vm11  ;;  %vm13559_vm3 = vnez %v13435_v19  ;;  %vm13561_vm11 = vnez %v13443_v47 }
 0x3e7   : > { %9049 = vmatmul.mubr.msk.bf16.gmra.mrb[8].mxu1 %vm12135_vm7, %v11729_v11 }
 0x3e8   : > { %9052 = vmatprep.mubr.msk.bf16.mxu1 %vm12142_vm8, %v11769_v55 }
 0x3ef   : > { %9053 = vmatmul.mubr.msk.bf16.gmra.mrb[12].mxu1 %vm12155_vm2, %v11786_v21 }
 0x3f0   : > { %9072 = vmatprep.mubr.msk.bf16.mxu1 %vm12162_vm13, %v11755_v6  ;;  %v10018_v6 = vld [vmem:[%s12599_s3 + $0x118] sm:$0xff]  }
 0x3f7   : > { %9073 = vmatmul.mubr.msk.bf16.vlgmr.msra.gmra.mrb[16].mxu1 %vm11744_vm9, %v11537_v52 }
 0x3f8   : > { %9105 = vmatpush3.bf16.msra.mxu1 %v10015_v33  ;;  %9076 = vmatprep.mubr.msk.bf16.mxu1 %vm11760_vm6, %v11560_v4  ;;  %v10019_v33 = vld [vmem:[%s12599_s3 + $0x120] sm:$0xff]   ;;  %vm13566_vm6 = vnez %v13458_v41 }
 0x3f9   : > { %9106 = vmatprep.subr.bf16.mxu1 %v10016_v29 }
 0x3fc   : > { %9107 = vmatpush3.bf16.msra.mxu1 %v10016_v29  ;;  %v10020_v29 = vld [vmem:[%s12599_s3 + $0x128] sm:$0xff]  }
 0x3fd   : > { %9108 = vmatprep.subr.bf16.mxu1 %v10017_v18 }
 0x3ff   : > { %9077 = vmatmul.mubr.msk.bf16.gmra.mrb[20].mxu1 %vm13559_vm3, %v11562_v36  ;;  %vm13562_vm3 = vnez %v13446_v63 }
 0x400   : > { %9080 = vmatprep.mubr.msk.bf16.mxu1 %vm13560_vm15, %v11592_v24  ;;  %9109 = vmatpush3.bf16.msra.mxu1 %v10017_v18  ;;  %v10021_v18 = vld [vmem:[%s12599_s3 + $0x130] sm:$0xff]   ;;  %vm13563_vm15 = vnez %v13449_v54  ;;  %v13637_v54 = vld [vmem:[#allocation18_spill] sm:$0xff] }
 0x401   : > { %9110 = vmatprep.subr.bf16.mxu1 %v10018_v6 }
 0x404   : > { %9111 = vmatpush3.bf16.msra.mxu1 %v10018_v6  ;;  %v10022_v6 = vld [vmem:[%s12599_s3 + $0x138] sm:$0xff]  }
 0x405   : > { %9112 = vmatprep.subr.bf16.mxu1 %v10019_v33 }
 0x407   : > { %9081 = vmatmul.mubr.msk.bf16.gmra.mrb[24].mxu1 %vm13561_vm11, %v11594_v17  ;;  %vm13564_vm11 = vnez %v13452_v56 }
 0x408   : > { %9084 = vmatprep.mubr.msk.bf16.mxu1 %vm13562_vm3, %v11624_v2  ;;  %9113 = vmatpush3.bf16.msra.mxu1 %v10019_v33  ;;  %v10023_v33 = vld [vmem:[%s12599_s3 + $0x140] sm:$0xff]   ;;  %vm13565_vm3 = vnez %v13455_v26 }
 0x409   : > { %9114 = vmatprep.subr.bf16.mxu1 %v10020_v29 }
 0x40c   : > { %9115 = vmatpush3.bf16.msra.mxu1 %v10020_v29  ;;  %v10024_v29 = vld [vmem:[%s12599_s3 + $0x148] sm:$0xff]  }
 0x40d   : > { %9116 = vmatprep.subr.bf16.mxu1 %v10021_v18 }
 0x40f   : > { %9085 = vmatmul.mubr.msk.bf16.gmra.mrb[28].mxu1 %vm13563_vm15, %v11626_v45 }
 0x410   : > { %9088 = vmatprep.mubr.msk.bf16.mxu1 %vm13564_vm11, %v11656_v53  ;;  %9117 = vmatpush3.bf16.msra.mxu1 %v10021_v18  ;;  %vm13567_vm11 = vnez %v13464_v40  ;;  %v10025_v18 = vld [vmem:[%s12599_s3 + $0x150] sm:$0xff]  }
 0x411   : > { %9118 = vmatprep.subr.bf16.mxu1 %v10022_v6 }
 0x414   : > { %9119 = vmatpush3.bf16.msra.mxu1 %v10022_v6  ;;  %v10028_v6 = vld [vmem:[%s12599_s3 + $0x168] sm:$0xff]  }
 0x415   : > { %9152 = vmatprep.subr.bf16.mxu1 %v10023_v33 }
 0x417   : > { %9089 = vmatmul.mubr.msk.bf16.gmra.mrb[0].mxu1 %vm13565_vm3, %v11658_v57 }
 0x418   : > { %9092 = vmatprep.mubr.msk.bf16.mxu1 %vm13566_vm6, %v11688_v23 }
 0x41f   : > { %9093 = vmatmul.mubr.msk.bf16.gmra.mrb[4].mxu1 %vm11900_vm12, %v11690_v34 }
 0x420   : > { %9096 = vmatprep.mubr.msk.bf16.mxu1 %vm13567_vm11, %v11720_v31 }
 0x427   : > { %9097 = vmatmul.mubr.msk.bf16.gmra.mrb[8].mxu1 %vm11920_vm10, %v11722_v7 }
 0x428   : > { %9100 = vmatprep.mubr.msk.bf16.mxu1 %vm11927_vm5, %v11773_v9 }
 0x42f   : > { %9101 = vmatmul.mubr.msk.bf16.gmra.mrb[12].mxu1 %vm11940_vm0, %v11788_v48  ;;  %vm13568_vm0 = vmmov 1  }
 0x430   : > { %9120 = vmatprep.mubr.bf16.mxu1 %v11511_v28  ;;  %v10026_v28 = vld [vmem:[%s12599_s3 + $0x158] sm:$0xff]  }
 0x437   : > { %9121 = vmatmul.mubr.bf16.vlgmr.msra.gmra.mrb[16].mxu1 %v11507_v32 }
 0x438   : > { %9153 = vmatpush3.bf16.msra.mxu1 %v10023_v33  ;;  %9124 = vmatprep.mubr.bf16.mxu1 %v11543_v30  ;;  %v10029_v33 = vld [vmem:[%s12599_s3 + $0x170] sm:$0xff]  }
 0x439   : > { %9154 = vmatprep.subr.bf16.mxu1 %v10024_v29 }
 0x43c   : > { %9155 = vmatpush3.bf16.msra.mxu1 %v10024_v29  ;;  %v10030_v29 = vld [vmem:[%s12599_s3 + $0x178] sm:$0xff]  }
 0x43d   : > { %9156 = vmatprep.subr.bf16.mxu1 %v10025_v18 }
 0x43f   : > { %9125 = vmatmul.mubr.bf16.gmra.mrb[20].mxu1 %v11539_v43 }
 0x440   : > { %9128 = vmatprep.mubr.bf16.mxu1 %v11575_v25  ;;  %9157 = vmatpush3.bf16.msra.mxu1 %v10025_v18  ;;  %v10031_v18 = vld [vmem:[%s12599_s3 + $0x180] sm:$0xff]  }
 0x441   : > { %9158 = vmatprep.subr.bf16.mxu1 %v10026_v28 }
 0x444   : > { %9159 = vmatpush3.bf16.msra.mxu1 %v10026_v28  ;;  %v13569_v28 = vld [vmem:[#allocation7_spill] sm:$0xff] }
 0x445   : > { %9160 = vmatprep.subr.bf16.mxu1 %v10027_v61  ;;  %vm13570_vm5 = vnez %v13569_v28  ;;  %v13575_v28 = vld [vmem:[#allocation43_spill] sm:$0xff] }
 0x446   : > { %vm12283_vm10 = vmpackc.low %vm13570_vm5, %vm13568_vm0  ;;  %vm13580_vm0 = vnez %v13579_v5  ;;  %v13586_v5 = vld [vmem:[#allocation49_spill] sm:$0xff] }
 0x447   : > { %9129 = vmatmul.mubr.bf16.gmra.mrb[24].mxu1 %v11571_v3 }
 0x448   : > { %9132 = vmatprep.mubr.bf16.mxu1 %v11607_v1  ;;  %9161 = vmatpush3.bf16.msra.mxu1 %v10027_v61  ;;  %v13571_v61 = vmov 0 }
 0x449   : > { %9162 = vmatprep.subr.bf16.mxu1 %v10028_v6  ;;  %v13572_v61 = vsel %vm12283_vm10, 4294967295, %v13571_v61 }
 0x44a   : > { %13573 = vst [vmem:[#allocation29_spill] sm:$0xff] %v13572_v61  ;;  %v13576_v61 = vld [vmem:[#allocation12_spill] sm:$0xff] }
 0x44b   : > { %vm13577_vm5 = vnez %v13576_v61  ;;  %v13584_v61 = vld [vmem:[#allocation45_spill] sm:$0xff] }
 0x44c   : > { %9163 = vmatpush3.bf16.msra.mxu1 %v10028_v6  ;;  %v13574_v6 = vld [vmem:[#allocation9_spill] sm:$0xff] }
 0x44d   : > { %9164 = vmatprep.subr.bf16.mxu1 %v10029_v33 }
 0x44f   : > { %9133 = vmatmul.mubr.bf16.gmra.mrb[28].mxu1 %v11603_v46 }
 0x450   : > { %9136 = vmatprep.mubr.bf16.mxu1 %v11639_v39  ;;  %9165 = vmatpush3.bf16.msra.mxu1 %v10029_v33  ;;  %v10032_v33 = vld [vmem:[%s12599_s3 + $0x188] sm:$0xff]  }
 0x451   : > { %9166 = vmatprep.subr.bf16.mxu1 %v10030_v29 }
 0x454   : > { %9167 = vmatpush3.bf16.msra.mxu1 %v10030_v29  ;;  %v10033_v29 = vld [vmem:[%s12599_s3 + $0x190] sm:$0xff]  }
 0x455   : > { %9200 = vmatprep.subr.bf16.mxu1 %v10031_v18 }
 0x457   : > { %9137 = vmatmul.mubr.bf16.gmra.mrb[0].mxu1 %v11635_v44 }
 0x458   : > { %9140 = vmatprep.mubr.bf16.mxu1 %v11671_v35 }
 0x45f   : > { %9141 = vmatmul.mubr.bf16.gmra.mrb[4].mxu1 %v13475_v37 }
 0x460   : > { %9144 = vmatprep.mubr.bf16.mxu1 %v13476_v38 }
 0x467   : > { %9145 = vmatmul.mubr.bf16.gmra.mrb[8].mxu1 %v13477_v14 }
 0x468   : > { %9148 = vmatprep.mubr.bf16.mxu1 %v11735_v58 }
 0x46f   : > { %9149 = vmatmul.mubr.bf16.gmra.mrb[12].mxu1 %v13574_v6 }
 0x470   : > { %9168 = vmatprep.mubr.msk.bf16.mxu1 %vm12283_vm10, %v13486_v59  ;;  %v10034_v59 = vld [vmem:[%s12599_s3 + $0x198] sm:$0xff]  }
 0x477   : > { %9169 = vmatmul.mubr.msk.bf16.vlgmr.msra.gmra.mrb[16].mxu1 %vm11991_vm14, %v13487_v15  ;;  %v13582_v15 = vld [vmem:[#allocation17_spill] sm:$0xff] }
 0x478   : > { %9201 = vmatpush3.bf16.msra.mxu1 %v10031_v18  ;;  %9172 = vmatprep.mubr.msk.bf16.mxu1 %vm11998_vm4, %v13496_v62  ;;  %v13578_v18 = vld [vmem:[#allocation4_spill] sm:$0xff]  ;;  %vm13583_vm4 = vnez %v13582_v15  ;;  %v13592_v15 = vld [vmem:[#allocation23_spill] sm:$0xff] }
 0x479   : > { %9202 = vmatprep.subr.bf16.mxu1 %v10032_v33  ;;  %v13581_v62 = vld [vmem:[#allocation44_spill] sm:$0xff] }
 0x47c   : > { %9203 = vmatpush3.bf16.msra.mxu1 %v10032_v33  ;;  %v10036_v33 = vld [vmem:[%s12599_s3 + $0x1a8] sm:$0xff]  }
 0x47d   : > { %9204 = vmatprep.subr.bf16.mxu1 %v10033_v29 }
 0x47f   : > { %9173 = vmatmul.mubr.msk.bf16.gmra.mrb[20].mxu1 %vm13577_vm5, %v13575_v28  ;;  %v13589_v28 = vld [vmem:[#allocation20_spill] sm:$0xff] }
 0x480   : > { %9176 = vmatprep.mubr.msk.bf16.mxu1 %vm13580_vm0, %v13578_v18  ;;  %9205 = vmatpush3.bf16.msra.mxu1 %v10033_v29  ;;  %v10037_v29 = vld [vmem:[%s12599_s3 + $0x1b0] sm:$0xff]   ;;  %v13587_v18 = vld [vmem:[#allocation19_spill] sm:$0xff] }
 0x481   : > { %9206 = vmatprep.subr.bf16.mxu1 %v10034_v59  ;;  %vm13588_vm0 = vnez %v13587_v18  ;;  %v13594_v18 = vld [vmem:[#allocation26_spill] sm:$0xff] }
 0x484   : > { %9207 = vmatpush3.bf16.msra.mxu1 %v10034_v59  ;;  %v10038_v59 = vld [vmem:[%s12599_s3 + $0x1b8] sm:$0xff]  }
 0x485   : > { %9208 = vmatprep.subr.bf16.mxu1 %v10035_v60 }
 0x487   : > { %9177 = vmatmul.mubr.msk.bf16.gmra.mrb[24].mxu1 %vm13583_vm4, %v13581_v62  ;;  %vm13593_vm4 = vnez %v13592_v15 }
 0x488   : > { %9180 = vmatprep.mubr.msk.bf16.mxu1 %vm12050_vm1, %v13584_v61  ;;  %9209 = vmatpush3.bf16.msra.mxu1 %v10035_v60  ;;  %vm13590_vm1 = vnez %v13589_v28  ;;  %v10039_v60 = vld [vmem:[%s12599_s3 + $0x1c0] sm:$0xff]  }
 0x489   : > { %9210 = vmatprep.subr.bf16.mxu1 %v10036_v33  ;;  %v13596_v28 = vld [vmem:[#allocation18_spill] sm:$0xff] }
 0x48c   : > { %9211 = vmatpush3.bf16.msra.mxu1 %v10036_v33  ;;  %v13591_v33 = vld [vmem:[#allocation57_spill] sm:$0xff] }
 0x48d   : > { %9212 = vmatprep.subr.bf16.mxu1 %v10037_v29 }
 0x48f   : > { %9181 = vmatmul.mubr.msk.bf16.gmra.mrb[28].mxu1 %vm13588_vm0, %v13586_v5  ;;  %vm13595_vm0 = vnez %v13594_v18  ;;  %v10087_v18 = vld [vmem:[%s10175_s10 + $0x8] sm:$0xff]  }
 0x490   : > { %9184 = vmatprep.mubr.msk.bf16.mxu1 %vm13590_vm1, %v13530_v8  ;;  %9213 = vmatpush3.bf16.msra.mxu1 %v10037_v29  ;;  %vm13597_vm1 = vnez %v13596_v28  ;;  %v13598_v29 = vld [vmem:[#allocation25_spill] sm:$0xff]  ;;  %v10086_v28 = vld [vmem:[%s10175_s10] sm:$0xff]  }
 0x491   : > { %9214 = vmatprep.subr.bf16.mxu1 %v10038_v59  ;;  %vm13599_vm5 = vnez %v13598_v29 }
 0x494   : > { %9215 = vmatpush3.bf16.msra.mxu1 %v10038_v59  ;;  %v13600_v59 = vld [vmem:[#allocation8_spill] sm:$0xff] }
 0x495   : > { %9248 = vmatprep.subr.bf16.mxu1 %v10039_v60 }
 0x497   : > { %9185 = vmatmul.mubr.msk.bf16.gmra.mrb[0].mxu1 %vm13593_vm4, %v13591_v33 }
 0x498   : > { %9188 = vmatprep.mubr.msk.bf16.mxu1 %vm13595_vm0, %v13541_v42 }
 0x49f   : > { %9189 = vmatmul.mubr.msk.bf16.gmra.mrb[4].mxu1 %vm13597_vm1, %v11717_v27  ;;  %vm13601_vm1 = vcmask 31744  }
 0x4a0   : > { %9192 = vmatprep.mubr.msk.bf16.mxu1 %vm13599_vm5, %v11729_v11  ;;  %8880 = vmatprep.mubr.msk.bf16.mxu0 %vm13601_vm1, %v10086_v28  ;;  %vm13602_vm5 = vmmov %vm13601_vm1 }
 0x4a1   : > { %8881 = vmatmul.mubr.msk.bf16.vlgmr.msra.gmra.mrb[32].mxu0 %vm13602_vm5, %v10087_v18  ;;  %vm13606_vm5 = vnez %v13439_v10  ;;  %v10045_v10 = vld [vmem:[%s12599_s3 + $0x1f0] sm:$0xff]  }
 0x4a7   : > { %9193 = vmatmul.mubr.msk.bf16.gmra.mrb[8].mxu1 %vm12135_vm7, %v11769_v55 }
 0x4a8   : > { %9196 = vmatprep.mubr.msk.bf16.mxu1 %vm12142_vm8, %v11786_v21 }
 0x4af   : > { %9197 = vmatmul.mubr.msk.bf16.gmra.mrb[12].mxu1 %vm12155_vm2, %v13600_v59  ;;  %vm13603_vm2 = vnez %v13426_v22  ;;  %v10043_v22 = vld [vmem:[%s12599_s3 + $0x1e0] sm:$0xff]  }
 0x4b0   : > { %9216 = vmatprep.mubr.msk.bf16.mxu1 %vm12162_vm13, %v11537_v52  ;;  %v10088_v52 = vld [vmem:[%s10175_s10 + $0x10] sm:$0xff]   ;;  %vm13604_vm13 = vmmov %vm13601_vm1 }
 0x4b1   : > { %8884 = vmatprep.mubr.msk.bf16.mxu0 %vm13601_vm1, %v10088_v52 }
 0x4b2   : > { %8885 = vmatmul.mubr.msk.bf16.gmra.mrb[36].mxu0 %vm13604_vm13, %v10089_v0  ;;  %vm13608_vm13 = vnez %v13443_v47  ;;  %v13632_v47 = vld [vmem:[#allocation19_spill] sm:$0xff] }
 0x4b7   : > { %9217 = vmatmul.mubr.msk.bf16.vlgmr.msra.gmra.mrb[16].mxu1 %vm11744_vm9, %v11560_v4  ;;  %v10042_v4 = vld [vmem:[%s12599_s3 + $0x1d8] sm:$0xff]   ;;  %vm13605_vm9 = vnez %v13435_v19 }
 0x4b8   : > { %9249 = vmatpush3.bf16.msra.mxu1 %v10039_v60  ;;  %9220 = vmatprep.mubr.msk.bf16.mxu1 %vm13603_vm2, %v11562_v36  ;;  %v10090_v36 = vld [vmem:[%s10175_s10 + $0x20] sm:$0xff]   ;;  %vm13607_vm2 = vmmov %vm13601_vm1  ;;  %v10093_v19 = vld [vmem:[%s10175_s10 + $0x38] sm:$0xff]  }
 0x4b9   : > { %9250 = vmatprep.subr.bf16.mxu1 %v10040_v49  ;;  %8888 = vmatprep.mubr.msk.bf16.mxu0 %vm13607_vm2, %v10090_v36  ;;  %vm13611_vm2 = vmmov %vm13601_vm1 }
 0x4ba   : > { %8889 = vmatmul.mubr.msk.bf16.gmra.mrb[40].mxu0 %vm13601_vm1, %v10091_v12 }
 0x4bc   : > { %9251 = vmatpush3.bf16.msra.mxu1 %v10040_v49  ;;  %v3994_v49 = vld [vmem:[%s12600_s4] sm:$0x1] }
 0x4bd   : > { %9252 = vmatprep.subr.bf16.mxu1 %v10041_v13 }
 0x4bf   : > { %9221 = vmatmul.mubr.msk.bf16.gmra.mrb[20].mxu1 %vm13605_vm9, %v11592_v24  ;;  %v10044_v24 = vld [vmem:[%s12599_s3 + $0x1e8] sm:$0xff]   ;;  %vm13609_vm9 = vnez %v13446_v63  ;;  %v13634_v63 = vld [vmem:[#allocation20_spill] sm:$0xff] }
 0x4c0   : > { %9224 = vmatprep.mubr.msk.bf16.mxu1 %vm13606_vm5, %v11594_v17  ;;  %9253 = vmatpush3.bf16.msra.mxu1 %v10041_v13  ;;  %v10092_v17 = vld [vmem:[%s10175_s10 + $0x30] sm:$0xff]   ;;  %vm13610_vm5 = vmmov %vm13601_vm1  ;;  %vm13612_vm1 = vnez %v13452_v56 }
 0x4c1   : > { %9254 = vmatprep.subr.bf16.mxu1 %v10042_v4  ;;  %8892 = vmatprep.mubr.msk.bf16.mxu0 %vm13610_vm5, %v10092_v17  ;;  %vm13638_vm5 = vnez %v13637_v54 }
 0x4c2   : > { %8893 = vmatmul.mubr.msk.bf16.gmra.mrb[44].mxu0 %vm13611_vm2, %v10093_v19  ;;  %vm13639_vm2 = vnez %v13598_v29 }
 0x4c4   : > { %9255 = vmatpush3.bf16.msra.mxu1 %v10042_v4 }
 0x4c5   : > { %9256 = vmatprep.subr.bf16.mxu1 %v10043_v22 }
 0x4c7   : > { %9225 = vmatmul.mubr.msk.bf16.gmra.mrb[24].mxu1 %vm13608_vm13, %v11624_v2  ;;  %v10046_v2 = vld [vmem:[%s12599_s3 + $0x1f8] sm:$0xff]   ;;  %vm13614_vm13 = vnez %v13470_v50 }
 0x4c8   : > { %9228 = vmatprep.mubr.msk.bf16.mxu1 %vm13609_vm9, %v11626_v45  ;;  %9257 = vmatpush3.bf16.msra.mxu1 %v10043_v22  ;;  %v10047_v45 = vld [vmem:[%s12599_s3 + $0x200] sm:$0xff]   ;;  %vm13635_vm9 = vnez %v13634_v63 }
 0x4c9   : > { %9258 = vmatprep.subr.bf16.mxu1 %v10044_v24 }
 0x4cc   : > { %9259 = vmatpush3.bf16.msra.mxu1 %v10044_v24 }
 0x4cd   : > { %9260 = vmatprep.subr.bf16.mxu1 %v10045_v10 }
 0x4cf   : > { %9229 = vmatmul.mubr.msk.bf16.gmra.mrb[28].mxu1 %vm13563_vm15, %v11656_v53  ;;  %vm13613_vm15 = vnez %v13467_v20  ;;  %v10048_v53 = vld [vmem:[%s12599_s3 + $0x208] sm:$0xff]  }
 0x4d0   : > { %9232 = vmatprep.mubr.msk.bf16.mxu1 %vm13612_vm1, %v11658_v57  ;;  %9261 = vmatpush3.bf16.msra.mxu1 %v10045_v10  ;;  %v10049_v57 = vld [vmem:[%s12599_s3 + $0x210] sm:$0xff]  }
 0x4d1   : > { %9262 = vmatprep.subr.bf16.mxu1 %v10046_v2 }
 0x4d4   : > { %9263 = vmatpush3.bf16.msra.mxu1 %v10046_v2 }
 0x4d5   : > { %9296 = vmatprep.subr.bf16.mxu1 %v10047_v45 }
 0x4d7   : > { %9233 = vmatmul.mubr.msk.bf16.gmra.mrb[0].mxu1 %vm13565_vm3, %v11688_v23  ;;  %v13615_v23 = vmov 0.0|0.0  }
 0x4d8   : > { %9236 = vmatprep.mubr.msk.bf16.mxu1 %vm13566_vm6, %v11690_v34  ;;  %v13621_v34 = vld [vmem:[#allocation15_spill] sm:$0xff] }
 0x4df   : > { %9237 = vmatmul.mubr.msk.bf16.gmra.mrb[4].mxu1 %vm11900_vm12, %v11720_v31  ;;  %v13623_v31 = vld [vmem:[#allocation4_spill] sm:$0xff] }
 0x4e0   : > { %9240 = vmatprep.mubr.msk.bf16.mxu1 %vm13567_vm11, %v11722_v7  ;;  %vm13622_vm11 = vnez %v13621_v34  ;;  %v13624_v7 = vld [vmem:[#allocation12_spill] sm:$0xff] }
 0x4e1   : > { %vm13625_vm6 = vnez %v13624_v7 }
 0x4e7   : > { %9241 = vmatmul.mubr.msk.bf16.gmra.mrb[8].mxu1 %vm13613_vm15, %v11773_v9  ;;  %v13628_v9 = vld [vmem:[#allocation17_spill] sm:$0xff] }
 0x4e8   : > { %9244 = vmatprep.mubr.msk.bf16.mxu1 %vm13614_vm13, %v11788_v48  ;;  %vm13629_vm3 = vnez %v13628_v9  ;;  %v13630_v48 = vld [vmem:[#allocation21_spill] sm:$0xff] }
 0x4ef   : > { %9245 = vmatmul.mubr.bf16.gmra.mrb[12].mxu1 %v13615_v23 }
 0x4f0   : > { %9264 = vmatprep.mubr.bf16.mxu1 %v11507_v32  ;;  %v10050_v32 = vld [vmem:[%s12599_s3 + $0x218] sm:$0xff]  }
 0x4f7   : > { %9265 = vmatmul.mubr.bf16.vlgmr.msra.gmra.mrb[16].mxu1 %v11543_v30  ;;  %v10052_v30 = vld [vmem:[%s12599_s3 + $0x228] sm:$0xff]  }
 0x4f8   : > { %9297 = vmatpush3.bf16.msra.mxu1 %v10047_v45  ;;  %9268 = vmatprep.mubr.bf16.mxu1 %v11539_v43  ;;  %v10051_v43 = vld [vmem:[%s12599_s3 + $0x220] sm:$0xff]  }
 0x4f9   : > { %9298 = vmatprep.subr.bf16.mxu1 %v10048_v53 }
 0x4fc   : > { %9299 = vmatpush3.bf16.msra.mxu1 %v10048_v53 }
 0x4fd   : > { %9300 = vmatprep.subr.bf16.mxu1 %v10049_v57 }
 0x4ff   : > { %9269 = vmatmul.mubr.bf16.gmra.mrb[20].mxu1 %v11575_v25  ;;  %v10053_v25 = vld [vmem:[%s12599_s3 + $0x230] sm:$0xff]  }
 0x500   : > { %9272 = vmatprep.mubr.bf16.mxu1 %v11571_v3  ;;  %9301 = vmatpush3.bf16.msra.mxu1 %v10049_v57  ;;  %v10054_v3 = vld [vmem:[%s12599_s3 + $0x238] sm:$0xff]  }
 0x501   : > { %9302 = vmatprep.subr.bf16.mxu1 %v10050_v32 }
 0x504   : > { %9303 = vmatpush3.bf16.msra.mxu1 %v10050_v32 }
 0x505   : > { %9304 = vmatprep.subr.bf16.mxu1 %v10051_v43 }
 0x507   : > { %9273 = vmatmul.mubr.bf16.gmra.mrb[24].mxu1 %v11607_v1  ;;  %v13616_v1 = vld [vmem:[#allocation42_spill] sm:$0xff] }
 0x508   : > { %9276 = vmatprep.mubr.bf16.mxu1 %v11603_v46  ;;  %9305 = vmatpush3.bf16.msra.mxu1 %v10051_v43  ;;  %v13618_v46 = vld [vmem:[#allocation39_spill] sm:$0xff] }
 0x509   : > { %9306 = vmatprep.subr.bf16.mxu1 %v10052_v30 }
 0x50c   : > { %9307 = vmatpush3.bf16.msra.mxu1 %v10052_v30 }
 0x50d   : > { %9308 = vmatprep.subr.bf16.mxu1 %v10053_v25 }
 0x50f   : > { %9277 = vmatmul.mubr.bf16.gmra.mrb[28].mxu1 %v11639_v39 }
 0x510   : > { %9280 = vmatprep.mubr.bf16.mxu1 %v11635_v44  ;;  %9309 = vmatpush3.bf16.msra.mxu1 %v10053_v25 }
 0x511   : > { %9310 = vmatprep.subr.bf16.mxu1 %v10054_v3 }
 0x514   : > { %9311 = vmatpush3.bf16.msra.mxu1 %v10054_v3 }
 0x517   : > { %9281 = vmatmul.mubr.bf16.gmra.mrb[0].mxu1 %v11671_v35  ;;  %v13620_v35 = vld [vmem:[#allocation43_spill] sm:$0xff] }
 0x518   : > { %9284 = vmatprep.mubr.bf16.mxu1 %v13475_v37 }
 0x51f   : > { %9285 = vmatmul.mubr.bf16.gmra.mrb[4].mxu1 %v13476_v38 }
 0x520   : > { %9288 = vmatprep.mubr.bf16.mxu1 %v13477_v14 }
 0x527   : > { %9289 = vmatmul.mubr.bf16.gmra.mrb[8].mxu1 %v11735_v58  ;;  %v13626_v58 = vld [vmem:[#allocation16_spill] sm:$0xff] }
 0x528   : > { %9292 = vmatprep.mubr.bf16.mxu1 %v13574_v6  ;;  %vm13627_vm12 = vnez %v13626_v58 }
 0x52f   : > { %9293 = vmatmul.mubr.bf16.gmra.mrb[12].mxu1 %v13615_v23 }
 0x530   : > { %9312 = vmatprep.mubr.msk.bf16.mxu1 %vm12283_vm10, %v13616_v1  ;;  %vm13631_vm10 = vnez %v13630_v48 }
 0x537   : > { %9313 = vmatmul.mubr.msk.bf16.vlgmr.msra.gmra.mrb[16].mxu1 %vm11991_vm14, %v13618_v46  ;;  %vm13633_vm14 = vnez %v13632_v47 }
 0x538   : > { %9316 = vmatprep.mubr.msk.bf16.mxu1 %vm13622_vm11, %v13620_v35 }
 0x53f   : > { %9317 = vmatmul.mubr.msk.bf16.gmra.mrb[20].mxu1 %vm13625_vm6, %v13623_v31 }
 0x540   : > { %9320 = vmatprep.mubr.msk.bf16.mxu1 %vm13627_vm12, %v13581_v62 }
 0x547   : > { %9321 = vmatmul.mubr.msk.bf16.gmra.mrb[24].mxu1 %vm13629_vm3, %v13584_v61  ;;  %v13641_v61 = vld [vmem:[#allocation2_spill] sm:$0xff] }
 0x548   : > { %9324 = vmatprep.mubr.msk.bf16.mxu1 %vm13631_vm10, %v13586_v5  ;;  %v4000_v6 = vsub.s32 0, %v13641_v61 }
 0x54f   : > { %9325 = vmatmul.mubr.msk.bf16.gmra.mrb[28].mxu1 %vm13633_vm14, %v13530_v8  ;;  %v3996_v8 = vadd.f32 %v3995_v16, %v3994_v49 }
 0x550   : > { %9328 = vmatprep.mubr.msk.bf16.mxu1 %vm13635_vm9, %v13591_v33 }
 0x551   : > { %v12536_v28 = vrot.slane %v3996_v8, %v4000_v6 }
 0x557   : > { %9329 = vmatmul.mubr.msk.bf16.gmra.mrb[0].mxu1 %vm13593_vm4, %v13541_v42 }
 0x558   : > { %9332 = vmatprep.mubr.msk.bf16.mxu1 %vm13595_vm0, %v11717_v27 }
 0x55f   : > { %9333 = vmatmul.mubr.msk.bf16.gmra.mrb[4].mxu1 %vm13638_vm5, %v11729_v11 }
 0x560   : > { %9336 = vmatprep.mubr.msk.bf16.mxu1 %vm13639_vm2, %v11769_v55 }
 0x567   : > { %9337 = vmatmul.mubr.msk.bf16.gmra.mrb[8].mxu1 %vm12135_vm7, %v11786_v21 }
 0x568   : > { %9340 = vmatprep.mubr.msk.bf16.mxu1 %vm12142_vm8, %v13600_v59 }
 0x56f   : > { %9341 = vmatmul.mubr.bf16.gmra.mrb[12].mxu1 %v13615_v23 }
 0x574   : > { %v8882_v26 = vpop.f32.mrb[32].mxu0 }
 0x575   : > { %v4168_v27 = vpop.f32.mrb[33].mxu0  ;;  %v4177_v18 = vadd.f32 %v8882_v26, %v12536_v28 }
 0x576   : > { %v8883_v41 = vpop.f32.mrb[34].mxu0  ;;  %v4169_v60 = vadd.f32 %v4168_v27, %v12536_v28 }
 0x577   : > { %v4171_v51 = vpop.f32.mrb[35].mxu0  ;;  %v4180_v33 = vadd.f32 %v8883_v41, %v12536_v28 }
 0x578   : > { %v4172_v59 = vadd.f32 %v4171_v51, %v12536_v28 }
 0x585   : > { %v8886_v40 = vpop.f32.mrb[36].mxu0 }
 0x586   : > { %v4184_v11 = vpop.f32.mrb[37].mxu0  ;;  %v4193_v17 = vadd.f32 %v8886_v40, %v12536_v28 }
 0x587   : > { %v8887_v20 = vpop.f32.mrb[38].mxu0  ;;  %v4185_v10 = vadd.f32 %v4184_v11, %v12536_v28 }
 0x588   : > { %v4187_v50 = vpop.f32.mrb[39].mxu0  ;;  %v4196_v2 = vadd.f32 %v8887_v20, %v12536_v28 }
 0x589   : > { %v4188_v23 = vadd.f32 %v4187_v50, %v12536_v28 }
 0x58d   : > { %v8890_v37 = vpop.f32.mrb[40].mxu0 }
 0x58e   : > { %v4200_v55 = vpop.f32.mrb[41].mxu0  ;;  %v4209_v39 = vadd.f32 %v8890_v37, %v12536_v28 }
 0x58f   : > { %v8891_v38 = vpop.f32.mrb[42].mxu0  ;;  %v4201_v44 = vadd.f32 %v4200_v55, %v12536_v28 }
 0x590   : > { %v4203_v14 = vpop.f32.mrb[43].mxu0  ;;  %v4212_v35 = vadd.f32 %v8891_v38, %v12536_v28 }
 0x591   : > { %v4204_v31 = vadd.f32 %v4203_v14, %v12536_v28 }
 0x595   : > { %v8894_v5 = vpop.f32.mrb[44].mxu0 }
 0x596   : > { %v4216_v21 = vpop.f32.mrb[45].mxu0  ;;  %v4225_v56 = vadd.f32 %v8894_v5, %v12536_v28 }
 0x597   : > { %v8895_v15 = vpop.f32.mrb[46].mxu0  ;;  %v4217_v27 = vadd.f32 %v4216_v21, %v12536_v28 }
 0x598   : > { %v4219_v42 = vpop.f32.mrb[47].mxu0  ;;  %v4228_v41 = vadd.f32 %v8895_v15, %v12536_v28 }
 0x599   : > { %v4220_v40 = vadd.f32 %v4219_v42, %v12536_v28 }
 0x60a   : > { %v9314_v29 = vpop.f32.mrb[16].mxu1 }
 0x60b   : > { %v9379_v52 = vadd.f32 %v9314_v29, %v4177_v18  ;;  %v6985_v0 = vpop.f32.mrb[17].mxu1 }
 0x60c   : > { %v9381_v13 = vadd.f32 %v6985_v0, %v4169_v60  ;;  %v9315_v4 = vpop.f32.mrb[18].mxu1 }
 0x60d   : > { %v9383_v36 = vadd.f32 %v9315_v4, %v4180_v33  ;;  %v6988_v12 = vpop.f32.mrb[19].mxu1 }
 0x60e   : > { %v9385_v22 = vadd.f32 %v6988_v12, %v4172_v59 }
 0x60f   : > { %v8099_v24 = vpack.c.bf16 %v9383_v36, %v9379_v52 }
 0x610   : > { %v8094_v19 = vpack.c.bf16 %v9385_v22, %v9381_v13 }
 0x611   : > { %8171 = vst [vmem:[%s12547_s27 + $0x8] sm:$0xff] %v8099_v24  }
 0x612   : > { %8095 = vst [vmem:[%s12547_s27] sm:$0xff] %v8094_v19   ;;  %v9318_v45 = vpop.f32.mrb[20].mxu1 }
 0x613   : > { %v9387_v53 = vadd.f32 %v9318_v45, %v4193_v17  ;;  %v7001_v57 = vpop.f32.mrb[21].mxu1 }
 0x614   : > { %v9389_v32 = vadd.f32 %v7001_v57, %v4185_v10  ;;  %v9319_v43 = vpop.f32.mrb[22].mxu1 }
 0x615   : > { %v9391_v30 = vadd.f32 %v9319_v43, %v4196_v2  ;;  %v7004_v25 = vpop.f32.mrb[23].mxu1 }
 0x616   : > { %v9393_v3 = vadd.f32 %v7004_v25, %v4188_v23 }
 0x617   : > { %v8109_v1 = vpack.c.bf16 %v9391_v30, %v9387_v53 }
 0x618   : > { %v8104_v46 = vpack.c.bf16 %v9393_v3, %v9389_v32 }
 0x619   : > { %8173 = vst [vmem:[%s12547_s27 + $0x18] sm:$0xff] %v8109_v1  }
 0x61a   : > { %8172 = vst [vmem:[%s12547_s27 + $0x10] sm:$0xff] %v8104_v46   ;;  %v9322_v34 = vpop.f32.mrb[24].mxu1 }
 0x61b   : > { %v9395_v7 = vadd.f32 %v9322_v34, %v4209_v39  ;;  %v7017_v58 = vpop.f32.mrb[25].mxu1 }
 0x61c   : > { %v9397_v9 = vadd.f32 %v7017_v58, %v4201_v44  ;;  %v9323_v48 = vpop.f32.mrb[26].mxu1 }
 0x61d   : > { %v9399_v47 = vadd.f32 %v9323_v48, %v4212_v35  ;;  %v7020_v63 = vpop.f32.mrb[27].mxu1 }
 0x61e   : > { %v9401_v62 = vadd.f32 %v7020_v63, %v4204_v31 }
 0x61f   : > { %v8119_v54 = vpack.c.bf16 %v9399_v47, %v9395_v7 }
 0x620   : > { %v8114_v26 = vpack.c.bf16 %v9401_v62, %v9397_v9 }
 0x621   : > { %8175 = vst [vmem:[%s12547_s27 + $0x28] sm:$0xff] %v8119_v54  }
 0x622   : > { %8174 = vst [vmem:[%s12547_s27 + $0x20] sm:$0xff] %v8114_v26   ;;  %v9326_v51 = vpop.f32.mrb[28].mxu1 }
 0x623   : > { %v9403_v11 = vadd.f32 %v9326_v51, %v4225_v56  ;;  %v7033_v20 = vpop.f32.mrb[29].mxu1 }
 0x624   : > { %v9405_v50 = vadd.f32 %v7033_v20, %v4217_v27  ;;  %v9327_v37 = vpop.f32.mrb[30].mxu1 }
 0x625   : > { %v9407_v55 = vadd.f32 %v9327_v37, %v4228_v41  ;;  %v7036_v38 = vpop.f32.mrb[31].mxu1 }
 0x626   : > { %v9409_v14 = vadd.f32 %v7036_v38, %v4220_v40 }
 0x627   : > { %v8129_v5 = vpack.c.bf16 %v9407_v55, %v9403_v11 }
 0x628   : > { %v8124_v49 = vpack.c.bf16 %v9409_v14, %v9405_v50 }
 0x629   : > { %8177 = vst [vmem:[%s12547_s27 + $0x38] sm:$0xff] %v8129_v5  }
 0x62a   : > { %8176 = vst [vmem:[%s12547_s27 + $0x30] sm:$0xff] %v8124_v49   ;;  %v9330_v21 = vpop.f32.mrb[0].mxu1 }
 0x62b   : > { %v7049_v16 = vpop.f32.mrb[1].mxu1  ;;  %v9410_v8 = vadd.f32 %v9330_v21, %v12536_v28 }
 0x62c   : > { %v9331_v15 = vpop.f32.mrb[2].mxu1  ;;  %v9411_v6 = vadd.f32 %v7049_v16, %v12536_v28 }
 0x62d   : > { %v9412_v42 = vadd.f32 %v9331_v15, %v12536_v28  ;;  %v7052_v61 = vpop.f32.mrb[3].mxu1 }
 0x62e   : > { %v9413_v18 = vadd.f32 %v7052_v61, %v12536_v28 }
 0x62f   : > { %v8139_v60 = vpack.c.bf16 %v9412_v42, %v9410_v8 }
 0x630   : > { %v8134_v33 = vpack.c.bf16 %v9413_v18, %v9411_v6 }
 0x631   : > { %8179 = vst [vmem:[%s12547_s27 + $0x48] sm:$0xff] %v8139_v60  }
 0x632   : > { %8178 = vst [vmem:[%s12547_s27 + $0x40] sm:$0xff] %v8134_v33   ;;  %v9334_v29 = vpop.f32.mrb[4].mxu1 }
 0x633   : > { %v7065_v59 = vpop.f32.mrb[5].mxu1  ;;  %v9414_v0 = vadd.f32 %v9334_v29, %v12536_v28 }
 0x634   : > { %v9335_v52 = vpop.f32.mrb[6].mxu1  ;;  %v9415_v36 = vadd.f32 %v7065_v59, %v12536_v28 }
 0x635   : > { %v9416_v13 = vadd.f32 %v9335_v52, %v12536_v28  ;;  %v7068_v4 = vpop.f32.mrb[7].mxu1 }
 0x636   : > { %v9417_v12 = vadd.f32 %v7068_v4, %v12536_v28 }
 0x637   : > { %v8149_v22 = vpack.c.bf16 %v9416_v13, %v9414_v0 }
 0x638   : > { %v8144_v24 = vpack.c.bf16 %v9417_v12, %v9415_v36 }
 0x639   : > { %8181 = vst [vmem:[%s12547_s27 + $0x58] sm:$0xff] %v8149_v22  }
 0x63a   : > { %8180 = vst [vmem:[%s12547_s27 + $0x50] sm:$0xff] %v8144_v24   ;;  %v9338_v17 = vpop.f32.mrb[8].mxu1 }
 0x63b   : > { %v7081_v19 = vpop.f32.mrb[9].mxu1  ;;  %v9418_v2 = vadd.f32 %v9338_v17, %v12536_v28 }
 0x63c   : > { %v9339_v10 = vpop.f32.mrb[10].mxu1  ;;  %v9419_v53 = vadd.f32 %v7081_v19, %v12536_v28 }
 0x63d   : > { %v9420_v45 = vadd.f32 %v9339_v10, %v12536_v28  ;;  %v7084_v23 = vpop.f32.mrb[11].mxu1 }
 0x63e   : > { %v9421_v57 = vadd.f32 %v7084_v23, %v12536_v28 }
 0x63f   : > { %v8159_v32 = vpack.c.bf16 %v9420_v45, %v9418_v2 }
 0x640   : > { %v8154_v43 = vpack.c.bf16 %v9421_v57, %v9419_v53 }
 0x641   : > { %8183 = vst [vmem:[%s12547_s27 + $0x68] sm:$0xff] %v8159_v32  }
 0x642   : > { %8182 = vst [vmem:[%s12547_s27 + $0x60] sm:$0xff] %v8154_v43   ;;  %v9342_v30 = vpop.f32.mrb[12].mxu1 }
 0x643   : > { %v7097_v25 = vpop.f32.mrb[13].mxu1  ;;  %v9422_v1 = vadd.f32 %v9342_v30, %v12536_v28 }
 0x644   : > { %v9343_v3 = vpop.f32.mrb[14].mxu1  ;;  %v9423_v44 = vadd.f32 %v7097_v25, %v12536_v28 }
 0x645   : > { %v9424_v39 = vadd.f32 %v9343_v3, %v12536_v28  ;;  %v7100_v46 = vpop.f32.mrb[15].mxu1 }
 0x646   : > { %v9425_v35 = vadd.f32 %v7100_v46, %v12536_v28 }
 0x647   : > { %v8169_v34 = vpack.c.bf16 %v9424_v39, %v9422_v1 }
 0x648   : > { %v8164_v31 = vpack.c.bf16 %v9425_v35, %v9423_v44 }
 0x649   : > { %8185 = vst [vmem:[%s12547_s27 + $0x78] sm:$0xff] %v8169_v34  }
 0x64a   : > { %8184 = vst [vmem:[%s12547_s27 + $0x70] sm:$0xff] %v8164_v31  }
 0x64b PF: > { %s17_s24 = sadd.s32 1, %s10100_s24  }
 0x64c   : > { %p14_p4 = scmp.ge.s32.totalorder %s17_s24, 4  }
 0x64e   :  { %16 = sbr.rel (!%p14_p4) target bundleno = 1 (0x1), region = 94 }

</bundles_post_ra>
